<compile_context>
chip_gen: v5e
topology: v5e:2x2
jax: 0.10.0
libtpu: 0.0.40
codegen_flags: <defaults>
</compile_context>

<pallas_src>
import functools

import jax
import jax.numpy as jnp
from jax.experimental import pallas as pl
from jax.experimental.pallas import tpu as pltpu

EPS = 1e-5
LANES = 128

_PARALLEL = pltpu.CompilerParams(dimension_semantics=("parallel",))


# ---------------------------------------------------------------------------
# small helpers
# ---------------------------------------------------------------------------
def _round_up(x, m):
    return (x + m - 1) // m * m


def _pick_row_tile(m, target=512):
    """Largest row tile <= target that divides m (keeps BN partial sums exact)."""
    for t in (target, 256, 128, 64, 32, 16, 8):
        if t <= m and m % t == 0:
            return t
    return m


def _pad_last(a, c):
    if a.shape[-1] == c:
        return a
    pad = [(0, 0)] * (a.ndim - 1) + [(0, c - a.shape[-1])]
    return jnp.pad(a, pad)


def _pad2(w, r, c):
    return jnp.pad(w, ((0, r - w.shape[0]), (0, c - w.shape[1])))


def _row_spec(tm, c):
    return pl.BlockSpec((tm, c), lambda i: (i, 0))


def _const_spec(shape):
    n = len(shape)
    return pl.BlockSpec(shape, lambda i, _n=n: (0,) * _n)


def _stat_spec(c):
    return pl.BlockSpec((1, 2, c), lambda i: (i, 0, 0))


def _bn_coeffs(stats, count, gamma, beta):
    """Combine per-tile (sum, sumsq) partials -> per-channel BN scale/shift."""
    s = jnp.sum(stats[:, 0, :], axis=0)
    sq = jnp.sum(stats[:, 1, :], axis=0)
    mean = s / count
    var = jnp.maximum(sq / count - mean * mean, 0.0)
    scale = gamma.reshape(-1) * jax.lax.rsqrt(var + EPS)
    shift = beta.reshape(-1) - mean * scale
    return scale.reshape(1, -1), shift.reshape(1, -1)


# ---------------------------------------------------------------------------
# Pallas kernels
# ---------------------------------------------------------------------------
def _tile_stats(y):
    """Per-channel (sum, sum of squares) of an f32 (rows, C) tile -> (1, 2, C)."""
    s = jnp.sum(y, axis=0, keepdims=True)
    sq = jnp.sum(y * y, axis=0, keepdims=True)
    return jnp.concatenate([s, sq], axis=0)[None]


def _matmul_stats_kernel(x_ref, w_ref, y_ref, st_ref):
    """1x1 conv tile on the MXU (f32, f32 accumulate) + BN partial sums."""
    y = jnp.dot(x_ref[...], w_ref[...], preferred_element_type=jnp.float32)
    y_ref[...] = y.astype(y_ref.dtype)
    st_ref[...] = _tile_stats(y)


def _bn_relu_kernel(y_ref, sc_ref, sh_ref, o_ref):
    """Tiled apply of precomputed BN scale/shift + ReLU."""
    y = y_ref[...] * sc_ref[...] + sh_ref[...]
    o_ref[...] = jnp.maximum(y, 0.0).astype(o_ref.dtype)


def _dw_stats_kernel(stride, hout, wout, ph_ref, w_ref, y_ref, st_ref):
    """Depthwise 3x3 (stride s) for one image.

    Input is the padded activation pre-split into stride*stride phases, so every
    tap is a contiguous static slice of the resident VMEM block (no taps tensor).
    """
    c = y_ref.shape[-1]
    wv = w_ref[...]                                     # (9, C) f32, loaded once
    acc = jnp.zeros((hout, wout, c), jnp.float32)
    for kh in range(3):
        for kw in range(3):
            p = (kh % stride) * stride + (kw % stride)
            tap = ph_ref[p, 0,
                         kh // stride: kh // stride + hout,
                         kw // stride: kw // stride + wout, :]
            wk = wv[kh * 3 + kw].reshape(1, 1, c)
            acc = acc + tap * wk
    y_ref[...] = acc[None].astype(y_ref.dtype)
    st_ref[...] = _tile_stats(acc.reshape(hout * wout, c))


def _project_kernel(with_sc, a_ref, sc2_ref, sh2_ref, w3_ref, *rest):
    """Fused BN2-apply+ReLU -> project 1x1 (+ fused shortcut 1x1) + BN partials."""
    if with_sc:
        x_ref, wsc_ref, y_ref, ysc_ref, st_ref, stsc_ref = rest
    else:
        y_ref, st_ref = rest
    h = jnp.maximum(a_ref[...] * sc2_ref[...] + sh2_ref[...], 0.0)
    y = jnp.dot(h, w3_ref[...], preferred_element_type=jnp.float32)
    y_ref[...] = y.astype(y_ref.dtype)
    st_ref[...] = _tile_stats(y)
    if with_sc:
        ysc = jnp.dot(x_ref[...], wsc_ref[...], preferred_element_type=jnp.float32)
        ysc_ref[...] = ysc.astype(ysc_ref.dtype)
        stsc_ref[...] = _tile_stats(ysc)


def _final_kernel(mode, *refs):
    """Apply BN3 (+BN_shortcut) and the residual. mode: 0 none, 1 identity, 2 projected."""
    if mode == 0:
        y_ref, sc_ref, sh_ref, o_ref = refs
    elif mode == 1:
        y_ref, sc_ref, sh_ref, r_ref, o_ref = refs
    else:
        y_ref, sc_ref, sh_ref, ysc_ref, scs_ref, shs_ref, o_ref = refs
    out = y_ref[...] * sc_ref[...] + sh_ref[...]
    if mode == 1:
        out = out + r_ref[...]
    elif mode == 2:
        out = out + (ysc_ref[...] * scs_ref[...] + shs_ref[...])
    o_ref[...] = out.astype(o_ref.dtype)


# ---------------------------------------------------------------------------
# pallas_call wrappers (row-tiled, pipelined, "parallel" grids)
# ---------------------------------------------------------------------------
def _expand(x, w, tm):
    m, cin = x.shape
    cout = w.shape[1]
    g = m // tm
    return pl.pallas_call(
        _matmul_stats_kernel,
        grid=(g,),
        in_specs=[_row_spec(tm, cin), _const_spec(w.shape)],
        out_specs=(_row_spec(tm, cout), _stat_spec(cout)),
        out_shape=(jax.ShapeDtypeStruct((m, cout), jnp.float32),
                   jax.ShapeDtypeStruct((g, 2, cout), jnp.float32)),
        compiler_params=_PARALLEL,
    )(x, w)


def _bn_relu(y, scale, shift, tm):
    m, c = y.shape
    return pl.pallas_call(
        _bn_relu_kernel,
        grid=(m // tm,),
        in_specs=[_row_spec(tm, c), _const_spec((1, c)), _const_spec((1, c))],
        out_specs=_row_spec(tm, c),
        out_shape=jax.ShapeDtypeStruct((m, c), jnp.float32),
        compiler_params=_PARALLEL,
    )(y, scale, shift)


def _depthwise(phases, w9, stride, hout, wout):
    s2, n, hh, wh, c = phases.shape
    return pl.pallas_call(
        functools.partial(_dw_stats_kernel, stride, hout, wout),
        grid=(n,),
        in_specs=[pl.BlockSpec((s2, 1, hh, wh, c), lambda b: (0, b, 0, 0, 0)),
                  _const_spec(w9.shape)],
        out_specs=(pl.BlockSpec((1, hout, wout, c), lambda b: (b, 0, 0, 0)),
                   _stat_spec(c)),
        out_shape=(jax.ShapeDtypeStruct((n, hout, wout, c), jnp.float32),
                   jax.ShapeDtypeStruct((n, 2, c), jnp.float32)),
        compiler_params=_PARALLEL,
    )(phases, w9)


def _project(acc2, scale2, shift2, w3, x, wsc, tm):
    m, cmid = acc2.shape
    cout = w3.shape[1]
    g = m // tm
    with_sc = x is not None
    in_specs = [_row_spec(tm, cmid), _const_spec((1, cmid)), _const_spec((1, cmid)),
                _const_spec(w3.shape)]
    args = [acc2, scale2, shift2, w3]
    out_specs = [_row_spec(tm, cout), _stat_spec(cout)]
    out_shape = [jax.ShapeDtypeStruct((m, cout), jnp.float32),
                 jax.ShapeDtypeStruct((g, 2, cout), jnp.float32)]
    if with_sc:
        in_specs += [_row_spec(tm, x.shape[1]), _const_spec(wsc.shape)]
        args += [x, wsc]
        out_specs = [_row_spec(tm, cout), _row_spec(tm, cout),
                     _stat_spec(cout), _stat_spec(cout)]
        out_shape = [jax.ShapeDtypeStruct((m, cout), jnp.float32),
                     jax.ShapeDtypeStruct((m, cout), jnp.float32),
                     jax.ShapeDtypeStruct((g, 2, cout), jnp.float32),
                     jax.ShapeDtypeStruct((g, 2, cout), jnp.float32)]
    return pl.pallas_call(
        functools.partial(_project_kernel, with_sc),
        grid=(g,),
        in_specs=in_specs,
        out_specs=tuple(out_specs),
        out_shape=tuple(out_shape),
        compiler_params=_PARALLEL,
    )(*args)


def _finalize(y, scale, shift, mode, tm, res=None, ysc=None, scs=None, shs=None):
    m, c = y.shape
    in_specs = [_row_spec(tm, c), _const_spec((1, c)), _const_spec((1, c))]
    args = [y, scale, shift]
    if mode == 1:
        in_specs.append(_row_spec(tm, res.shape[1]))
        args.append(res)
    elif mode == 2:
        in_specs += [_row_spec(tm, c), _const_spec((1, c)), _const_spec((1, c))]
        args += [ysc, scs, shs]
    return pl.pallas_call(
        functools.partial(_final_kernel, mode),
        grid=(m // tm,),
        in_specs=in_specs,
        out_specs=_row_spec(tm, c),
        out_shape=jax.ShapeDtypeStruct((m, c), jnp.float32),
        compiler_params=_PARALLEL,
    )(*args)


# ---------------------------------------------------------------------------
# Parameters + forward
# ---------------------------------------------------------------------------
def init_block_params(key, in_planes, out_planes, expansion, stride):
    planes = expansion * in_planes
    ks = jax.random.split(key, 12)

    def nrm(k, shape, scale=0.1):
        return (scale * jax.random.normal(k, shape)).astype(jnp.float32)

    p = dict(
        w1=nrm(ks[0], (in_planes, planes)),                 # conv1 weight (Cin, planes)
        g1=1.0 + nrm(ks[1], (1, planes)), b1=nrm(ks[2], (1, planes)),
        w2=nrm(ks[3], (3, 3, planes)),                      # depthwise weight (kh, kw, planes)
        g2=1.0 + nrm(ks[4], (1, planes)), b2=nrm(ks[5], (1, planes)),
        w3=nrm(ks[6], (planes, out_planes)),                # conv3 weight (planes, Cout)
        g3=1.0 + nrm(ks[7], (1, out_planes)), b3=nrm(ks[8], (1, out_planes)),
    )
    if stride == 1 and in_planes != out_planes:
        p.update(
            wsc=nrm(ks[9], (in_planes, out_planes)),
            gsc=1.0 + nrm(ks[10], (1, out_planes)),
            bsc=nrm(ks[11], (1, out_planes)),
        )
    return p


def block_forward(x_nchw, params, stride):
    n, cin, h, w = x_nchw.shape
    planes = params['w1'].shape[1]
    cout = params['w3'].shape[1]
    cin_p, cmid_p, cout_p = (_round_up(c, LANES) for c in (cin, planes, cout))

    hout = (h - 1) // stride + 1
    wout = (w - 1) // stride + 1
    m, m2 = n * h * w, n * hout * wout
    tm, tm2 = _pick_row_tile(m), _pick_row_tile(m2)

    # channels-last, lane-dense (C padded to 128) activations; rows = N*H*W
    x_flat = _pad_last(jnp.transpose(x_nchw, (0, 2, 3, 1)).reshape(m, cin), cin_p)

    w1 = _pad2(params['w1'], cin_p, cmid_p)
    w2 = _pad_last(params['w2'].reshape(9, planes), cmid_p)
    w3 = _pad2(params['w3'], cmid_p, cout_p)
    g1, b1 = _pad_last(params['g1'], cmid_p), _pad_last(params['b1'], cmid_p)
    g2, b2 = _pad_last(params['g2'], cmid_p), _pad_last(params['b2'], cmid_p)
    g3, b3 = _pad_last(params['g3'], cout_p), _pad_last(params['b3'], cout_p)

    # ---- stage 1: expand 1x1 (MXU) + BN1 partials, then tiled BN1-apply + ReLU
    y1, st1 = _expand(x_flat, w1, tm)
    sc1, sh1 = _bn_coeffs(st1, m, g1, b1)
    out1 = _bn_relu(y1, sc1, sh1, tm)

    # ---- stage 2: depthwise 3x3 (stride) + BN2 partials
    # Pad once and pre-split into stride x stride phases (layout glue, ~1x traffic)
    # so every tap inside the kernel is a contiguous static slice -> no 9x taps tensor.
    hh, wh = hout + 2 // stride, wout + 2 // stride
    xp = jnp.pad(out1.reshape(n, h, w, cmid_p),
                 ((0, 0), (1, hh * stride - h - 1), (1, wh * stride - w - 1), (0, 0)))
    if stride == 1:
        phases = xp[None]
    else:
        phases = jnp.stack([xp[:, ph::stride, pw::stride, :]
                            for ph in range(stride) for pw in range(stride)], axis=0)
    acc2, st2 = _depthwise(phases, w2, stride, hout, wout)
    sc2, sh2 = _bn_coeffs(st2, m2, g2, b2)
    acc2 = acc2.reshape(m2, cmid_p)

    # ---- stage 3: fused BN2-apply+ReLU -> project 1x1 (+ fused shortcut 1x1) + BN3
    if stride == 1 and cin != cout:
        wsc = _pad2(params['wsc'], cin_p, cout_p)
        gsc, bsc = _pad_last(params['gsc'], cout_p), _pad_last(params['bsc'], cout_p)
        y3, ysc, st3, stsc = _project(acc2, sc2, sh2, w3, x_flat, wsc, tm2)
        sc3, sh3 = _bn_coeffs(st3, m2, g3, b3)
        scs, shs = _bn_coeffs(stsc, m2, gsc, bsc)
        out = _finalize(y3, sc3, sh3, 2, tm2, ysc=ysc, scs=scs, shs=shs)
    else:
        y3, st3 = _project(acc2, sc2, sh2, w3, None, None, tm2)
        sc3, sh3 = _bn_coeffs(st3, m2, g3, b3)
        if stride == 1:
            out = _finalize(y3, sc3, sh3, 1, tm2, res=x_flat)
        else:
            out = _finalize(y3, sc3, sh3, 0, tm2)

    out = out.reshape(n, hout, wout, cout_p)[..., :cout]
    return jnp.transpose(out, (0, 3, 1, 2))


# ---------------------------------------------------------------------------
# Pure-JAX f32 reference (PyTorch training-mode BN forward semantics)
# ---------------------------------------------------------------------------
def _ref_block(x_nchw, params, stride):
    f32 = jnp.float32
    hi = jax.lax.Precision.HIGHEST

    def coeffs(y, g, b):
        yf = y.reshape(-1, y.shape[-1])
        mean = yf.mean(axis=0)
        var = jnp.maximum((yf * yf).mean(axis=0) - mean * mean, 0.0)
        scale = g.reshape(-1) * jax.lax.rsqrt(var + EPS)
        return scale, b.reshape(-1) - mean * scale

    x = jnp.transpose(x_nchw, (0, 2, 3, 1)).astype(f32)
    n, h, w, cin = x.shape
    cout = params['w3'].shape[1]

    y1 = jnp.einsum('nhwc,cd->nhwd', x, params['w1'],
                    preferred_element_type=f32, precision=hi)
    s1, t1 = coeffs(y1, params['g1'], params['b1'])
    out1 = jnp.maximum(y1 * s1 + t1, 0.0)

    hout = (h - 1) // stride + 1
    wout = (w - 1) // stride + 1
    yp = jnp.pad(out1, ((0, 0), (1, 1), (1, 1), (0, 0)))
    acc = jnp.zeros((n, hout, wout, out1.shape[-1]), f32)
    for kh in range(3):
        for kw in range(3):
            acc = acc + yp[:, kh:kh + stride * (hout - 1) + 1:stride,
                             kw:kw + stride * (wout - 1) + 1:stride, :] * params['w2'][kh, kw]
    s2, t2 = coeffs(acc, params['g2'], params['b2'])
    h2 = jnp.maximum(acc * s2 + t2, 0.0)

    y3 = jnp.einsum('nhwc,cd->nhwd', h2, params['w3'],
                    preferred_element_type=f32, precision=hi)
    s3, t3 = coeffs(y3, params['g3'], params['b3'])
    out = y3 * s3 + t3
    if stride == 1:
        if cin == cout:
            out = out + x
        else:
            ysc = jnp.einsum('nhwc,cd->nhwd', x, params['wsc'],
                             preferred_element_type=f32, precision=hi)
            ssc, tsc = coeffs(ysc, params['gsc'], params['bsc'])
            out = out + (ysc * ssc + tsc)
    return jnp.transpose(out, (0, 3, 1, 2))


if __name__ == "__main__":
    key = jax.random.PRNGKey(0)
    configs = [
        # (in_planes, out_planes, expansion, stride)
        (8, 16, 4, 1),    # projected 1x1 shortcut (stride 1, cin != cout)
        (16, 16, 4, 1),   # identity shortcut      (stride 1, cin == cout)
        (8, 16, 4, 2),    # no shortcut            (stride 2)
    ]
    n, h, w = 2, 16, 16
    fwd = jax.jit(block_forward, static_argnums=2)

    for (in_planes, out_planes, expansion, stride) in configs:
        key, kx, kp = jax.random.split(key, 3)
        x = jax.random.normal(kx, (n, in_planes, h, w), dtype=jnp.float32)
        params = init_block_params(kp, in_planes, out_planes, expansion, stride)

        out = jax.block_until_ready(fwd(x, params, stride))
        ref = jax.block_until_ready(_ref_block(x, params, stride))

        hout = (h - 1) // stride + 1
        wout = (w - 1) // stride + 1
        assert out.shape == (n, out_planes, hout, wout), (stride, out.shape)
        err = float(jnp.max(jnp.abs(out - ref)))
        assert bool(jnp.allclose(out, ref, atol=2e-3, rtol=2e-3)), \
            ((in_planes, out_planes, expansion, stride), err)

    print("KERNEL_OK")
</pallas_src>

<mosaic_0001>
module attributes {stable_mosaic.version = 11 : i64} {
  func.func @_bn_relu_kernel(%arg0: i32, %arg1: memref<512x128xf32, #tpu.memory_space<vmem>>, %arg2: memref<1x128xf32, #tpu.memory_space<vmem>>, %arg3: memref<1x128xf32, #tpu.memory_space<vmem>>, %arg4: memref<512x128xf32, #tpu.memory_space<vmem>>) attributes {dimension_semantics = [#tpu.dimension_semantics<parallel>], iteration_bounds = array<i64: 1>, scalar_prefetch = 0 : i64, scratch_operands = 0 : i64, tpu.core_type = #tpu.core_type<tc>, window_params = [{transform_indices = @transform_0, window_bounds = array<i64: 512, 128>}, {pipeline_mode = #tpu.pipeline_mode<synchronous>, transform_indices = @transform_1, window_bounds = array<i64: 1, 128>}, {pipeline_mode = #tpu.pipeline_mode<synchronous>, transform_indices = @transform_2, window_bounds = array<i64: 1, 128>}, {transform_indices = @transform_3, window_bounds = array<i64: 512, 128>}]} {
    %c0 = arith.constant 0 : index
    %c0_0 = arith.constant 0 : index
    %0 = vector.load %arg1[%c0, %c0_0] : memref<512x128xf32, #tpu.memory_space<vmem>>, vector<512x128xf32>
    %c0_1 = arith.constant 0 : index
    %c0_2 = arith.constant 0 : index
    %1 = vector.load %arg2[%c0_1, %c0_2] : memref<1x128xf32, #tpu.memory_space<vmem>>, vector<1x128xf32>
    %2 = vector.broadcast %1 : vector<1x128xf32> to vector<512x128xf32>
    %3 = arith.mulf %0, %2 : vector<512x128xf32>
    %c0_3 = arith.constant 0 : index
    %c0_4 = arith.constant 0 : index
    %4 = vector.load %arg3[%c0_3, %c0_4] : memref<1x128xf32, #tpu.memory_space<vmem>>, vector<1x128xf32>
    %5 = vector.broadcast %4 : vector<1x128xf32> to vector<512x128xf32>
    %6 = arith.addf %3, %5 : vector<512x128xf32>
    %cst = arith.constant 0.000000e+00 : f32
    %7 = vector.broadcast %cst : f32 to vector<512x128xf32>
    %8 = arith.maximumf %6, %7 : vector<512x128xf32>
    %c0_5 = arith.constant 0 : index
    %c0_6 = arith.constant 0 : index
    %9 = vector.load %arg4[%c0_5, %c0_6] : memref<512x128xf32, #tpu.memory_space<vmem>>, vector<512x128xf32>
    tpu.vector_store %arg4[%c0_5, %c0_6], %8 {strides = array<i32>} : memref<512x128xf32, #tpu.memory_space<vmem>>, vector<512x128xf32>,
    return
  }
  func.func @transform_0(%arg0: i32) -> (i32, i32) {
    %c0_i32 = arith.constant 0 : i32
    %c0_i32_0 = arith.constant 0 : i32
    return %arg0, %c0_i32 : i32, i32
  }
  func.func @transform_1(%arg0: i32) -> (i32, i32) {
    %c0_i32 = arith.constant 0 : i32
    %c0_i32_0 = arith.constant 0 : i32
    %c0_i32_1 = arith.constant 0 : i32
    return %c0_i32, %c0_i32_0 : i32, i32
  }
  func.func @transform_2(%arg0: i32) -> (i32, i32) {
    %c0_i32 = arith.constant 0 : i32
    %c0_i32_0 = arith.constant 0 : i32
    %c0_i32_1 = arith.constant 0 : i32
    return %c0_i32, %c0_i32_0 : i32, i32
  }
  func.func @transform_3(%arg0: i32) -> (i32, i32) {
    %c0_i32 = arith.constant 0 : i32
    %c0_i32_0 = arith.constant 0 : i32
    return %arg0, %c0_i32 : i32, i32
  }
}

module attributes {stable_mosaic.version = 11 : i64} {
  func.func @_matmul_stats_kernel(%arg0: i32, %arg1: memref<512x128xf32, #tpu.memory_space<vmem>>, %arg2: memref<128x128xf32, #tpu.memory_space<vmem>>, %arg3: memref<512x128xf32, #tpu.memory_space<vmem>>, %arg4: memref<1x2x128xf32, #tpu.memory_space<vmem>>) attributes {dimension_semantics = [#tpu.dimension_semantics<parallel>], iteration_bounds = array<i64: 1>, scalar_prefetch = 0 : i64, scratch_operands = 0 : i64, tpu.core_type = #tpu.core_type<tc>, window_params = [{transform_indices = @transform_0, window_bounds = array<i64: 512, 128>}, {pipeline_mode = #tpu.pipeline_mode<synchronous>, transform_indices = @transform_1, window_bounds = array<i64: 128, 128>}, {transform_indices = @transform_2, window_bounds = array<i64: 512, 128>}, {transform_indices = @transform_3, window_bounds = array<i64: 1, 2, 128>}]} {
    %c0 = arith.constant 0 : index
    %c0_0 = arith.constant 0 : index
    %0 = vector.load %arg1[%c0, %c0_0] : memref<512x128xf32, #tpu.memory_space<vmem>>, vector<512x128xf32>
    %c0_1 = arith.constant 0 : index
    %c0_2 = arith.constant 0 : index
    %1 = vector.load %arg2[%c0_1, %c0_2] : memref<128x128xf32, #tpu.memory_space<vmem>>, vector<128x128xf32>
    %cst = arith.constant dense<0.000000e+00> : vector<512x128xf32>
    %2 = tpu.matmul %0, %1, %cst {dimension_numbers = #tpu.dot_dimension_numbers<[1], [0], [0], [1], [0, 0, 1, 1], [], []>} : vector<512x128xf32>, vector<128x128xf32>, vector<512x128xf32> -> vector<512x128xf32>
    %c0_3 = arith.constant 0 : index
    %c0_4 = arith.constant 0 : index
    %3 = vector.load %arg3[%c0_3, %c0_4] : memref<512x128xf32, #tpu.memory_space<vmem>>, vector<512x128xf32>
    tpu.vector_store %arg3[%c0_3, %c0_4], %2 {strides = array<i32>} : memref<512x128xf32, #tpu.memory_space<vmem>>, vector<512x128xf32>,
    %cst_5 = arith.constant dense<0.000000e+00> : vector<128xf32>
    %4 = vector.multi_reduction <add>, %2, %cst_5 [0] : vector<512x128xf32> to vector<128xf32>
    %5 = vector.shape_cast %4 : vector<128xf32> to vector<1x128xf32>
    %6 = arith.mulf %2, %2 : vector<512x128xf32>
    %cst_6 = arith.constant dense<0.000000e+00> : vector<128xf32>
    %7 = vector.multi_reduction <add>, %6, %cst_6 [0] : vector<512x128xf32> to vector<128xf32>
    %8 = vector.shape_cast %7 : vector<128xf32> to vector<1x128xf32>
    %9 = tpu.concatenate %5, %8 in 0 : vector<1x128xf32>, vector<1x128xf32> -> vector<2x128xf32>
    %10 = vector.shape_cast %9 : vector<2x128xf32> to vector<1x2x128xf32>
    %c0_7 = arith.constant 0 : index
    %c0_8 = arith.constant 0 : index
    %c0_9 = arith.constant 0 : index
    %11 = vector.load %arg4[%c0_7, %c0_8, %c0_9] : memref<1x2x128xf32, #tpu.memory_space<vmem>>, vector<1x2x128xf32>
    tpu.vector_store %arg4[%c0_7, %c0_8, %c0_9], %10 {strides = array<i32>} : memref<1x2x128xf32, #tpu.memory_space<vmem>>, vector<1x2x128xf32>,
    return
  }
  func.func @transform_0(%arg0: i32) -> (i32, i32) {
    %c0_i32 = arith.constant 0 : i32
    %c0_i32_0 = arith.constant 0 : i32
    return %arg0, %c0_i32 : i32, i32
  }
  func.func @transform_1(%arg0: i32) -> (i32, i32) {
    %c0_i32 = arith.constant 0 : i32
    %c0_i32_0 = arith.constant 0 : i32
    %c0_i32_1 = arith.constant 0 : i32
    return %c0_i32, %c0_i32_0 : i32, i32
  }
  func.func @transform_2(%arg0: i32) -> (i32, i32) {
    %c0_i32 = arith.constant 0 : i32
    %c0_i32_0 = arith.constant 0 : i32
    return %arg0, %c0_i32 : i32, i32
  }
  func.func @transform_3(%arg0: i32) -> (i32, i32, i32) {
    %c0_i32 = arith.constant 0 : i32
    %c0_i32_0 = arith.constant 0 : i32
    %c0_i32_1 = arith.constant 0 : i32
    return %arg0, %c0_i32, %c0_i32_0 : i32, i32, i32
  }
}

module attributes {stable_mosaic.version = 11 : i64} {
  func.func @_dw_stats_kernel(%arg0: i32, %arg1: memref<1x1x18x18x128xf32, #tpu.memory_space<vmem>>, %arg2: memref<9x128xf32, #tpu.memory_space<vmem>>, %arg3: memref<1x16x16x128xf32, #tpu.memory_space<vmem>>, %arg4: memref<1x2x128xf32, #tpu.memory_space<vmem>>) attributes {dimension_semantics = [#tpu.dimension_semantics<parallel>], iteration_bounds = array<i64: 2>, scalar_prefetch = 0 : i64, scratch_operands = 0 : i64, tpu.core_type = #tpu.core_type<tc>, window_params = [{transform_indices = @transform_0, window_bounds = array<i64: 1, 1, 18, 18, 128>}, {pipeline_mode = #tpu.pipeline_mode<synchronous>, transform_indices = @transform_1, window_bounds = array<i64: 9, 128>}, {transform_indices = @transform_2, window_bounds = array<i64: 1, 16, 16, 128>}, {transform_indices = @transform_3, window_bounds = array<i64: 1, 2, 128>}]} {
    %c0 = arith.constant 0 : index
    %c0_0 = arith.constant 0 : index
    %0 = vector.load %arg2[%c0, %c0_0] : memref<9x128xf32, #tpu.memory_space<vmem>>, vector<9x128xf32>
    %cst = arith.constant 0.000000e+00 : f32
    %1 = vector.broadcast %cst : f32 to vector<16x16x128xf32>
    %c0_1 = arith.constant 0 : index
    %c0_2 = arith.constant 0 : index
    %c0_3 = arith.constant 0 : index
    %c0_4 = arith.constant 0 : index
    %c0_5 = arith.constant 0 : index
    %2 = vector.load %arg1[%c0_1, %c0_2, %c0_3, %c0_4, %c0_5] : memref<1x1x18x18x128xf32, #tpu.memory_space<vmem>>, vector<1x1x16x16x128xf32>
    %3 = vector.shape_cast %2 : vector<1x1x16x16x128xf32> to vector<16x16x128xf32>
    %4 = vector.extract_strided_slice %0 {offsets = [0, 0], sizes = [1, 128], strides = [1, 1]} : vector<9x128xf32> to vector<1x128xf32>
    %5 = vector.shape_cast %4 : vector<1x128xf32> to vector<128xf32>
    %6 = vector.shape_cast %5 : vector<128xf32> to vector<1x1x128xf32>
    %7 = vector.broadcast %6 : vector<1x1x128xf32> to vector<16x16x128xf32>
    %8 = arith.mulf %3, %7 : vector<16x16x128xf32>
    %9 = arith.addf %1, %8 : vector<16x16x128xf32>
    %c0_6 = arith.constant 0 : index
    %c0_7 = arith.constant 0 : index
    %c0_8 = arith.constant 0 : index
    %c1 = arith.constant 1 : index
    %c0_9 = arith.constant 0 : index
    %10 = vector.load %arg1[%c0_6, %c0_7, %c0_8, %c1, %c0_9] : memref<1x1x18x18x128xf32, #tpu.memory_space<vmem>>, vector<1x1x16x16x128xf32>
    %11 = vector.shape_cast %10 : vector<1x1x16x16x128xf32> to vector<16x16x128xf32>
    %12 = vector.extract_strided_slice %0 {offsets = [1, 0], sizes = [1, 128], strides = [1, 1]} : vector<9x128xf32> to vector<1x128xf32>
    %13 = vector.shape_cast %12 : vector<1x128xf32> to vector<128xf32>
    %14 = vector.shape_cast %13 : vector<128xf32> to vector<1x1x128xf32>
    %15 = vector.broadcast %14 : vector<1x1x128xf32> to vector<16x16x128xf32>
    %16 = arith.mulf %11, %15 : vector<16x16x128xf32>
    %17 = arith.addf %9, %16 : vector<16x16x128xf32>
    %c0_10 = arith.constant 0 : index
    %c0_11 = arith.constant 0 : index
    %c0_12 = arith.constant 0 : index
    %c2 = arith.constant 2 : index
    %c0_13 = arith.constant 0 : index
    %18 = vector.load %arg1[%c0_10, %c0_11, %c0_12, %c2, %c0_13] : memref<1x1x18x18x128xf32, #tpu.memory_space<vmem>>, vector<1x1x16x16x128xf32>
    %19 = vector.shape_cast %18 : vector<1x1x16x16x128xf32> to vector<16x16x128xf32>
    %20 = vector.extract_strided_slice %0 {offsets = [2, 0], sizes = [1, 128], strides = [1, 1]} : vector<9x128xf32> to vector<1x128xf32>
    %21 = vector.shape_cast %20 : vector<1x128xf32> to vector<128xf32>
    %22 = vector.shape_cast %21 : vector<128xf32> to vector<1x1x128xf32>
    %23 = vector.broadcast %22 : vector<1x1x128xf32> to vector<16x16x128xf32>
    %24 = arith.mulf %19, %23 : vector<16x16x128xf32>
    %25 = arith.addf %17, %24 : vector<16x16x128xf32>
    %c0_14 = arith.constant 0 : index
    %c0_15 = arith.constant 0 : index
    %c1_16 = arith.constant 1 : index
    %c0_17 = arith.constant 0 : index
    %c0_18 = arith.constant 0 : index
    %26 = vector.load %arg1[%c0_14, %c0_15, %c1_16, %c0_17, %c0_18] : memref<1x1x18x18x128xf32, #tpu.memory_space<vmem>>, vector<1x1x16x16x128xf32>
    %27 = vector.shape_cast %26 : vector<1x1x16x16x128xf32> to vector<16x16x128xf32>
    %28 = vector.extract_strided_slice %0 {offsets = [3, 0], sizes = [1, 128], strides = [1, 1]} : vector<9x128xf32> to vector<1x128xf32>
    %29 = vector.shape_cast %28 : vector<1x128xf32> to vector<128xf32>
    %30 = vector.shape_cast %29 : vector<128xf32> to vector<1x1x128xf32>
    %31 = vector.broadcast %30 : vector<1x1x128xf32> to vector<16x16x128xf32>
    %32 = arith.mulf %27, %31 : vector<16x16x128xf32>
    %33 = arith.addf %25, %32 : vector<16x16x128xf32>
    %c0_19 = arith.constant 0 : index
    %c0_20 = arith.constant 0 : index
    %c1_21 = arith.constant 1 : index
    %c1_22 = arith.constant 1 : index
    %c0_23 = arith.constant 0 : index
    %34 = vector.load %arg1[%c0_19, %c0_20, %c1_21, %c1_22, %c0_23] : memref<1x1x18x18x128xf32, #tpu.memory_space<vmem>>, vector<1x1x16x16x128xf32>
    %35 = vector.shape_cast %34 : vector<1x1x16x16x128xf32> to vector<16x16x128xf32>
    %36 = vector.extract_strided_slice %0 {offsets = [4, 0], sizes = [1, 128], strides = [1, 1]} : vector<9x128xf32> to vector<1x128xf32>
    %37 = vector.shape_cast %36 : vector<1x128xf32> to vector<128xf32>
    %38 = vector.shape_cast %37 : vector<128xf32> to vector<1x1x128xf32>
    %39 = vector.broadcast %38 : vector<1x1x128xf32> to vector<16x16x128xf32>
    %40 = arith.mulf %35, %39 : vector<16x16x128xf32>
    %41 = arith.addf %33, %40 : vector<16x16x128xf32>
    %c0_24 = arith.constant 0 : index
    %c0_25 = arith.constant 0 : index
    %c1_26 = arith.constant 1 : index
    %c2_27 = arith.constant 2 : index
    %c0_28 = arith.constant 0 : index
    %42 = vector.load %arg1[%c0_24, %c0_25, %c1_26, %c2_27, %c0_28] : memref<1x1x18x18x128xf32, #tpu.memory_space<vmem>>, vector<1x1x16x16x128xf32>
    %43 = vector.shape_cast %42 : vector<1x1x16x16x128xf32> to vector<16x16x128xf32>
    %44 = vector.extract_strided_slice %0 {offsets = [5, 0], sizes = [1, 128], strides = [1, 1]} : vector<9x128xf32> to vector<1x128xf32>
    %45 = vector.shape_cast %44 : vector<1x128xf32> to vector<128xf32>
    %46 = vector.shape_cast %45 : vector<128xf32> to vector<1x1x128xf32>
    %47 = vector.broadcast %46 : vector<1x1x128xf32> to vector<16x16x128xf32>
    %48 = arith.mulf %43, %47 : vector<16x16x128xf32>
    %49 = arith.addf %41, %48 : vector<16x16x128xf32>
    %c0_29 = arith.constant 0 : index
    %c0_30 = arith.constant 0 : index
    %c2_31 = arith.constant 2 : index
    %c0_32 = arith.constant 0 : index
    %c0_33 = arith.constant 0 : index
    %50 = vector.load %arg1[%c0_29, %c0_30, %c2_31, %c0_32, %c0_33] : memref<1x1x18x18x128xf32, #tpu.memory_space<vmem>>, vector<1x1x16x16x128xf32>
    %51 = vector.shape_cast %50 : vector<1x1x16x16x128xf32> to vector<16x16x128xf32>
    %52 = vector.extract_strided_slice %0 {offsets = [6, 0], sizes = [1, 128], strides = [1, 1]} : vector<9x128xf32> to vector<1x128xf32>
    %53 = vector.shape_cast %52 : vector<1x128xf32> to vector<128xf32>
    %54 = vector.shape_cast %53 : vector<128xf32> to vector<1x1x128xf32>
    %55 = vector.broadcast %54 : vector<1x1x128xf32> to vector<16x16x128xf32>
    %56 = arith.mulf %51, %55 : vector<16x16x128xf32>
    %57 = arith.addf %49, %56 : vector<16x16x128xf32>
    %c0_34 = arith.constant 0 : index
    %c0_35 = arith.constant 0 : index
    %c2_36 = arith.constant 2 : index
    %c1_37 = arith.constant 1 : index
    %c0_38 = arith.constant 0 : index
    %58 = vector.load %arg1[%c0_34, %c0_35, %c2_36, %c1_37, %c0_38] : memref<1x1x18x18x128xf32, #tpu.memory_space<vmem>>, vector<1x1x16x16x128xf32>
    %59 = vector.shape_cast %58 : vector<1x1x16x16x128xf32> to vector<16x16x128xf32>
    %60 = vector.extract_strided_slice %0 {offsets = [7, 0], sizes = [1, 128], strides = [1, 1]} : vector<9x128xf32> to vector<1x128xf32>
    %61 = vector.shape_cast %60 : vector<1x128xf32> to vector<128xf32>
    %62 = vector.shape_cast %61 : vector<128xf32> to vector<1x1x128xf32>
    %63 = vector.broadcast %62 : vector<1x1x128xf32> to vector<16x16x128xf32>
    %64 = arith.mulf %59, %63 : vector<16x16x128xf32>
    %65 = arith.addf %57, %64 : vector<16x16x128xf32>
    %c0_39 = arith.constant 0 : index
    %c0_40 = arith.constant 0 : index
    %c2_41 = arith.constant 2 : index
    %c2_42 = arith.constant 2 : index
    %c0_43 = arith.constant 0 : index
    %66 = vector.load %arg1[%c0_39, %c0_40, %c2_41, %c2_42, %c0_43] : memref<1x1x18x18x128xf32, #tpu.memory_space<vmem>>, vector<1x1x16x16x128xf32>
    %67 = vector.shape_cast %66 : vector<1x1x16x16x128xf32> to vector<16x16x128xf32>
    %68 = vector.extract_strided_slice %0 {offsets = [8, 0], sizes = [1, 128], strides = [1, 1]} : vector<9x128xf32> to vector<1x128xf32>
    %69 = vector.shape_cast %68 : vector<1x128xf32> to vector<128xf32>
    %70 = vector.shape_cast %69 : vector<128xf32> to vector<1x1x128xf32>
    %71 = vector.broadcast %70 : vector<1x1x128xf32> to vector<16x16x128xf32>
    %72 = arith.mulf %67, %71 : vector<16x16x128xf32>
    %73 = arith.addf %65, %72 : vector<16x16x128xf32>
    %74 = vector.shape_cast %73 : vector<16x16x128xf32> to vector<1x16x16x128xf32>
    %c0_44 = arith.constant 0 : index
    %c0_45 = arith.constant 0 : index
    %c0_46 = arith.constant 0 : index
    %c0_47 = arith.constant 0 : index
    %75 = vector.load %arg3[%c0_44, %c0_45, %c0_46, %c0_47] : memref<1x16x16x128xf32, #tpu.memory_space<vmem>>, vector<1x16x16x128xf32>
    tpu.vector_store %arg3[%c0_44, %c0_45, %c0_46, %c0_47], %74 {strides = array<i32>} : memref<1x16x16x128xf32, #tpu.memory_space<vmem>>, vector<1x16x16x128xf32>,
    %76 = vector.shape_cast %73 : vector<16x16x128xf32> to vector<256x128xf32>
    %cst_48 = arith.constant dense<0.000000e+00> : vector<128xf32>
    %77 = vector.multi_reduction <add>, %76, %cst_48 [0] : vector<256x128xf32> to vector<128xf32>
    %78 = vector.shape_cast %77 : vector<128xf32> to vector<1x128xf32>
    %79 = arith.mulf %76, %76 : vector<256x128xf32>
    %cst_49 = arith.constant dense<0.000000e+00> : vector<128xf32>
    %80 = vector.multi_reduction <add>, %79, %cst_49 [0] : vector<256x128xf32> to vector<128xf32>
    %81 = vector.shape_cast %80 : vector<128xf32> to vector<1x128xf32>
    %82 = tpu.concatenate %78, %81 in 0 : vector<1x128xf32>, vector<1x128xf32> -> vector<2x128xf32>
    %83 = vector.shape_cast %82 : vector<2x128xf32> to vector<1x2x128xf32>
    %c0_50 = arith.constant 0 : index
    %c0_51 = arith.constant 0 : index
    %c0_52 = arith.constant 0 : index
    %84 = vector.load %arg4[%c0_50, %c0_51, %c0_52] : memref<1x2x128xf32, #tpu.memory_space<vmem>>, vector<1x2x128xf32>
    tpu.vector_store %arg4[%c0_50, %c0_51, %c0_52], %83 {strides = array<i32>} : memref<1x2x128xf32, #tpu.memory_space<vmem>>, vector<1x2x128xf32>,
    return
  }
  func.func @transform_0(%arg0: i32) -> (i32, i32, i32, i32, i32) {
    %c0_i32 = arith.constant 0 : i32
    %c0_i32_0 = arith.constant 0 : i32
    %c0_i32_1 = arith.constant 0 : i32
    %c0_i32_2 = arith.constant 0 : i32
    %c0_i32_3 = arith.constant 0 : i32
    return %c0_i32, %arg0, %c0_i32_0, %c0_i32_1, %c0_i32_2 : i32, i32, i32, i32, i32
  }
  func.func @transform_1(%arg0: i32) -> (i32, i32) {
    %c0_i32 = arith.constant 0 : i32
    %c0_i32_0 = arith.constant 0 : i32
    %c0_i32_1 = arith.constant 0 : i32
    return %c0_i32, %c0_i32_0 : i32, i32
  }
  func.func @transform_2(%arg0: i32) -> (i32, i32, i32, i32) {
    %c0_i32 = arith.constant 0 : i32
    %c0_i32_0 = arith.constant 0 : i32
    %c0_i32_1 = arith.constant 0 : i32
    %c0_i32_2 = arith.constant 0 : i32
    return %arg0, %c0_i32, %c0_i32_0, %c0_i32_1 : i32, i32, i32, i32
  }
  func.func @transform_3(%arg0: i32) -> (i32, i32, i32) {
    %c0_i32 = arith.constant 0 : i32
    %c0_i32_0 = arith.constant 0 : i32
    %c0_i32_1 = arith.constant 0 : i32
    return %arg0, %c0_i32, %c0_i32_0 : i32, i32, i32
  }
}

module attributes {stable_mosaic.version = 11 : i64} {
  func.func @_project_kernel(%arg0: i32, %arg1: memref<512x128xf32, #tpu.memory_space<vmem>>, %arg2: memref<1x128xf32, #tpu.memory_space<vmem>>, %arg3: memref<1x128xf32, #tpu.memory_space<vmem>>, %arg4: memref<128x128xf32, #tpu.memory_space<vmem>>, %arg5: memref<512x128xf32, #tpu.memory_space<vmem>>, %arg6: memref<128x128xf32, #tpu.memory_space<vmem>>, %arg7: memref<512x128xf32, #tpu.memory_space<vmem>>, %arg8: memref<512x128xf32, #tpu.memory_space<vmem>>, %arg9: memref<1x2x128xf32, #tpu.memory_space<vmem>>, %arg10: memref<1x2x128xf32, #tpu.memory_space<vmem>>) attributes {dimension_semantics = [#tpu.dimension_semantics<parallel>], iteration_bounds = array<i64: 1>, scalar_prefetch = 0 : i64, scratch_operands = 0 : i64, tpu.core_type = #tpu.core_type<tc>, window_params = [{transform_indices = @transform_0, window_bounds = array<i64: 512, 128>}, {pipeline_mode = #tpu.pipeline_mode<synchronous>, transform_indices = @transform_1, window_bounds = array<i64: 1, 128>}, {pipeline_mode = #tpu.pipeline_mode<synchronous>, transform_indices = @transform_2, window_bounds = array<i64: 1, 128>}, {pipeline_mode = #tpu.pipeline_mode<synchronous>, transform_indices = @transform_3, window_bounds = array<i64: 128, 128>}, {transform_indices = @transform_4, window_bounds = array<i64: 512, 128>}, {pipeline_mode = #tpu.pipeline_mode<synchronous>, transform_indices = @transform_5, window_bounds = array<i64: 128, 128>}, {transform_indices = @transform_6, window_bounds = array<i64: 512, 128>}, {transform_indices = @transform_7, window_bounds = array<i64: 512, 128>}, {transform_indices = @transform_8, window_bounds = array<i64: 1, 2, 128>}, {transform_indices = @transform_9, window_bounds = array<i64: 1, 2, 128>}]} {
    %c0 = arith.constant 0 : index
    %c0_0 = arith.constant 0 : index
    %0 = vector.load %arg1[%c0, %c0_0] : memref<512x128xf32, #tpu.memory_space<vmem>>, vector<512x128xf32>
    %c0_1 = arith.constant 0 : index
    %c0_2 = arith.constant 0 : index
    %1 = vector.load %arg2[%c0_1, %c0_2] : memref<1x128xf32, #tpu.memory_space<vmem>>, vector<1x128xf32>
    %2 = vector.broadcast %1 : vector<1x128xf32> to vector<512x128xf32>
    %3 = arith.mulf %0, %2 : vector<512x128xf32>
    %c0_3 = arith.constant 0 : index
    %c0_4 = arith.constant 0 : index
    %4 = vector.load %arg3[%c0_3, %c0_4] : memref<1x128xf32, #tpu.memory_space<vmem>>, vector<1x128xf32>
    %5 = vector.broadcast %4 : vector<1x128xf32> to vector<512x128xf32>
    %6 = arith.addf %3, %5 : vector<512x128xf32>
    %cst = arith.constant 0.000000e+00 : f32
    %7 = vector.broadcast %cst : f32 to vector<512x128xf32>
    %8 = arith.maximumf %6, %7 : vector<512x128xf32>
    %c0_5 = arith.constant 0 : index
    %c0_6 = arith.constant 0 : index
    %9 = vector.load %arg4[%c0_5, %c0_6] : memref<128x128xf32, #tpu.memory_space<vmem>>, vector<128x128xf32>
    %cst_7 = arith.constant dense<0.000000e+00> : vector<512x128xf32>
    %10 = tpu.matmul %8, %9, %cst_7 {dimension_numbers = #tpu.dot_dimension_numbers<[1], [0], [0], [1], [0, 0, 1, 1], [], []>} : vector<512x128xf32>, vector<128x128xf32>, vector<512x128xf32> -> vector<512x128xf32>
    %c0_8 = arith.constant 0 : index
    %c0_9 = arith.constant 0 : index
    %11 = vector.load %arg7[%c0_8, %c0_9] : memref<512x128xf32, #tpu.memory_space<vmem>>, vector<512x128xf32>
    tpu.vector_store %arg7[%c0_8, %c0_9], %10 {strides = array<i32>} : memref<512x128xf32, #tpu.memory_space<vmem>>, vector<512x128xf32>,
    %cst_10 = arith.constant dense<0.000000e+00> : vector<128xf32>
    %12 = vector.multi_reduction <add>, %10, %cst_10 [0] : vector<512x128xf32> to vector<128xf32>
    %13 = vector.shape_cast %12 : vector<128xf32> to vector<1x128xf32>
    %14 = arith.mulf %10, %10 : vector<512x128xf32>
    %cst_11 = arith.constant dense<0.000000e+00> : vector<128xf32>
    %15 = vector.multi_reduction <add>, %14, %cst_11 [0] : vector<512x128xf32> to vector<128xf32>
    %16 = vector.shape_cast %15 : vector<128xf32> to vector<1x128xf32>
    %17 = tpu.concatenate %13, %16 in 0 : vector<1x128xf32>, vector<1x128xf32> -> vector<2x128xf32>
    %18 = vector.shape_cast %17 : vector<2x128xf32> to vector<1x2x128xf32>
    %c0_12 = arith.constant 0 : index
    %c0_13 = arith.constant 0 : index
    %c0_14 = arith.constant 0 : index
    %19 = vector.load %arg9[%c0_12, %c0_13, %c0_14] : memref<1x2x128xf32, #tpu.memory_space<vmem>>, vector<1x2x128xf32>
    tpu.vector_store %arg9[%c0_12, %c0_13, %c0_14], %18 {strides = array<i32>} : memref<1x2x128xf32, #tpu.memory_space<vmem>>, vector<1x2x128xf32>,
    %c0_15 = arith.constant 0 : index
    %c0_16 = arith.constant 0 : index
    %20 = vector.load %arg5[%c0_15, %c0_16] : memref<512x128xf32, #tpu.memory_space<vmem>>, vector<512x128xf32>
    %c0_17 = arith.constant 0 : index
    %c0_18 = arith.constant 0 : index
    %21 = vector.load %arg6[%c0_17, %c0_18] : memref<128x128xf32, #tpu.memory_space<vmem>>, vector<128x128xf32>
    %cst_19 = arith.constant dense<0.000000e+00> : vector<512x128xf32>
    %22 = tpu.matmul %20, %21, %cst_19 {dimension_numbers = #tpu.dot_dimension_numbers<[1], [0], [0], [1], [0, 0, 1, 1], [], []>} : vector<512x128xf32>, vector<128x128xf32>, vector<512x128xf32> -> vector<512x128xf32>
    %c0_20 = arith.constant 0 : index
    %c0_21 = arith.constant 0 : index
    %23 = vector.load %arg8[%c0_20, %c0_21] : memref<512x128xf32, #tpu.memory_space<vmem>>, vector<512x128xf32>
    tpu.vector_store %arg8[%c0_20, %c0_21], %22 {strides = array<i32>} : memref<512x128xf32, #tpu.memory_space<vmem>>, vector<512x128xf32>,
    %cst_22 = arith.constant dense<0.000000e+00> : vector<128xf32>
    %24 = vector.multi_reduction <add>, %22, %cst_22 [0] : vector<512x128xf32> to vector<128xf32>
    %25 = vector.shape_cast %24 : vector<128xf32> to vector<1x128xf32>
    %26 = arith.mulf %22, %22 : vector<512x128xf32>
    %cst_23 = arith.constant dense<0.000000e+00> : vector<128xf32>
    %27 = vector.multi_reduction <add>, %26, %cst_23 [0] : vector<512x128xf32> to vector<128xf32>
    %28 = vector.shape_cast %27 : vector<128xf32> to vector<1x128xf32>
    %29 = tpu.concatenate %25, %28 in 0 : vector<1x128xf32>, vector<1x128xf32> -> vector<2x128xf32>
    %30 = vector.shape_cast %29 : vector<2x128xf32> to vector<1x2x128xf32>
    %c0_24 = arith.constant 0 : index
    %c0_25 = arith.constant 0 : index
    %c0_26 = arith.constant 0 : index
    %31 = vector.load %arg10[%c0_24, %c0_25, %c0_26] : memref<1x2x128xf32, #tpu.memory_space<vmem>>, vector<1x2x128xf32>
    tpu.vector_store %arg10[%c0_24, %c0_25, %c0_26], %30 {strides = array<i32>} : memref<1x2x128xf32, #tpu.memory_space<vmem>>, vector<1x2x128xf32>,
    return
  }
  func.func @transform_0(%arg0: i32) -> (i32, i32) {
    %c0_i32 = arith.constant 0 : i32
    %c0_i32_0 = arith.constant 0 : i32
    return %arg0, %c0_i32 : i32, i32
  }
  func.func @transform_1(%arg0: i32) -> (i32, i32) {
    %c0_i32 = arith.constant 0 : i32
    %c0_i32_0 = arith.constant 0 : i32
    %c0_i32_1 = arith.constant 0 : i32
    return %c0_i32, %c0_i32_0 : i32, i32
  }
  func.func @transform_2(%arg0: i32) -> (i32, i32) {
    %c0_i32 = arith.constant 0 : i32
    %c0_i32_0 = arith.constant 0 : i32
    %c0_i32_1 = arith.constant 0 : i32
    return %c0_i32, %c0_i32_0 : i32, i32
  }
  func.func @transform_3(%arg0: i32) -> (i32, i32) {
    %c0_i32 = arith.constant 0 : i32
    %c0_i32_0 = arith.constant 0 : i32
    %c0_i32_1 = arith.constant 0 : i32
    return %c0_i32, %c0_i32_0 : i32, i32
  }
  func.func @transform_4(%arg0: i32) -> (i32, i32) {
    %c0_i32 = arith.constant 0 : i32
    %c0_i32_0 = arith.constant 0 : i32
    return %arg0, %c0_i32 : i32, i32
  }
  func.func @transform_5(%arg0: i32) -> (i32, i32) {
    %c0_i32 = arith.constant 0 : i32
    %c0_i32_0 = arith.constant 0 : i32
    %c0_i32_1 = arith.constant 0 : i32
    return %c0_i32, %c0_i32_0 : i32, i32
  }
  func.func @transform_6(%arg0: i32) -> (i32, i32) {
    %c0_i32 = arith.constant 0 : i32
    %c0_i32_0 = arith.constant 0 : i32
    return %arg0, %c0_i32 : i32, i32
  }
  func.func @transform_7(%arg0: i32) -> (i32, i32) {
    %c0_i32 = arith.constant 0 : i32
    %c0_i32_0 = arith.constant 0 : i32
    return %arg0, %c0_i32 : i32, i32
  }
  func.func @transform_8(%arg0: i32) -> (i32, i32, i32) {
    %c0_i32 = arith.constant 0 : i32
    %c0_i32_0 = arith.constant 0 : i32
    %c0_i32_1 = arith.constant 0 : i32
    return %arg0, %c0_i32, %c0_i32_0 : i32, i32, i32
  }
  func.func @transform_9(%arg0: i32) -> (i32, i32, i32) {
    %c0_i32 = arith.constant 0 : i32
    %c0_i32_0 = arith.constant 0 : i32
    %c0_i32_1 = arith.constant 0 : i32
    return %arg0, %c0_i32, %c0_i32_0 : i32, i32, i32
  }
}

module attributes {stable_mosaic.version = 11 : i64} {
  func.func @_final_kernel(%arg0: i32, %arg1: memref<512x128xf32, #tpu.memory_space<vmem>>, %arg2: memref<1x128xf32, #tpu.memory_space<vmem>>, %arg3: memref<1x128xf32, #tpu.memory_space<vmem>>, %arg4: memref<512x128xf32, #tpu.memory_space<vmem>>, %arg5: memref<1x128xf32, #tpu.memory_space<vmem>>, %arg6: memref<1x128xf32, #tpu.memory_space<vmem>>, %arg7: memref<512x128xf32, #tpu.memory_space<vmem>>) attributes {dimension_semantics = [#tpu.dimension_semantics<parallel>], iteration_bounds = array<i64: 1>, scalar_prefetch = 0 : i64, scratch_operands = 0 : i64, tpu.core_type = #tpu.core_type<tc>, window_params = [{transform_indices = @transform_0, window_bounds = array<i64: 512, 128>}, {pipeline_mode = #tpu.pipeline_mode<synchronous>, transform_indices = @transform_1, window_bounds = array<i64: 1, 128>}, {pipeline_mode = #tpu.pipeline_mode<synchronous>, transform_indices = @transform_2, window_bounds = array<i64: 1, 128>}, {transform_indices = @transform_3, window_bounds = array<i64: 512, 128>}, {pipeline_mode = #tpu.pipeline_mode<synchronous>, transform_indices = @transform_4, window_bounds = array<i64: 1, 128>}, {pipeline_mode = #tpu.pipeline_mode<synchronous>, transform_indices = @transform_5, window_bounds = array<i64: 1, 128>}, {transform_indices = @transform_6, window_bounds = array<i64: 512, 128>}]} {
    %c0 = arith.constant 0 : index
    %c0_0 = arith.constant 0 : index
    %0 = vector.load %arg1[%c0, %c0_0] : memref<512x128xf32, #tpu.memory_space<vmem>>, vector<512x128xf32>
    %c0_1 = arith.constant 0 : index
    %c0_2 = arith.constant 0 : index
    %1 = vector.load %arg2[%c0_1, %c0_2] : memref<1x128xf32, #tpu.memory_space<vmem>>, vector<1x128xf32>
    %2 = vector.broadcast %1 : vector<1x128xf32> to vector<512x128xf32>
    %3 = arith.mulf %0, %2 : vector<512x128xf32>
    %c0_3 = arith.constant 0 : index
    %c0_4 = arith.constant 0 : index
    %4 = vector.load %arg3[%c0_3, %c0_4] : memref<1x128xf32, #tpu.memory_space<vmem>>, vector<1x128xf32>
    %5 = vector.broadcast %4 : vector<1x128xf32> to vector<512x128xf32>
    %6 = arith.addf %3, %5 : vector<512x128xf32>
    %c0_5 = arith.constant 0 : index
    %c0_6 = arith.constant 0 : index
    %7 = vector.load %arg4[%c0_5, %c0_6] : memref<512x128xf32, #tpu.memory_space<vmem>>, vector<512x128xf32>
    %c0_7 = arith.constant 0 : index
    %c0_8 = arith.constant 0 : index
    %8 = vector.load %arg5[%c0_7, %c0_8] : memref<1x128xf32, #tpu.memory_space<vmem>>, vector<1x128xf32>
    %9 = vector.broadcast %8 : vector<1x128xf32> to vector<512x128xf32>
    %10 = arith.mulf %7, %9 : vector<512x128xf32>
    %c0_9 = arith.constant 0 : index
    %c0_10 = arith.constant 0 : index
    %11 = vector.load %arg6[%c0_9, %c0_10] : memref<1x128xf32, #tpu.memory_space<vmem>>, vector<1x128xf32>
    %12 = vector.broadcast %11 : vector<1x128xf32> to vector<512x128xf32>
    %13 = arith.addf %10, %12 : vector<512x128xf32>
    %14 = arith.addf %6, %13 : vector<512x128xf32>
    %c0_11 = arith.constant 0 : index
    %c0_12 = arith.constant 0 : index
    %15 = vector.load %arg7[%c0_11, %c0_12] : memref<512x128xf32, #tpu.memory_space<vmem>>, vector<512x128xf32>
    tpu.vector_store %arg7[%c0_11, %c0_12], %14 {strides = array<i32>} : memref<512x128xf32, #tpu.memory_space<vmem>>, vector<512x128xf32>,
    return
  }
  func.func @transform_0(%arg0: i32) -> (i32, i32) {
    %c0_i32 = arith.constant 0 : i32
    %c0_i32_0 = arith.constant 0 : i32
    return %arg0, %c0_i32 : i32, i32
  }
  func.func @transform_1(%arg0: i32) -> (i32, i32) {
    %c0_i32 = arith.constant 0 : i32
    %c0_i32_0 = arith.constant 0 : i32
    %c0_i32_1 = arith.constant 0 : i32
    return %c0_i32, %c0_i32_0 : i32, i32
  }
  func.func @transform_2(%arg0: i32) -> (i32, i32) {
    %c0_i32 = arith.constant 0 : i32
    %c0_i32_0 = arith.constant 0 : i32
    %c0_i32_1 = arith.constant 0 : i32
    return %c0_i32, %c0_i32_0 : i32, i32
  }
  func.func @transform_3(%arg0: i32) -> (i32, i32) {
    %c0_i32 = arith.constant 0 : i32
    %c0_i32_0 = arith.constant 0 : i32
    return %arg0, %c0_i32 : i32, i32
  }
  func.func @transform_4(%arg0: i32) -> (i32, i32) {
    %c0_i32 = arith.constant 0 : i32
    %c0_i32_0 = arith.constant 0 : i32
    %c0_i32_1 = arith.constant 0 : i32
    return %c0_i32, %c0_i32_0 : i32, i32
  }
  func.func @transform_5(%arg0: i32) -> (i32, i32) {
    %c0_i32 = arith.constant 0 : i32
    %c0_i32_0 = arith.constant 0 : i32
    %c0_i32_1 = arith.constant 0 : i32
    return %c0_i32, %c0_i32_0 : i32, i32
  }
  func.func @transform_6(%arg0: i32) -> (i32, i32) {
    %c0_i32 = arith.constant 0 : i32
    %c0_i32_0 = arith.constant 0 : i32
    return %arg0, %c0_i32 : i32, i32
  }
}

</mosaic_0001>

<bundles_post_ra>
// kernel: block_forward.6
= control target key start
LH: loop header
LB: loop body
LE: loop exit
PB: predicated region body
PF: predicated region fallthrough
CT: control target
= control target key end

     0   :  { %s893_s0 = inlined_call_operand.vmem [shape: f32[512,128], index: 0, kind: input, shape index: {}]   ;;  %s894_s1 = inlined_call_operand.vmem [shape: f32[1,128], index: 1, kind: input, shape index: {}]   ;;  %s895_s2 = inlined_call_operand.vmem [shape: f32[1,128], index: 2, kind: input, shape index: {}]   ;;  %s896_s3 = inlined_call_operand.vmem [shape: f32[512,128], index: 3, kind: output, shape index: {}]  }
   0x1   :  { %v14_v0 = vld [vmem:[%s893_s0] sm:$0xff]  ;;  %v15_v3 = vld [vmem:[%s893_s0 + $0x8] sm:$0xff]  ;;  %v16_v6 = vld [vmem:[%s893_s0 + $0x10] sm:$0xff] }
   0x2   :  { %v374_v1 = vld [vmem:[%s894_s1] ss:$0 sm:$0xff]  ;;  %v17_v7 = vld [vmem:[%s893_s0 + $0x18] sm:$0xff]  ;;  %v19_v12 = vld [vmem:[%s893_s0 + $0x28] sm:$0xff] }
   0x3   :  { %v379_v2 = vld [vmem:[%s895_s2] ss:$0 sm:$0xff]  ;;  %v82_v4 = vmul.f32 %v374_v1, %v14_v0  ;;  %v83_v5 = vmul.f32 %v374_v1, %v15_v3  ;;  %v84_v9 = vmul.f32 %v374_v1, %v16_v6  ;;  %v85_v10 = vmul.f32 %v374_v1, %v17_v7  ;;  %v20_v13 = vld [vmem:[%s893_s0 + $0x30] sm:$0xff]  ;;  %v21_v14 = vld [vmem:[%s893_s0 + $0x38] sm:$0xff] }
   0x4   :  { %v18_v8 = vld [vmem:[%s893_s0 + $0x20] sm:$0xff]  ;;  %v87_v17 = vmul.f32 %v374_v1, %v19_v12  ;;  %v88_v18 = vmul.f32 %v374_v1, %v20_v13  ;;  %v89_v22 = vmul.f32 %v374_v1, %v21_v14  ;;  %v23_v24 = vld [vmem:[%s893_s0 + $0x48] sm:$0xff]  ;;  %v24_v29 = vld [vmem:[%s893_s0 + $0x50] sm:$0xff] }
   0x5   :  { %v86_v11 = vmul.f32 %v374_v1, %v18_v8  ;;  %v150_v15 = vadd.f32 %v379_v2, %v82_v4  ;;  %v151_v16 = vadd.f32 %v379_v2, %v83_v5  ;;  %v152_v19 = vadd.f32 %v379_v2, %v84_v9  ;;  %v22_v23 = vld [vmem:[%s893_s0 + $0x40] sm:$0xff]  ;;  %v25_v30 = vld [vmem:[%s893_s0 + $0x58] sm:$0xff]  ;;  %v27_v35 = vld [vmem:[%s893_s0 + $0x68] sm:$0xff] }
   0x6   :  { %v153_v20 = vadd.f32 %v379_v2, %v85_v10  ;;  %v155_v27 = vadd.f32 %v379_v2, %v87_v17  ;;  %v156_v28 = vadd.f32 %v379_v2, %v88_v18  ;;  %v26_v31 = vld [vmem:[%s893_s0 + $0x60] sm:$0xff]  ;;  %v157_v34 = vadd.f32 %v379_v2, %v89_v22  ;;  %v28_v36 = vld [vmem:[%s893_s0 + $0x70] sm:$0xff]  ;;  %v29_v41 = vld [vmem:[%s893_s0 + $0x78] sm:$0xff] }
   0x7   :  { %v154_v21 = vadd.f32 %v379_v2, %v86_v11  ;;  %v214_v25 = vmax.f32 %v150_v15, 0.0  ;;  %v215_v26 = vmax.f32 %v151_v16, 0.0  ;;  %v216_v32 = vmax.f32 %v152_v19, 0.0  ;;  %v30_v54 = vld [vmem:[%s893_s0 + $0x80] sm:$0xff]  ;;  %v31_v55 = vld [vmem:[%s893_s0 + $0x88] sm:$0xff]  ;;  %v32_v58 = vld [vmem:[%s893_s0 + $0x90] sm:$0xff] }
   0x8   :  { %v217_v33 = vmax.f32 %v153_v20, 0.0  ;;  %v219_v38 = vmax.f32 %v155_v27, 0.0  ;;  %v90_v39 = vmul.f32 %v374_v1, %v22_v23  ;;  %v91_v40 = vmul.f32 %v374_v1, %v23_v24  ;;  %v33_v59 = vld [vmem:[%s893_s0 + $0x98] sm:$0xff]  ;;  %v34_v62 = vld [vmem:[%s893_s0 + $0xa0] sm:$0xff]  ;;  %v35_v5 = vld [vmem:[%s893_s0 + $0xa8] sm:$0xff] }
   0x9   :  { %278 = vst [vmem:[%s896_s3] sm:$0xff] %v214_v25  ;;  %v218_v37 = vmax.f32 %v154_v21, 0.0  ;;  %v220_v42 = vmax.f32 %v156_v28, 0.0  ;;  %v92_v43 = vmul.f32 %v374_v1, %v24_v29  ;;  %v93_v44 = vmul.f32 %v374_v1, %v25_v30  ;;  %v36_v10 = vld [vmem:[%s893_s0 + $0xb0] sm:$0xff]  ;;  %v37_v14 = vld [vmem:[%s893_s0 + $0xb8] sm:$0xff]  ;;  %v38_v18 = vld [vmem:[%s893_s0 + $0xc0] sm:$0xff] }
   0xa   :  { %279 = vst [vmem:[%s896_s3 + $0x8] sm:$0xff] %v215_v26  ;;  %v94_v45 = vmul.f32 %v374_v1, %v26_v31  ;;  %v158_v46 = vadd.f32 %v379_v2, %v90_v39  ;;  %v159_v47 = vadd.f32 %v379_v2, %v91_v40  ;;  %v95_v48 = vmul.f32 %v374_v1, %v27_v35  ;;  %v39_v22 = vld [vmem:[%s893_s0 + $0xc8] sm:$0xff]  ;;  %v40_v26 = vld [vmem:[%s893_s0 + $0xd0] sm:$0xff]  ;;  %v41_v30 = vld [vmem:[%s893_s0 + $0xd8] sm:$0xff] }
   0xb   :  { %280 = vst [vmem:[%s896_s3 + $0x10] sm:$0xff] %v216_v32  ;;  %v96_v49 = vmul.f32 %v374_v1, %v28_v36  ;;  %v221_v50 = vmax.f32 %v157_v34, 0.0  ;;  %v160_v51 = vadd.f32 %v379_v2, %v92_v43  ;;  %v161_v52 = vadd.f32 %v379_v2, %v93_v44  ;;  %v42_v34 = vld [vmem:[%s893_s0 + $0xe0] sm:$0xff] }
   0xc   :  { %281 = vst [vmem:[%s896_s3 + $0x18] sm:$0xff] %v217_v33  ;;  %v97_v53 = vmul.f32 %v374_v1, %v29_v41  ;;  %v222_v56 = vmax.f32 %v158_v46, 0.0  ;;  %v162_v57 = vadd.f32 %v379_v2, %v94_v45  ;;  %v223_v60 = vmax.f32 %v159_v47, 0.0  ;;  %v45_v46 = vld [vmem:[%s893_s0 + $0xf8] sm:$0xff] }
   0xd   :  { %282 = vst [vmem:[%s896_s3 + $0x20] sm:$0xff] %v218_v37  ;;  %v163_v61 = vadd.f32 %v379_v2, %v95_v48  ;;  %v224_v63 = vmax.f32 %v160_v51, 0.0  ;;  %v164_v0 = vadd.f32 %v379_v2, %v96_v49  ;;  %v98_v3 = vmul.f32 %v374_v1, %v30_v54  ;;  %v47_v54 = vld [vmem:[%s893_s0 + $0x108] sm:$0xff] }
   0xe   :  { %283 = vst [vmem:[%s896_s3 + $0x28] sm:$0xff] %v219_v38  ;;  %v99_v4 = vmul.f32 %v374_v1, %v31_v55  ;;  %v225_v6 = vmax.f32 %v161_v52, 0.0  ;;  %v165_v7 = vadd.f32 %v379_v2, %v97_v53  ;;  %v100_v8 = vmul.f32 %v374_v1, %v32_v58  ;;  %v43_v38 = vld [vmem:[%s893_s0 + $0xe8] sm:$0xff]  ;;  %v48_v58 = vld [vmem:[%s893_s0 + $0x110] sm:$0xff] }
   0xf   :  { %284 = vst [vmem:[%s896_s3 + $0x30] sm:$0xff] %v220_v42  ;;  %v101_v9 = vmul.f32 %v374_v1, %v33_v59  ;;  %v226_v11 = vmax.f32 %v162_v57, 0.0  ;;  %v166_v12 = vadd.f32 %v379_v2, %v98_v3  ;;  %v102_v13 = vmul.f32 %v374_v1, %v34_v62  ;;  %v44_v42 = vld [vmem:[%s893_s0 + $0xf0] sm:$0xff]  ;;  %v49_v62 = vld [vmem:[%s893_s0 + $0x118] sm:$0xff] }
  0x10   :  { %285 = vst [vmem:[%s896_s3 + $0x38] sm:$0xff] %v221_v50  ;;  %v227_v15 = vmax.f32 %v163_v61, 0.0  ;;  %v167_v16 = vadd.f32 %v379_v2, %v99_v4  ;;  %v103_v17 = vmul.f32 %v374_v1, %v35_v5  ;;  %v228_v19 = vmax.f32 %v164_v0, 0.0  ;;  %v46_v50 = vld [vmem:[%s893_s0 + $0x100] sm:$0xff] }
  0x11   :  { %286 = vst [vmem:[%s896_s3 + $0x40] sm:$0xff] %v222_v56  ;;  %v168_v20 = vadd.f32 %v379_v2, %v100_v8  ;;  %v104_v21 = vmul.f32 %v374_v1, %v36_v10  ;;  %v229_v23 = vmax.f32 %v165_v7, 0.0  ;;  %v169_v24 = vadd.f32 %v379_v2, %v101_v9  ;;  %v50_v4 = vld [vmem:[%s893_s0 + $0x120] sm:$0xff]  ;;  %v51_v8 = vld [vmem:[%s893_s0 + $0x128] sm:$0xff] }
  0x12   :  { %287 = vst [vmem:[%s896_s3 + $0x48] sm:$0xff] %v223_v60  ;;  %v105_v25 = vmul.f32 %v374_v1, %v37_v14  ;;  %v230_v27 = vmax.f32 %v166_v12, 0.0  ;;  %v170_v28 = vadd.f32 %v379_v2, %v102_v13  ;;  %v106_v29 = vmul.f32 %v374_v1, %v38_v18  ;;  %v52_v12 = vld [vmem:[%s893_s0 + $0x130] sm:$0xff] }
  0x13   :  { %288 = vst [vmem:[%s896_s3 + $0x50] sm:$0xff] %v224_v63  ;;  %v231_v31 = vmax.f32 %v167_v16, 0.0  ;;  %v171_v32 = vadd.f32 %v379_v2, %v103_v17  ;;  %v107_v33 = vmul.f32 %v374_v1, %v39_v22  ;;  %v232_v35 = vmax.f32 %v168_v20, 0.0  ;;  %v53_v16 = vld [vmem:[%s893_s0 + $0x138] sm:$0xff]  ;;  %v54_v20 = vld [vmem:[%s893_s0 + $0x140] sm:$0xff] }
  0x14   :  { %289 = vst [vmem:[%s896_s3 + $0x58] sm:$0xff] %v225_v6  ;;  %v172_v36 = vadd.f32 %v379_v2, %v104_v21  ;;  %v108_v37 = vmul.f32 %v374_v1, %v40_v26  ;;  %v233_v39 = vmax.f32 %v169_v24, 0.0  ;;  %v173_v40 = vadd.f32 %v379_v2, %v105_v25  ;;  %v55_v24 = vld [vmem:[%s893_s0 + $0x148] sm:$0xff] }
  0x15   :  { %290 = vst [vmem:[%s896_s3 + $0x60] sm:$0xff] %v226_v11  ;;  %v109_v41 = vmul.f32 %v374_v1, %v41_v30  ;;  %v234_v43 = vmax.f32 %v170_v28, 0.0  ;;  %v174_v44 = vadd.f32 %v379_v2, %v106_v29  ;;  %v110_v45 = vmul.f32 %v374_v1, %v42_v34  ;;  %v56_v28 = vld [vmem:[%s893_s0 + $0x150] sm:$0xff] }
  0x16   :  { %291 = vst [vmem:[%s896_s3 + $0x68] sm:$0xff] %v227_v15  ;;  %v235_v47 = vmax.f32 %v171_v32, 0.0  ;;  %v175_v48 = vadd.f32 %v379_v2, %v107_v33  ;;  %v111_v49 = vmul.f32 %v374_v1, %v43_v38  ;;  %v236_v51 = vmax.f32 %v172_v36, 0.0  ;;  %v57_v32 = vld [vmem:[%s893_s0 + $0x158] sm:$0xff]  ;;  %v58_v36 = vld [vmem:[%s893_s0 + $0x160] sm:$0xff] }
  0x17   :  { %292 = vst [vmem:[%s896_s3 + $0x70] sm:$0xff] %v228_v19  ;;  %v176_v52 = vadd.f32 %v379_v2, %v108_v37  ;;  %v112_v53 = vmul.f32 %v374_v1, %v44_v42  ;;  %v237_v55 = vmax.f32 %v173_v40, 0.0  ;;  %v177_v56 = vadd.f32 %v379_v2, %v109_v41  ;;  %v59_v40 = vld [vmem:[%s893_s0 + $0x168] sm:$0xff] }
  0x18   :  { %293 = vst [vmem:[%s896_s3 + $0x78] sm:$0xff] %v229_v23  ;;  %v113_v57 = vmul.f32 %v374_v1, %v45_v46  ;;  %v238_v59 = vmax.f32 %v174_v44, 0.0  ;;  %v178_v60 = vadd.f32 %v379_v2, %v110_v45  ;;  %v114_v61 = vmul.f32 %v374_v1, %v46_v50  ;;  %v60_v44 = vld [vmem:[%s893_s0 + $0x170] sm:$0xff] }
  0x19   :  { %294 = vst [vmem:[%s896_s3 + $0x80] sm:$0xff] %v230_v27  ;;  %v239_v63 = vmax.f32 %v175_v48, 0.0  ;;  %v179_v0 = vadd.f32 %v379_v2, %v111_v49  ;;  %v115_v3 = vmul.f32 %v374_v1, %v47_v54  ;;  %v240_v5 = vmax.f32 %v176_v52, 0.0  ;;  %v61_v48 = vld [vmem:[%s893_s0 + $0x178] sm:$0xff]  ;;  %v62_v52 = vld [vmem:[%s893_s0 + $0x180] sm:$0xff] }
  0x1a   :  { %295 = vst [vmem:[%s896_s3 + $0x88] sm:$0xff] %v231_v31  ;;  %v180_v6 = vadd.f32 %v379_v2, %v112_v53  ;;  %v116_v7 = vmul.f32 %v374_v1, %v48_v58  ;;  %v241_v9 = vmax.f32 %v177_v56, 0.0  ;;  %v181_v10 = vadd.f32 %v379_v2, %v113_v57  ;;  %v63_v56 = vld [vmem:[%s893_s0 + $0x188] sm:$0xff] }
  0x1b   :  { %296 = vst [vmem:[%s896_s3 + $0x90] sm:$0xff] %v232_v35  ;;  %v117_v11 = vmul.f32 %v374_v1, %v49_v62  ;;  %v242_v13 = vmax.f32 %v178_v60, 0.0  ;;  %v182_v14 = vadd.f32 %v379_v2, %v114_v61  ;;  %v118_v15 = vmul.f32 %v374_v1, %v50_v4  ;;  %v64_v60 = vld [vmem:[%s893_s0 + $0x190] sm:$0xff] }
  0x1c   :  { %297 = vst [vmem:[%s896_s3 + $0x98] sm:$0xff] %v233_v39  ;;  %v243_v17 = vmax.f32 %v179_v0, 0.0  ;;  %v183_v18 = vadd.f32 %v379_v2, %v115_v3  ;;  %v119_v19 = vmul.f32 %v374_v1, %v51_v8  ;;  %v244_v21 = vmax.f32 %v180_v6, 0.0  ;;  %v65_v0 = vld [vmem:[%s893_s0 + $0x198] sm:$0xff] }
  0x1d   :  { %298 = vst [vmem:[%s896_s3 + $0xa0] sm:$0xff] %v234_v43  ;;  %v184_v22 = vadd.f32 %v379_v2, %v116_v7  ;;  %v120_v23 = vmul.f32 %v374_v1, %v52_v12  ;;  %v245_v25 = vmax.f32 %v181_v10, 0.0  ;;  %v185_v26 = vadd.f32 %v379_v2, %v117_v11  ;;  %v77_v3 = vld [vmem:[%s893_s0 + $0x1f8] sm:$0xff]  ;;  %v66_v7 = vld [vmem:[%s893_s0 + $0x1a0] sm:$0xff]  ;;  %v67_v11 = vld [vmem:[%s893_s0 + $0x1a8] sm:$0xff] }
  0x1e   :  { %299 = vst [vmem:[%s896_s3 + $0xa8] sm:$0xff] %v235_v47  ;;  %v121_v27 = vmul.f32 %v374_v1, %v53_v16  ;;  %v246_v29 = vmax.f32 %v182_v14, 0.0  ;;  %v186_v30 = vadd.f32 %v379_v2, %v118_v15  ;;  %v122_v31 = vmul.f32 %v374_v1, %v54_v20  ;;  %v68_v15 = vld [vmem:[%s893_s0 + $0x1b0] sm:$0xff]  ;;  %v69_v20 = vld [vmem:[%s893_s0 + $0x1b8] sm:$0xff] }
  0x1f   :  { %300 = vst [vmem:[%s896_s3 + $0xb0] sm:$0xff] %v236_v51  ;;  %v247_v33 = vmax.f32 %v183_v18, 0.0  ;;  %v187_v34 = vadd.f32 %v379_v2, %v119_v19  ;;  %v123_v35 = vmul.f32 %v374_v1, %v55_v24  ;;  %v248_v37 = vmax.f32 %v184_v22, 0.0  ;;  %v70_v24 = vld [vmem:[%s893_s0 + $0x1c0] sm:$0xff] }
  0x20   :  { %301 = vst [vmem:[%s896_s3 + $0xb8] sm:$0xff] %v237_v55  ;;  %v188_v38 = vadd.f32 %v379_v2, %v120_v23  ;;  %v124_v39 = vmul.f32 %v374_v1, %v56_v28  ;;  %v249_v41 = vmax.f32 %v185_v26, 0.0  ;;  %v189_v42 = vadd.f32 %v379_v2, %v121_v27 }
  0x21   :  { %302 = vst [vmem:[%s896_s3 + $0xc0] sm:$0xff] %v238_v59  ;;  %v125_v43 = vmul.f32 %v374_v1, %v57_v32  ;;  %v250_v45 = vmax.f32 %v186_v30, 0.0  ;;  %v190_v46 = vadd.f32 %v379_v2, %v122_v31  ;;  %v126_v47 = vmul.f32 %v374_v1, %v58_v36 }
  0x22   :  { %303 = vst [vmem:[%s896_s3 + $0xc8] sm:$0xff] %v239_v63  ;;  %v251_v49 = vmax.f32 %v187_v34, 0.0  ;;  %v191_v50 = vadd.f32 %v379_v2, %v123_v35  ;;  %v127_v51 = vmul.f32 %v374_v1, %v59_v40  ;;  %v252_v53 = vmax.f32 %v188_v38, 0.0 }
  0x23   :  { %304 = vst [vmem:[%s896_s3 + $0xd0] sm:$0xff] %v240_v5  ;;  %v192_v54 = vadd.f32 %v379_v2, %v124_v39  ;;  %v128_v55 = vmul.f32 %v374_v1, %v60_v44  ;;  %v253_v57 = vmax.f32 %v189_v42, 0.0  ;;  %v193_v58 = vadd.f32 %v379_v2, %v125_v43 }
  0x24   :  { %305 = vst [vmem:[%s896_s3 + $0xd8] sm:$0xff] %v241_v9  ;;  %v129_v59 = vmul.f32 %v374_v1, %v61_v48  ;;  %v254_v61 = vmax.f32 %v190_v46, 0.0  ;;  %v194_v62 = vadd.f32 %v379_v2, %v126_v47  ;;  %v130_v63 = vmul.f32 %v374_v1, %v62_v52 }
  0x25   :  { %306 = vst [vmem:[%s896_s3 + $0xe0] sm:$0xff] %v242_v13  ;;  %v255_v4 = vmax.f32 %v191_v50, 0.0  ;;  %v195_v5 = vadd.f32 %v379_v2, %v127_v51  ;;  %v131_v6 = vmul.f32 %v374_v1, %v63_v56  ;;  %v256_v8 = vmax.f32 %v192_v54, 0.0 }
  0x26   :  { %307 = vst [vmem:[%s896_s3 + $0xe8] sm:$0xff] %v243_v17  ;;  %v196_v9 = vadd.f32 %v379_v2, %v128_v55  ;;  %v132_v10 = vmul.f32 %v374_v1, %v64_v60  ;;  %v257_v12 = vmax.f32 %v193_v58, 0.0  ;;  %v197_v13 = vadd.f32 %v379_v2, %v129_v59 }
  0x27   :  { %308 = vst [vmem:[%s896_s3 + $0xf0] sm:$0xff] %v244_v21  ;;  %v133_v14 = vmul.f32 %v374_v1, %v65_v0  ;;  %v145_v16 = vmul.f32 %v374_v1, %v77_v3  ;;  %v258_v17 = vmax.f32 %v194_v62, 0.0  ;;  %v198_v18 = vadd.f32 %v379_v2, %v130_v63 }
  0x28   :  { %309 = vst [vmem:[%s896_s3 + $0xf8] sm:$0xff] %v245_v25  ;;  %v134_v19 = vmul.f32 %v374_v1, %v66_v7  ;;  %v259_v21 = vmax.f32 %v195_v5, 0.0  ;;  %v199_v22 = vadd.f32 %v379_v2, %v131_v6  ;;  %v135_v23 = vmul.f32 %v374_v1, %v67_v11 }
  0x29   :  { %310 = vst [vmem:[%s896_s3 + $0x100] sm:$0xff] %v246_v29  ;;  %v784_v25 = vadd.f32 %v379_v2, %v145_v16  ;;  %v260_v26 = vmax.f32 %v196_v9, 0.0  ;;  %v200_v27 = vadd.f32 %v379_v2, %v132_v10  ;;  %v136_v28 = vmul.f32 %v374_v1, %v68_v15  ;;  %v71_v29 = vld [vmem:[%s893_s0 + $0x1c8] sm:$0xff] }
  0x2a   :  { %311 = vst [vmem:[%s896_s3 + $0x108] sm:$0xff] %v247_v33  ;;  %v261_v30 = vmax.f32 %v197_v13, 0.0  ;;  %v201_v31 = vadd.f32 %v379_v2, %v133_v14  ;;  %v137_v32 = vmul.f32 %v374_v1, %v69_v20  ;;  %v72_v33 = vld [vmem:[%s893_s0 + $0x1d0] sm:$0xff]  ;;  %v262_v34 = vmax.f32 %v198_v18, 0.0 }
  0x2b   :  { %312 = vst [vmem:[%s896_s3 + $0x110] sm:$0xff] %v248_v37  ;;  %v202_v35 = vadd.f32 %v379_v2, %v134_v19  ;;  %v138_v36 = vmul.f32 %v374_v1, %v70_v24  ;;  %v73_v37 = vld [vmem:[%s893_s0 + $0x1d8] sm:$0xff]  ;;  %v263_v38 = vmax.f32 %v199_v22, 0.0  ;;  %v203_v39 = vadd.f32 %v379_v2, %v135_v23 }
  0x2c   :  { %313 = vst [vmem:[%s896_s3 + $0x118] sm:$0xff] %v249_v41  ;;  %v139_v40 = vmul.f32 %v374_v1, %v71_v29  ;;  %v74_v41 = vld [vmem:[%s893_s0 + $0x1e0] sm:$0xff]  ;;  %v264_v42 = vmax.f32 %v200_v27, 0.0  ;;  %v204_v43 = vadd.f32 %v379_v2, %v136_v28  ;;  %v140_v44 = vmul.f32 %v374_v1, %v72_v33 }
  0x2d   :  { %314 = vst [vmem:[%s896_s3 + $0x120] sm:$0xff] %v250_v45  ;;  %v75_v45 = vld [vmem:[%s893_s0 + $0x1e8] sm:$0xff]  ;;  %v265_v46 = vmax.f32 %v201_v31, 0.0  ;;  %v205_v47 = vadd.f32 %v379_v2, %v137_v32  ;;  %v141_v48 = vmul.f32 %v374_v1, %v73_v37  ;;  %v266_v50 = vmax.f32 %v202_v35, 0.0 }
  0x2e   :  { %315 = vst [vmem:[%s896_s3 + $0x128] sm:$0xff] %v251_v49  ;;  %v76_v49 = vld [vmem:[%s893_s0 + $0x1f0] sm:$0xff]  ;;  %v206_v51 = vadd.f32 %v379_v2, %v138_v36  ;;  %v142_v52 = vmul.f32 %v374_v1, %v74_v41  ;;  %v207_v54 = vadd.f32 %v379_v2, %v139_v40  ;;  %v143_v55 = vmul.f32 %v374_v1, %v75_v45 }
  0x2f   :  { %316 = vst [vmem:[%s896_s3 + $0x130] sm:$0xff] %v252_v53  ;;  %v267_v53 = vmax.f32 %v203_v39, 0.0  ;;  %v268_v56 = vmax.f32 %v204_v43, 0.0  ;;  %v144_v58 = vmul.f32 %v374_v1, %v76_v49  ;;  %v269_v59 = vmax.f32 %v205_v47, 0.0 }
  0x30   :  { %317 = vst [vmem:[%s896_s3 + $0x138] sm:$0xff] %v253_v57  ;;  %v208_v57 = vadd.f32 %v379_v2, %v140_v44  ;;  %v209_v60 = vadd.f32 %v379_v2, %v141_v48  ;;  %v210_v62 = vadd.f32 %v379_v2, %v142_v52  ;;  %v271_v63 = vmax.f32 %v207_v54, 0.0 }
  0x31   :  { %318 = vst [vmem:[%s896_s3 + $0x140] sm:$0xff] %v254_v61  ;;  %v270_v61 = vmax.f32 %v206_v51, 0.0  ;;  %v211_v1 = vadd.f32 %v379_v2, %v143_v55  ;;  %v212_v3 = vadd.f32 %v379_v2, %v144_v58  ;;  %v277_v7 = vmax.f32 %v784_v25, 0.0 }
  0x32   :  { %319 = vst [vmem:[%s896_s3 + $0x148] sm:$0xff] %v255_v4  ;;  %v272_v0 = vmax.f32 %v208_v57, 0.0  ;;  %v273_v4 = vmax.f32 %v209_v60, 0.0  ;;  %v274_v5 = vmax.f32 %v210_v62, 0.0 }
  0x33   :  { %320 = vst [vmem:[%s896_s3 + $0x150] sm:$0xff] %v256_v8  ;;  %v275_v6 = vmax.f32 %v211_v1, 0.0  ;;  %v276_v2 = vmax.f32 %v212_v3, 0.0 }
  0x34   :  { %321 = vst [vmem:[%s896_s3 + $0x158] sm:$0xff] %v257_v12 }
  0x35   :  { %322 = vst [vmem:[%s896_s3 + $0x160] sm:$0xff] %v258_v17 }
  0x36   :  { %323 = vst [vmem:[%s896_s3 + $0x168] sm:$0xff] %v259_v21 }
  0x37   :  { %324 = vst [vmem:[%s896_s3 + $0x170] sm:$0xff] %v260_v26 }
  0x38   :  { %325 = vst [vmem:[%s896_s3 + $0x178] sm:$0xff] %v261_v30 }
  0x39   :  { %326 = vst [vmem:[%s896_s3 + $0x180] sm:$0xff] %v262_v34 }
  0x3a   :  { %327 = vst [vmem:[%s896_s3 + $0x188] sm:$0xff] %v263_v38 }
  0x3b   :  { %328 = vst [vmem:[%s896_s3 + $0x190] sm:$0xff] %v264_v42 }
  0x3c   :  { %329 = vst [vmem:[%s896_s3 + $0x198] sm:$0xff] %v265_v46 }
  0x3d   :  { %330 = vst [vmem:[%s896_s3 + $0x1a0] sm:$0xff] %v266_v50 }
  0x3e   :  { %331 = vst [vmem:[%s896_s3 + $0x1a8] sm:$0xff] %v267_v53 }
  0x3f   :  { %332 = vst [vmem:[%s896_s3 + $0x1b0] sm:$0xff] %v268_v56 }
  0x40   :  { %333 = vst [vmem:[%s896_s3 + $0x1b8] sm:$0xff] %v269_v59 }
  0x41   :  { %334 = vst [vmem:[%s896_s3 + $0x1c0] sm:$0xff] %v270_v61 }
  0x42   :  { %335 = vst [vmem:[%s896_s3 + $0x1c8] sm:$0xff] %v271_v63 }
  0x43   :  { %336 = vst [vmem:[%s896_s3 + $0x1d0] sm:$0xff] %v272_v0 }
  0x44   :  { %337 = vst [vmem:[%s896_s3 + $0x1d8] sm:$0xff] %v273_v4 }
  0x45   :  { %338 = vst [vmem:[%s896_s3 + $0x1e0] sm:$0xff] %v274_v5 }
  0x46   :  { %339 = vst [vmem:[%s896_s3 + $0x1e8] sm:$0xff] %v275_v6 }
  0x47   :  { %340 = vst [vmem:[%s896_s3 + $0x1f0] sm:$0xff] %v276_v2 }
  0x48   :  { %341 = vst [vmem:[%s896_s3 + $0x1f8] sm:$0xff] %v277_v7 }

// kernel: block_forward.5
= control target key start
LH: loop header
LB: loop body
LE: loop exit
PB: predicated region body
PF: predicated region fallthrough
CT: control target
= control target key end

     0   :  { %vm568_vm0 = vcmask 1040384   ;;  %s1364_s1 = inlined_call_operand.vmem [shape: f32[128,128], index: 1, kind: input, shape index: {}]   ;;  %s1365_s0 = inlined_call_operand.vmem [shape: f32[512,128], index: 0, kind: input, shape index: {}]   ;;  %s1366_s2 = inlined_call_operand.vmem [shape: f32[512,128], index: 2, kind: output, shape index: {0}]   ;;  %s1367_s3 = inlined_call_operand.vmem [shape: f32[1,2,128], index: 3, kind: output, shape index: {1}]  }
   0x1   :  { %v92_v0 = vld [vmem:[%s1364_s1 + $0x78] sm:$0xff]  ;;  %v91_v1 = vld [vmem:[%s1364_s1 + $0x70] sm:$0xff]  ;;  %v90_v2 = vld [vmem:[%s1364_s1 + $0x68] sm:$0xff] }
   0x2   :  { %93 = vmatpush.msra.mxu0 %v92_v0  ;;  %579 = vmatpush.msra.mxu1 %v92_v0  ;;  %v89_v3 = vld [vmem:[%s1364_s1 + $0x60] sm:$0xff]  ;;  %v88_v4 = vld [vmem:[%s1364_s1 + $0x58] sm:$0xff]  ;;  %v87_v5 = vld [vmem:[%s1364_s1 + $0x50] sm:$0xff] }
   0x3   :  { %580 = vmatpush.msra.mxu2 %v92_v0  ;;  %581 = vmatpush.msra.mxu3 %v92_v0  ;;  %v86_v6 = vld [vmem:[%s1364_s1 + $0x48] sm:$0xff]  ;;  %v85_v7 = vld [vmem:[%s1364_s1 + $0x40] sm:$0xff]  ;;  %v84_v8 = vld [vmem:[%s1364_s1 + $0x38] sm:$0xff] }
   0x4   :  { %94 = vmatpush.msra.mxu0 %v91_v1  ;;  %582 = vmatpush.msra.mxu1 %v91_v1  ;;  %v83_v9 = vld [vmem:[%s1364_s1 + $0x30] sm:$0xff]  ;;  %v82_v10 = vld [vmem:[%s1364_s1 + $0x28] sm:$0xff]  ;;  %v81_v11 = vld [vmem:[%s1364_s1 + $0x20] sm:$0xff] }
   0x5   :  { %583 = vmatpush.msra.mxu2 %v91_v1  ;;  %584 = vmatpush.msra.mxu3 %v91_v1  ;;  %v80_v12 = vld [vmem:[%s1364_s1 + $0x18] sm:$0xff]  ;;  %v79_v13 = vld [vmem:[%s1364_s1 + $0x10] sm:$0xff]  ;;  %v78_v14 = vld [vmem:[%s1364_s1 + $0x8] sm:$0xff] }
   0x6   :  { %95 = vmatpush.msra.mxu0 %v90_v2  ;;  %585 = vmatpush.msra.mxu1 %v90_v2  ;;  %v77_v15 = vld [vmem:[%s1364_s1] sm:$0xff]  ;;  %v14_v18 = vld [vmem:[%s1365_s0 + $0x8] sm:$0xff]  ;;  %v15_v20 = vld [vmem:[%s1365_s0 + $0x10] sm:$0xff] }
   0x7   :  { %586 = vmatpush.msra.mxu2 %v90_v2  ;;  %587 = vmatpush.msra.mxu3 %v90_v2  ;;  %v13_v16 = vld [vmem:[%s1365_s0] sm:$0xff]  ;;  %v30_v19 = vld [vmem:[%s1365_s0 + $0x88] sm:$0xff]  ;;  %v31_v21 = vld [vmem:[%s1365_s0 + $0x90] sm:$0xff] }
   0x8   :  { %96 = vmatpush.msra.mxu0 %v89_v3  ;;  %588 = vmatpush.msra.mxu1 %v89_v3  ;;  %v29_v17 = vld [vmem:[%s1365_s0 + $0x80] sm:$0xff]  ;;  %v16_v22 = vld [vmem:[%s1365_s0 + $0x18] sm:$0xff]  ;;  %v46_v27 = vld [vmem:[%s1365_s0 + $0x108] sm:$0xff] }
   0x9   :  { %589 = vmatpush.msra.mxu2 %v89_v3  ;;  %590 = vmatpush.msra.mxu3 %v89_v3  ;;  %v32_v23 = vld [vmem:[%s1365_s0 + $0x98] sm:$0xff]  ;;  %v45_v24 = vld [vmem:[%s1365_s0 + $0x100] sm:$0xff]  ;;  %v18_v28 = vld [vmem:[%s1365_s0 + $0x28] sm:$0xff] }
   0xa   :  { %97 = vmatpush.msra.mxu0 %v88_v4  ;;  %591 = vmatpush.msra.mxu1 %v88_v4  ;;  %v17_v25 = vld [vmem:[%s1365_s0 + $0x20] sm:$0xff]  ;;  %v34_v29 = vld [vmem:[%s1365_s0 + $0xa8] sm:$0xff]  ;;  %v47_v30 = vld [vmem:[%s1365_s0 + $0x110] sm:$0xff] }
   0xb   :  { %592 = vmatpush.msra.mxu2 %v88_v4  ;;  %593 = vmatpush.msra.mxu3 %v88_v4  ;;  %v33_v26 = vld [vmem:[%s1365_s0 + $0xa0] sm:$0xff]  ;;  %v19_v31 = vld [vmem:[%s1365_s0 + $0x30] sm:$0xff]  ;;  %v48_v33 = vld [vmem:[%s1365_s0 + $0x118] sm:$0xff] }
   0xc   :  { %98 = vmatpush.msra.mxu0 %v87_v5  ;;  %594 = vmatpush.msra.mxu1 %v87_v5  ;;  %v35_v32 = vld [vmem:[%s1365_s0 + $0xb0] sm:$0xff]  ;;  %v20_v34 = vld [vmem:[%s1365_s0 + $0x38] sm:$0xff]  ;;  %v49_v36 = vld [vmem:[%s1365_s0 + $0x120] sm:$0xff] }
   0xd   :  { %595 = vmatpush.msra.mxu2 %v87_v5  ;;  %596 = vmatpush.msra.mxu3 %v87_v5  ;;  %v36_v35 = vld [vmem:[%s1365_s0 + $0xb8] sm:$0xff]  ;;  %v61_v37 = vld [vmem:[%s1365_s0 + $0x180] sm:$0xff]  ;;  %v50_v40 = vld [vmem:[%s1365_s0 + $0x128] sm:$0xff] }
   0xe   :  { %99 = vmatpush.msra.mxu0 %v86_v6  ;;  %597 = vmatpush.msra.mxu1 %v86_v6  ;;  %v21_v38 = vld [vmem:[%s1365_s0 + $0x40] sm:$0xff]  ;;  %v62_v41 = vld [vmem:[%s1365_s0 + $0x188] sm:$0xff]  ;;  %v51_v44 = vld [vmem:[%s1365_s0 + $0x130] sm:$0xff] }
   0xf   :  { %598 = vmatpush.msra.mxu2 %v86_v6  ;;  %599 = vmatpush.msra.mxu3 %v86_v6  ;;  %v37_v39 = vld [vmem:[%s1365_s0 + $0xc0] sm:$0xff]  ;;  %v22_v42 = vld [vmem:[%s1365_s0 + $0x48] sm:$0xff]  ;;  %v63_v45 = vld [vmem:[%s1365_s0 + $0x190] sm:$0xff] }
  0x10   :  { %100 = vmatpush.msra.mxu0 %v85_v7  ;;  %600 = vmatpush.msra.mxu1 %v85_v7  ;;  %v38_v43 = vld [vmem:[%s1365_s0 + $0xc8] sm:$0xff]  ;;  %v23_v46 = vld [vmem:[%s1365_s0 + $0x50] sm:$0xff]  ;;  %v52_v48 = vld [vmem:[%s1365_s0 + $0x138] sm:$0xff] }
  0x11   :  { %601 = vmatpush.msra.mxu2 %v85_v7  ;;  %602 = vmatpush.msra.mxu3 %v85_v7  ;;  %v39_v47 = vld [vmem:[%s1365_s0 + $0xd0] sm:$0xff]  ;;  %v64_v49 = vld [vmem:[%s1365_s0 + $0x198] sm:$0xff]  ;;  %v53_v52 = vld [vmem:[%s1365_s0 + $0x140] sm:$0xff] }
  0x12   :  { %101 = vmatpush.msra.mxu0 %v84_v8  ;;  %603 = vmatpush.msra.mxu1 %v84_v8  ;;  %v24_v50 = vld [vmem:[%s1365_s0 + $0x58] sm:$0xff]  ;;  %v65_v53 = vld [vmem:[%s1365_s0 + $0x1a0] sm:$0xff]  ;;  %v54_v56 = vld [vmem:[%s1365_s0 + $0x148] sm:$0xff] }
  0x13   :  { %604 = vmatpush.msra.mxu2 %v84_v8  ;;  %605 = vmatpush.msra.mxu3 %v84_v8  ;;  %v40_v51 = vld [vmem:[%s1365_s0 + $0xd8] sm:$0xff]  ;;  %v25_v54 = vld [vmem:[%s1365_s0 + $0x60] sm:$0xff]  ;;  %v66_v57 = vld [vmem:[%s1365_s0 + $0x1a8] sm:$0xff] }
  0x14   :  { %102 = vmatpush.msra.mxu0 %v83_v9  ;;  %606 = vmatpush.msra.mxu1 %v83_v9  ;;  %v41_v55 = vld [vmem:[%s1365_s0 + $0xe0] sm:$0xff]  ;;  %v26_v58 = vld [vmem:[%s1365_s0 + $0x68] sm:$0xff]  ;;  %v55_v60 = vld [vmem:[%s1365_s0 + $0x150] sm:$0xff] }
  0x15   :  { %607 = vmatpush.msra.mxu2 %v83_v9  ;;  %608 = vmatpush.msra.mxu3 %v83_v9  ;;  %v42_v59 = vld [vmem:[%s1365_s0 + $0xe8] sm:$0xff]  ;;  %v67_v61 = vld [vmem:[%s1365_s0 + $0x1b0] sm:$0xff]  ;;  %v56_v0 = vld [vmem:[%s1365_s0 + $0x158] sm:$0xff] }
  0x16   :  { %103 = vmatpush.msra.mxu0 %v82_v10  ;;  %609 = vmatpush.msra.mxu1 %v82_v10  ;;  %v27_v62 = vld [vmem:[%s1365_s0 + $0x70] sm:$0xff]  ;;  %v68_v1 = vld [vmem:[%s1365_s0 + $0x1b8] sm:$0xff]  ;;  %v57_v4 = vld [vmem:[%s1365_s0 + $0x160] sm:$0xff] }
  0x17   :  { %610 = vmatpush.msra.mxu2 %v82_v10  ;;  %611 = vmatpush.msra.mxu3 %v82_v10  ;;  %v43_v63 = vld [vmem:[%s1365_s0 + $0xf0] sm:$0xff]  ;;  %v28_v2 = vld [vmem:[%s1365_s0 + $0x78] sm:$0xff]  ;;  %v69_v5 = vld [vmem:[%s1365_s0 + $0x1c0] sm:$0xff] }
  0x18   :  { %104 = vmatpush.msra.mxu0 %v81_v11  ;;  %612 = vmatpush.msra.mxu1 %v81_v11  ;;  %v44_v3 = vld [vmem:[%s1365_s0 + $0xf8] sm:$0xff]  ;;  %v58_v8 = vld [vmem:[%s1365_s0 + $0x168] sm:$0xff] }
  0x19   :  { %613 = vmatpush.msra.mxu2 %v81_v11  ;;  %614 = vmatpush.msra.mxu3 %v81_v11  ;;  %v70_v9 = vld [vmem:[%s1365_s0 + $0x1c8] sm:$0xff] }
  0x1a   :  { %105 = vmatpush.msra.mxu0 %v80_v12  ;;  %615 = vmatpush.msra.mxu1 %v80_v12 }
  0x1b   :  { %616 = vmatpush.msra.mxu2 %v80_v12  ;;  %617 = vmatpush.msra.mxu3 %v80_v12 }
  0x1c   :  { %106 = vmatpush.msra.mxu0 %v79_v13  ;;  %618 = vmatpush.msra.mxu1 %v79_v13 }
  0x1d   :  { %619 = vmatpush.msra.mxu2 %v79_v13  ;;  %620 = vmatpush.msra.mxu3 %v79_v13 }
  0x1e   :  { %107 = vmatpush.msra.mxu0 %v78_v14  ;;  %621 = vmatpush.msra.mxu1 %v78_v14 }
  0x1f   :  { %622 = vmatpush.msra.mxu2 %v78_v14  ;;  %623 = vmatpush.msra.mxu3 %v78_v14 }
  0x20   :  { %108 = vmatpush.msra.mxu0 %v77_v15  ;;  %624 = vmatpush.msra.mxu1 %v77_v15 }
  0x21   :  { %109 = vmatmul.f32.vlgmr.msra.gmra.mxu0 %v13_v16  ;;  %157 = vmatmul.f32.vlgmr.msra.gmra.mxu1 %v29_v17  ;;  %v59_v16 = vld [vmem:[%s1365_s0 + $0x170] sm:$0xff] }
  0x22   :  { %625 = vmatpush.msra.mxu2 %v77_v15  ;;  %626 = vmatpush.msra.mxu3 %v77_v15  ;;  %v71_v17 = vld [vmem:[%s1365_s0 + $0x1d0] sm:$0xff] }
  0x23   :  { %205 = vmatmul.f32.vlgmr.msra.gmra.mxu2 %v45_v24  ;;  %253 = vmatmul.f32.vlgmr.msra.gmra.mxu3 %v61_v37  ;;  %v72_v24 = vld [vmem:[%s1365_s0 + $0x1d8] sm:$0xff]  ;;  %v74_v37 = vld [vmem:[%s1365_s0 + $0x1e8] sm:$0xff] }
  0x29   :  { %112 = vmatmul.f32.gmra.mxu0 %v14_v18  ;;  %160 = vmatmul.f32.gmra.mxu1 %v30_v19 }
  0x2b   :  { %208 = vmatmul.f32.gmra.mxu2 %v46_v27  ;;  %256 = vmatmul.f32.gmra.mxu3 %v62_v41  ;;  %v75_v41 = vld [vmem:[%s1365_s0 + $0x1f0] sm:$0xff] }
  0x31   :  { %115 = vmatmul.f32.gmra.mxu0 %v15_v20  ;;  %163 = vmatmul.f32.gmra.mxu1 %v31_v21 }
  0x33   :  { %211 = vmatmul.f32.gmra.mxu2 %v47_v30  ;;  %259 = vmatmul.f32.gmra.mxu3 %v63_v45  ;;  %v73_v30 = vld [vmem:[%s1365_s0 + $0x1e0] sm:$0xff]  ;;  %v76_v45 = vld [vmem:[%s1365_s0 + $0x1f8] sm:$0xff] }
  0x39   :  { %118 = vmatmul.f32.gmra.mxu0 %v16_v22  ;;  %166 = vmatmul.f32.gmra.mxu1 %v32_v23  ;;  %v60_v23 = vld [vmem:[%s1365_s0 + $0x178] sm:$0xff] }
  0x3b   :  { %214 = vmatmul.f32.gmra.mxu2 %v48_v33  ;;  %262 = vmatmul.f32.gmra.mxu3 %v64_v49 }
  0x41   :  { %121 = vmatmul.f32.gmra.mxu0 %v17_v25  ;;  %169 = vmatmul.f32.gmra.mxu1 %v33_v26 }
  0x43   :  { %217 = vmatmul.f32.gmra.mxu2 %v49_v36  ;;  %265 = vmatmul.f32.gmra.mxu3 %v65_v53 }
  0x49   :  { %124 = vmatmul.f32.gmra.mxu0 %v18_v28  ;;  %172 = vmatmul.f32.gmra.mxu1 %v34_v29 }
  0x4b   :  { %220 = vmatmul.f32.gmra.mxu2 %v50_v40  ;;  %268 = vmatmul.f32.gmra.mxu3 %v66_v57 }
  0x51   :  { %127 = vmatmul.f32.gmra.mxu0 %v19_v31  ;;  %175 = vmatmul.f32.gmra.mxu1 %v35_v32 }
  0x53   :  { %223 = vmatmul.f32.gmra.mxu2 %v51_v44  ;;  %271 = vmatmul.f32.gmra.mxu3 %v67_v61 }
  0x59   :  { %130 = vmatmul.f32.gmra.mxu0 %v20_v34  ;;  %178 = vmatmul.f32.gmra.mxu1 %v36_v35 }
  0x5b   :  { %226 = vmatmul.f32.gmra.mxu2 %v52_v48  ;;  %274 = vmatmul.f32.gmra.mxu3 %v68_v1 }
  0x61   :  { %133 = vmatmul.f32.gmra.mxu0 %v21_v38  ;;  %181 = vmatmul.f32.gmra.mxu1 %v37_v39 }
  0x63   :  { %229 = vmatmul.f32.gmra.mxu2 %v53_v52  ;;  %277 = vmatmul.f32.gmra.mxu3 %v69_v5 }
  0x69   :  { %136 = vmatmul.f32.gmra.mxu0 %v22_v42  ;;  %184 = vmatmul.f32.gmra.mxu1 %v38_v43 }
  0x6b   :  { %232 = vmatmul.f32.gmra.mxu2 %v54_v56  ;;  %280 = vmatmul.f32.gmra.mxu3 %v70_v9 }
  0x71   :  { %139 = vmatmul.f32.gmra.mxu0 %v23_v46  ;;  %187 = vmatmul.f32.gmra.mxu1 %v39_v47 }
  0x73   :  { %235 = vmatmul.f32.gmra.mxu2 %v55_v60  ;;  %283 = vmatmul.f32.gmra.mxu3 %v71_v17 }
  0x79   :  { %142 = vmatmul.f32.gmra.mxu0 %v24_v50  ;;  %190 = vmatmul.f32.gmra.mxu1 %v40_v51 }
  0x7b   :  { %238 = vmatmul.f32.gmra.mxu2 %v56_v0  ;;  %286 = vmatmul.f32.gmra.mxu3 %v72_v24 }
  0x81   :  { %145 = vmatmul.f32.gmra.mxu0 %v25_v54  ;;  %193 = vmatmul.f32.gmra.mxu1 %v41_v55 }
  0x83   :  { %241 = vmatmul.f32.gmra.mxu2 %v57_v4  ;;  %289 = vmatmul.f32.gmra.mxu3 %v73_v30 }
  0x89   :  { %148 = vmatmul.f32.gmra.mxu0 %v26_v58  ;;  %196 = vmatmul.f32.gmra.mxu1 %v42_v59 }
  0x8b   :  { %244 = vmatmul.f32.gmra.mxu2 %v58_v8  ;;  %292 = vmatmul.f32.gmra.mxu3 %v74_v37 }
  0x91   :  { %151 = vmatmul.f32.gmra.mxu0 %v27_v62  ;;  %199 = vmatmul.f32.gmra.mxu1 %v43_v63 }
  0x93   :  { %247 = vmatmul.f32.gmra.mxu2 %v59_v16  ;;  %295 = vmatmul.f32.gmra.mxu3 %v75_v41 }
  0x99   :  { %154 = vmatmul.f32.gmra.mxu0 %v28_v2  ;;  %202 = vmatmul.f32.gmra.mxu1 %v44_v3 }
  0x9b   :  { %250 = vmatmul.f32.gmra.mxu2 %v60_v23  ;;  %298 = vmatmul.f32.gmra.mxu3 %v76_v45 }
  0x9e   :  { %v110_v6 = vpop.f32.mrf.mxu0  ;;  %v857_v7 = vpop.f32.mrf.mxu1 }
  0x9f   :  { %302 = vst [vmem:[%s1366_s2] sm:$0xff] %v110_v6  ;;  %v435_v12 = vmul.f32 %v110_v6, %v110_v6 }
  0xa0   :  { %318 = vst [vmem:[%s1366_s2 + $0x80] sm:$0xff] %v857_v7 }
  0xa6   :  { %v113_v10 = vpop.f32.mrf.mxu0  ;;  %v872_v11 = vpop.f32.mrf.mxu1 }
  0xa7   :  { %303 = vst [vmem:[%s1366_s2 + $0x8] sm:$0xff] %v113_v10  ;;  %v366_v13 = vadd.f32 %v113_v10, %v110_v6  ;;  %v436_v14 = vmul.f32 %v113_v10, %v113_v10  ;;  %v921_v35 = vpop.f32.mrf.mxu2  ;;  %v997_v52 = vpop.f32.mrf.mxu3 }
  0xa8   :  { %319 = vst [vmem:[%s1366_s2 + $0x88] sm:$0xff] %v872_v11 }
  0xa9   :  { %v499_v15 = vadd.f32 %v436_v14, %v435_v12  ;;  %334 = vst [vmem:[%s1366_s2 + $0x100] sm:$0xff] %v921_v35 }
  0xaa   :  { %350 = vst [vmem:[%s1366_s2 + $0x180] sm:$0xff] %v997_v52 }
  0xae   :  { %v116_v18 = vpop.f32.mrf.mxu0  ;;  %v887_v19 = vpop.f32.mrf.mxu1 }
  0xaf   :  { %304 = vst [vmem:[%s1366_s2 + $0x10] sm:$0xff] %v116_v18  ;;  %v367_v20 = vadd.f32 %v366_v13, %v116_v18  ;;  %v437_v21 = vmul.f32 %v116_v18, %v116_v18  ;;  %v944_v40 = vpop.f32.mrf.mxu2  ;;  %v1018_v56 = vpop.f32.mrf.mxu3 }
  0xb0   :  { %320 = vst [vmem:[%s1366_s2 + $0x90] sm:$0xff] %v887_v19 }
  0xb1   :  { %v500_v22 = vadd.f32 %v499_v15, %v437_v21  ;;  %335 = vst [vmem:[%s1366_s2 + $0x108] sm:$0xff] %v944_v40 }
  0xb2   :  { %351 = vst [vmem:[%s1366_s2 + $0x188] sm:$0xff] %v1018_v56 }
  0xb6   :  { %v119_v25 = vpop.f32.mrf.mxu0  ;;  %v902_v26 = vpop.f32.mrf.mxu1 }
  0xb7   :  { %305 = vst [vmem:[%s1366_s2 + $0x18] sm:$0xff] %v119_v25  ;;  %v368_v27 = vadd.f32 %v367_v20, %v119_v25  ;;  %v438_v28 = vmul.f32 %v119_v25, %v119_v25  ;;  %v962_v44 = vpop.f32.mrf.mxu2  ;;  %v1039_v60 = vpop.f32.mrf.mxu3 }
  0xb8   :  { %321 = vst [vmem:[%s1366_s2 + $0x98] sm:$0xff] %v902_v26 }
  0xb9   :  { %v501_v29 = vadd.f32 %v500_v22, %v438_v28  ;;  %336 = vst [vmem:[%s1366_s2 + $0x110] sm:$0xff] %v962_v44 }
  0xba   :  { %352 = vst [vmem:[%s1366_s2 + $0x190] sm:$0xff] %v1039_v60 }
  0xbe   :  { %v122_v31 = vpop.f32.mrf.mxu0  ;;  %v914_v32 = vpop.f32.mrf.mxu1 }
  0xbf   :  { %306 = vst [vmem:[%s1366_s2 + $0x20] sm:$0xff] %v122_v31  ;;  %v919_v33 = vadd.f32 %v368_v27, %v122_v31  ;;  %v439_v34 = vmul.f32 %v122_v31, %v122_v31  ;;  %v980_v48 = vpop.f32.mrf.mxu2  ;;  %v1060_v0 = vpop.f32.mrf.mxu3 }
  0xc0   :  { %322 = vst [vmem:[%s1366_s2 + $0xa0] sm:$0xff] %v914_v32 }
  0xc1   :  { %v927_v36 = vadd.f32 %v501_v29, %v439_v34  ;;  %337 = vst [vmem:[%s1366_s2 + $0x118] sm:$0xff] %v980_v48 }
  0xc2   :  { %353 = vst [vmem:[%s1366_s2 + $0x198] sm:$0xff] %v1060_v0 }
  0xc6   :  { %v936_v38 = vpop.f32.mrf.mxu0  ;;  %v938_v39 = vpop.f32.mrf.mxu1 }
  0xc7   :  { %307 = vst [vmem:[%s1366_s2 + $0x28] sm:$0xff] %v936_v38  ;;  %v995_v51 = vpop.f32.mrf.mxu2  ;;  %v1081_v4 = vpop.f32.mrf.mxu3  ;;  %v440_v5 = vmul.f32 %v936_v38, %v936_v38  ;;  %v370_v6 = vadd.f32 %v919_v33, %v936_v38 }
  0xc8   :  { %323 = vst [vmem:[%s1366_s2 + $0xa8] sm:$0xff] %v938_v39 }
  0xc9   :  { %338 = vst [vmem:[%s1366_s2 + $0x120] sm:$0xff] %v995_v51  ;;  %v503_v9 = vadd.f32 %v927_v36, %v440_v5 }
  0xca   :  { %354 = vst [vmem:[%s1366_s2 + $0x1a0] sm:$0xff] %v1081_v4 }
  0xce   :  { %v128_v42 = vpop.f32.mrf.mxu0  ;;  %v957_v43 = vpop.f32.mrf.mxu1 }
  0xcf   :  { %308 = vst [vmem:[%s1366_s2 + $0x30] sm:$0xff] %v128_v42  ;;  %v1016_v55 = vpop.f32.mrf.mxu2  ;;  %v441_v8 = vmul.f32 %v128_v42, %v128_v42  ;;  %v371_v10 = vadd.f32 %v370_v6, %v128_v42  ;;  %v1107_v20 = vpop.f32.mrf.mxu3 }
  0xd0   :  { %324 = vst [vmem:[%s1366_s2 + $0xb0] sm:$0xff] %v957_v43 }
  0xd1   :  { %339 = vst [vmem:[%s1366_s2 + $0x128] sm:$0xff] %v1016_v55  ;;  %v504_v15 = vadd.f32 %v503_v9, %v441_v8 }
  0xd2   :  { %355 = vst [vmem:[%s1366_s2 + $0x1a8] sm:$0xff] %v1107_v20 }
  0xd6   :  { %v131_v46 = vpop.f32.mrf.mxu0  ;;  %v975_v47 = vpop.f32.mrf.mxu1 }
  0xd7   :  { %309 = vst [vmem:[%s1366_s2 + $0x38] sm:$0xff] %v131_v46  ;;  %v1037_v59 = vpop.f32.mrf.mxu2  ;;  %v442_v12 = vmul.f32 %v131_v46, %v131_v46  ;;  %v372_v16 = vadd.f32 %v371_v10, %v131_v46  ;;  %v1128_v41 = vpop.f32.mrf.mxu3 }
  0xd8   :  { %325 = vst [vmem:[%s1366_s2 + $0xb8] sm:$0xff] %v975_v47 }
  0xd9   :  { %340 = vst [vmem:[%s1366_s2 + $0x130] sm:$0xff] %v1037_v59  ;;  %v505_v21 = vadd.f32 %v504_v15, %v442_v12 }
  0xda   :  { %356 = vst [vmem:[%s1366_s2 + $0x1b0] sm:$0xff] %v1128_v41 }
  0xde   :  { %v134_v49 = vpop.f32.mrf.mxu0  ;;  %v990_v50 = vpop.f32.mrf.mxu1 }
  0xdf   :  { %310 = vst [vmem:[%s1366_s2 + $0x40] sm:$0xff] %v134_v49  ;;  %v1058_v63 = vpop.f32.mrf.mxu2  ;;  %v443_v17 = vmul.f32 %v134_v49, %v134_v49  ;;  %v373_v22 = vadd.f32 %v372_v16, %v134_v49  ;;  %v1149_v15 = vpop.f32.mrf.mxu3 }
  0xe0   :  { %326 = vst [vmem:[%s1366_s2 + $0xc0] sm:$0xff] %v990_v50 }
  0xe1   :  { %341 = vst [vmem:[%s1366_s2 + $0x138] sm:$0xff] %v1058_v63  ;;  %v506_v24 = vadd.f32 %v505_v21, %v443_v17  ;;  %v452_v21 = vmul.f32 %v872_v11, %v872_v11 }
  0xe2   :  { %357 = vst [vmem:[%s1366_s2 + $0x1b8] sm:$0xff] %v1149_v15 }
  0xe6   :  { %v137_v53 = vpop.f32.mrf.mxu0  ;;  %v1011_v54 = vpop.f32.mrf.mxu1 }
  0xe7   :  { %311 = vst [vmem:[%s1366_s2 + $0x48] sm:$0xff] %v137_v53  ;;  %v1079_v3 = vpop.f32.mrf.mxu2  ;;  %v444_v23 = vmul.f32 %v137_v53, %v137_v53  ;;  %v374_v25 = vadd.f32 %v373_v22, %v137_v53 }
  0xe8   :  { %327 = vst [vmem:[%s1366_s2 + $0xc8] sm:$0xff] %v1011_v54 }
  0xe9   :  { %342 = vst [vmem:[%s1366_s2 + $0x140] sm:$0xff] %v1079_v3  ;;  %v507_v28 = vadd.f32 %v506_v24, %v444_v23 }
  0xee   :  { %v140_v57 = vpop.f32.mrf.mxu0  ;;  %v1032_v58 = vpop.f32.mrf.mxu1 }
  0xef   :  { %312 = vst [vmem:[%s1366_s2 + $0x50] sm:$0xff] %v140_v57  ;;  %v1105_v18 = vpop.f32.mrf.mxu2  ;;  %v445_v27 = vmul.f32 %v140_v57, %v140_v57  ;;  %v375_v29 = vadd.f32 %v374_v25, %v140_v57 }
  0xf0   :  { %328 = vst [vmem:[%s1366_s2 + $0xd0] sm:$0xff] %v1032_v58 }
  0xf1   :  { %343 = vst [vmem:[%s1366_s2 + $0x148] sm:$0xff] %v1105_v18  ;;  %v508_v34 = vadd.f32 %v507_v28, %v445_v27  ;;  %v454_v27 = vmul.f32 %v902_v26, %v902_v26 }
  0xf6   :  { %v143_v61 = vpop.f32.mrf.mxu0  ;;  %v1053_v62 = vpop.f32.mrf.mxu1 }
  0xf7   :  { %313 = vst [vmem:[%s1366_s2 + $0x58] sm:$0xff] %v143_v61  ;;  %v446_v30 = vmul.f32 %v143_v61, %v143_v61  ;;  %v376_v36 = vadd.f32 %v375_v29, %v143_v61  ;;  %v1126_v38 = vpop.f32.mrf.mxu2 }
  0xf8   :  { %329 = vst [vmem:[%s1366_s2 + $0xd8] sm:$0xff] %v1053_v62 }
  0xf9   :  { %v509_v42 = vadd.f32 %v508_v34, %v446_v30  ;;  %344 = vst [vmem:[%s1366_s2 + $0x150] sm:$0xff] %v1126_v38 }
  0xfe   :  { %v146_v1 = vpop.f32.mrf.mxu0  ;;  %v1074_v2 = vpop.f32.mrf.mxu1 }
  0xff   :  { %314 = vst [vmem:[%s1366_s2 + $0x60] sm:$0xff] %v146_v1  ;;  %v447_v37 = vmul.f32 %v146_v1, %v146_v1  ;;  %v377_v45 = vadd.f32 %v376_v36, %v146_v1  ;;  %v1147_v12 = vpop.f32.mrf.mxu2 }
 0x100   :  { %330 = vst [vmem:[%s1366_s2 + $0xe0] sm:$0xff] %v1074_v2 }
 0x101   :  { %v510_v49 = vadd.f32 %v509_v42, %v447_v37  ;;  %345 = vst [vmem:[%s1366_s2 + $0x158] sm:$0xff] %v1147_v12  ;;  %v457_v42 = vmul.f32 %v957_v43, %v957_v43 }
 0x106   :  { %v149_v13 = vpop.f32.mrf.mxu0  ;;  %v1100_v14 = vpop.f32.mrf.mxu1 }
 0x107   :  { %315 = vst [vmem:[%s1366_s2 + $0x68] sm:$0xff] %v149_v13  ;;  %v448_v46 = vmul.f32 %v149_v13, %v149_v13  ;;  %v378_v53 = vadd.f32 %v377_v45, %v149_v13  ;;  %v451_v13 = vmul.f32 %v857_v7, %v857_v7  ;;  %v1175_v30 = vpop.f32.mrf.mxu2 }
 0x108   :  { %331 = vst [vmem:[%s1366_s2 + $0xe8] sm:$0xff] %v1100_v14 }
 0x109   :  { %v511_v61 = vadd.f32 %v510_v49, %v448_v46  ;;  %346 = vst [vmem:[%s1366_s2 + $0x160] sm:$0xff] %v1175_v30 }
 0x10e   :  { %v152_v31 = vpop.f32.mrf.mxu0  ;;  %v1121_v33 = vpop.f32.mrf.mxu1 }
 0x10f   :  { %316 = vst [vmem:[%s1366_s2 + $0x70] sm:$0xff] %v152_v31  ;;  %v449_v57 = vmul.f32 %v152_v31, %v152_v31  ;;  %v379_v5 = vadd.f32 %v378_v53, %v152_v31  ;;  %v1177_v31 = vpop.f32.mrf.mxu3 }
 0x110   :  { %332 = vst [vmem:[%s1366_s2 + $0xf0] sm:$0xff] %v1121_v33 }
 0x111   :  { %v512_v1 = vadd.f32 %v511_v61, %v449_v57  ;;  %358 = vst [vmem:[%s1366_s2 + $0x1c0] sm:$0xff] %v1177_v31  ;;  %v1199_v57 = vpop.f32.mrf.mxu2 }
 0x112   :  { %347 = vst [vmem:[%s1366_s2 + $0x168] sm:$0xff] %v1199_v57 }
 0x116   :  { %v155_v6 = vpop.f32.mrf.mxu0  ;;  %v1142_v8 = vpop.f32.mrf.mxu1 }
 0x117   :  { %317 = vst [vmem:[%s1366_s2 + $0x78] sm:$0xff] %v155_v6  ;;  %v380_v9 = vadd.f32 %v379_v5, %v155_v6  ;;  %v450_v10 = vmul.f32 %v155_v6, %v155_v6  ;;  %v1201_v61 = vpop.f32.mrf.mxu3 }
 0x118   :  { %333 = vst [vmem:[%s1366_s2 + $0xf8] sm:$0xff] %v1142_v8 }
 0x119   :  { %v381_v16 = vadd.f32 %v380_v9, %v857_v7  ;;  %v513_v17 = vadd.f32 %v512_v1, %v450_v10  ;;  %v453_v7 = vmul.f32 %v887_v19, %v887_v19  ;;  %359 = vst [vmem:[%s1366_s2 + $0x1c8] sm:$0xff] %v1201_v61  ;;  %v461_v9 = vmul.f32 %v1032_v58, %v1032_v58 }
 0x11b   :  { %v382_v22 = vadd.f32 %v381_v16, %v872_v11  ;;  %v514_v23 = vadd.f32 %v513_v17, %v451_v13  ;;  %v455_v11 = vmul.f32 %v914_v32, %v914_v32  ;;  %v462_v16 = vmul.f32 %v1053_v62, %v1053_v62 }
 0x11d   :  { %v383_v24 = vadd.f32 %v382_v22, %v887_v19  ;;  %v515_v25 = vadd.f32 %v514_v23, %v452_v21  ;;  %v1223_v21 = vpop.f32.mrf.mxu2 }
 0x11e   :  { %348 = vst [vmem:[%s1366_s2 + $0x170] sm:$0xff] %v1223_v21 }
 0x11f   :  { %v384_v28 = vadd.f32 %v383_v24, %v902_v26  ;;  %v516_v29 = vadd.f32 %v515_v25, %v453_v7  ;;  %v456_v26 = vmul.f32 %v938_v39, %v938_v39  ;;  %v1225_v22 = vpop.f32.mrf.mxu3  ;;  %v464_v24 = vmul.f32 %v1100_v14, %v1100_v14 }
 0x120   :  { %360 = vst [vmem:[%s1366_s2 + $0x1d0] sm:$0xff] %v1225_v22 }
 0x121   :  { %v385_v19 = vadd.f32 %v384_v28, %v914_v32  ;;  %v517_v34 = vadd.f32 %v516_v29, %v454_v27  ;;  %v458_v32 = vmul.f32 %v975_v47, %v975_v47  ;;  %v465_v28 = vmul.f32 %v1121_v33, %v1121_v33 }
 0x123   :  { %v386_v36 = vadd.f32 %v385_v19, %v938_v39  ;;  %v518_v37 = vadd.f32 %v517_v34, %v455_v11  ;;  %v459_v39 = vmul.f32 %v990_v50, %v990_v50 }
 0x125   :  { %v519_v45 = vadd.f32 %v518_v37, %v456_v26  ;;  %v387_v46 = vadd.f32 %v386_v36, %v957_v43  ;;  %v251_v19 = vpop.f32.mrf.mxu2 }
 0x126   :  { %349 = vst [vmem:[%s1366_s2 + $0x178] sm:$0xff] %v251_v19 }
 0x127   :  { %v388_v49 = vadd.f32 %v387_v46, %v975_v47  ;;  %v520_v53 = vadd.f32 %v519_v45, %v457_v42  ;;  %v460_v47 = vmul.f32 %v1011_v54, %v1011_v54  ;;  %v1247_v34 = vpop.f32.mrf.mxu3  ;;  %v469_v42 = vmul.f32 %v962_v44, %v962_v44 }
 0x128   :  { %361 = vst [vmem:[%s1366_s2 + $0x1d8] sm:$0xff] %v1247_v34 }
 0x129   :  { %v389_v43 = vadd.f32 %v388_v49, %v990_v50  ;;  %v521_v5 = vadd.f32 %v520_v53, %v458_v32 }
 0x12b   :  { %v390_v6 = vadd.f32 %v389_v43, %v1011_v54  ;;  %v522_v1 = vadd.f32 %v521_v5, %v459_v39  ;;  %v472_v43 = vmul.f32 %v1016_v55, %v1016_v55 }
 0x12d   :  { %v391_v10 = vadd.f32 %v390_v6, %v1032_v58  ;;  %v523_v13 = vadd.f32 %v522_v1, %v460_v47  ;;  %v463_v58 = vmul.f32 %v1074_v2, %v1074_v2  ;;  %v473_v47 = vmul.f32 %v1037_v59, %v1037_v59 }
 0x12f   :  { %v392_v50 = vadd.f32 %v391_v10, %v1053_v62  ;;  %v524_v17 = vadd.f32 %v523_v13, %v461_v9  ;;  %v1268_v53 = vpop.f32.mrf.mxu3  ;;  %v474_v9 = vmul.f32 %v1058_v63, %v1058_v63 }
 0x130   :  { %362 = vst [vmem:[%s1366_s2 + $0x1e0] sm:$0xff] %v1268_v53 }
 0x131   :  { %v525_v54 = vadd.f32 %v524_v17, %v462_v16  ;;  %v393_v23 = vadd.f32 %v392_v50, %v1074_v2  ;;  %v466_v2 = vmul.f32 %v1142_v8, %v1142_v8 }
 0x133   :  { %v526_v62 = vadd.f32 %v525_v54, %v463_v58  ;;  %v394_v7 = vadd.f32 %v393_v23, %v1100_v14  ;;  %v467_v14 = vmul.f32 %v921_v35, %v921_v35  ;;  %v477_v54 = vmul.f32 %v1126_v38, %v1126_v38 }
 0x135   :  { %v527_v25 = vadd.f32 %v526_v62, %v464_v24  ;;  %v395_v27 = vadd.f32 %v394_v7, %v1121_v33  ;;  %v468_v33 = vmul.f32 %v944_v40, %v944_v40  ;;  %v478_v7 = vmul.f32 %v1147_v12, %v1147_v12 }
 0x137   :  { %v528_v29 = vadd.f32 %v527_v25, %v465_v28  ;;  %v396_v11 = vadd.f32 %v395_v27, %v1142_v8  ;;  %v479_v27 = vmul.f32 %v1175_v30, %v1175_v30 }
 0x139   :  { %v397_v26 = vadd.f32 %v396_v11, %v921_v35  ;;  %v529_v36 = vadd.f32 %v528_v29, %v466_v2  ;;  %v470_v35 = vmul.f32 %v980_v48, %v980_v48  ;;  %v480_v2 = vmul.f32 %v1199_v57, %v1199_v57 }
 0x13a   :  { %v481_v11 = vmul.f32 %v1223_v21, %v1223_v21 }
 0x13b   :  { %v398_v8 = vadd.f32 %v397_v26, %v944_v40  ;;  %v530_v37 = vadd.f32 %v529_v36, %v467_v14  ;;  %v471_v40 = vmul.f32 %v995_v51, %v995_v51  ;;  %v482_v14 = vmul.f32 %v251_v19, %v251_v19 }
 0x13d   :  { %v399_v45 = vadd.f32 %v398_v8, %v962_v44  ;;  %v531_v46 = vadd.f32 %v530_v37, %v468_v33  ;;  %v484_v37 = vmul.f32 %v1018_v56, %v1018_v56 }
 0x13f   :  { %v400_v32 = vadd.f32 %v399_v45, %v980_v48  ;;  %v532_v49 = vadd.f32 %v531_v46, %v469_v42 }
 0x141   :  { %v401_v39 = vadd.f32 %v400_v32, %v995_v51  ;;  %v533_v44 = vadd.f32 %v532_v49, %v470_v35  ;;  %v1286_v51 = vpop.f32.mrf.mxu3  ;;  %v486_v35 = vmul.f32 %v1060_v0, %v1060_v0 }
 0x142   :  { %363 = vst [vmem:[%s1366_s2 + $0x1e8] sm:$0xff] %v1286_v51 }
 0x143   :  { %v402_v5 = vadd.f32 %v401_v39, %v1016_v55  ;;  %v534_v48 = vadd.f32 %v533_v44, %v471_v40  ;;  %v475_v55 = vmul.f32 %v1079_v3, %v1079_v3 }
 0x145   :  { %v535_v6 = vadd.f32 %v534_v48, %v472_v43  ;;  %v403_v1 = vadd.f32 %v402_v5, %v1037_v59  ;;  %v476_v59 = vmul.f32 %v1105_v18, %v1105_v18 }
 0x147   :  { %v404_v10 = vadd.f32 %v403_v1, %v1058_v63  ;;  %v536_v13 = vadd.f32 %v535_v6, %v473_v47 }
 0x149   :  { %v405_v50 = vadd.f32 %v404_v10, %v1079_v3  ;;  %v537_v16 = vadd.f32 %v536_v13, %v474_v9  ;;  %v296_v3 = vpop.f32.mrf.mxu3 }
 0x14a   :  { %364 = vst [vmem:[%s1366_s2 + $0x1f0] sm:$0xff] %v296_v3 }
 0x14b   :  { %v406_v17 = vadd.f32 %v405_v50, %v1105_v18  ;;  %v538_v63 = vadd.f32 %v537_v16, %v475_v55  ;;  %v494_v16 = vmul.f32 %v1247_v34, %v1247_v34 }
 0x14d   :  { %v407_v23 = vadd.f32 %v406_v17, %v1126_v38  ;;  %v539_v58 = vadd.f32 %v538_v63, %v476_v59  ;;  %v495_v63 = vmul.f32 %v1268_v53, %v1268_v53 }
 0x14f   :  { %v408_v62 = vadd.f32 %v407_v23, %v1147_v12  ;;  %v540_v24 = vadd.f32 %v539_v58, %v477_v54  ;;  %v496_v23 = vmul.f32 %v1286_v51, %v1286_v51 }
 0x151   :  { %v541_v25 = vadd.f32 %v540_v24, %v478_v7  ;;  %v409_v18 = vadd.f32 %v408_v62, %v1175_v30  ;;  %v299_v33 = vpop.f32.mrf.mxu3  ;;  %v483_v30 = vmul.f32 %v997_v52, %v997_v52  ;;  %v497_v62 = vmul.f32 %v296_v3, %v296_v3 }
 0x152   :  { %365 = vst [vmem:[%s1366_s2 + $0x1f8] sm:$0xff] %v299_v33  ;;  %v498_v7 = vmul.f32 %v299_v33, %v299_v33 }
 0x153   :  { %v542_v28 = vadd.f32 %v541_v25, %v479_v27  ;;  %v410_v38 = vadd.f32 %v409_v18, %v1199_v57 }
 0x155   :  { %v543_v29 = vadd.f32 %v542_v28, %v480_v2  ;;  %v411_v12 = vadd.f32 %v410_v38, %v1223_v21 }
 0x157   :  { %v544_v26 = vadd.f32 %v543_v29, %v481_v11  ;;  %v412_v36 = vadd.f32 %v411_v12, %v251_v19  ;;  %v485_v19 = vmul.f32 %v1039_v60, %v1039_v60 }
 0x159   :  { %v413_v8 = vadd.f32 %v412_v36, %v997_v52  ;;  %v545_v57 = vadd.f32 %v544_v26, %v482_v14  ;;  %v487_v52 = vmul.f32 %v1081_v4, %v1081_v4 }
 0x15b   :  { %v414_v42 = vadd.f32 %v413_v8, %v1018_v56  ;;  %v546_v21 = vadd.f32 %v545_v57, %v483_v30  ;;  %v488_v56 = vmul.f32 %v1107_v20, %v1107_v20 }
 0x15d   :  { %v415_v45 = vadd.f32 %v414_v42, %v1039_v60  ;;  %v547_v46 = vadd.f32 %v546_v21, %v484_v37  ;;  %v489_v60 = vmul.f32 %v1128_v41, %v1128_v41 }
 0x15f   :  { %v416_v32 = vadd.f32 %v415_v45, %v1060_v0  ;;  %v548_v49 = vadd.f32 %v547_v46, %v485_v19  ;;  %v490_v0 = vmul.f32 %v1149_v15, %v1149_v15 }
 0x161   :  { %v417_v40 = vadd.f32 %v416_v32, %v1081_v4  ;;  %v549_v39 = vadd.f32 %v548_v49, %v486_v35  ;;  %v491_v4 = vmul.f32 %v1177_v31, %v1177_v31 }
 0x163   :  { %v418_v44 = vadd.f32 %v417_v40, %v1107_v20  ;;  %v550_v43 = vadd.f32 %v549_v39, %v487_v52  ;;  %v492_v20 = vmul.f32 %v1201_v61, %v1201_v61 }
 0x165   :  { %v551_v5 = vadd.f32 %v550_v43, %v488_v56  ;;  %v419_v48 = vadd.f32 %v418_v44, %v1128_v41  ;;  %v493_v41 = vmul.f32 %v1225_v22, %v1225_v22 }
 0x167   :  { %v420_v47 = vadd.f32 %v419_v48, %v1149_v15  ;;  %v552_v6 = vadd.f32 %v551_v5, %v489_v60 }
 0x169   :  { %v421_v1 = vadd.f32 %v420_v47, %v1177_v31  ;;  %v553_v9 = vadd.f32 %v552_v6, %v490_v0 }
 0x16b   :  { %v422_v10 = vadd.f32 %v421_v1, %v1201_v61  ;;  %v554_v13 = vadd.f32 %v553_v9, %v491_v4 }
 0x16d   :  { %v423_v55 = vadd.f32 %v422_v10, %v1225_v22  ;;  %v555_v50 = vadd.f32 %v554_v13, %v492_v20 }
 0x16f   :  { %v424_v15 = vadd.f32 %v423_v55, %v1247_v34  ;;  %v556_v59 = vadd.f32 %v555_v50, %v493_v41 }
 0x171   :  { %v557_v31 = vadd.f32 %v556_v59, %v494_v16  ;;  %v425_v17 = vadd.f32 %v424_v15, %v1268_v53 }
 0x173   :  { %v558_v61 = vadd.f32 %v557_v31, %v495_v63  ;;  %v426_v54 = vadd.f32 %v425_v17, %v1286_v51 }
 0x175   :  { %v559_v22 = vadd.f32 %v558_v61, %v496_v23  ;;  %v427_v58 = vadd.f32 %v426_v54, %v296_v3 }
 0x177   :  { %v560_v24 = vadd.f32 %v559_v22, %v497_v62  ;;  %v428_v25 = vadd.f32 %v427_v58, %v299_v33 }
 0x179   :  { %v429_v34 = vrot.slane %v428_v25, 4  ;;  %v561_v18 = vadd.f32 %v560_v24, %v498_v7 }
 0x17b   :  { %v430_v27 = vadd.f32 %v429_v34, %v428_v25  ;;  %v562_v28 = vrot.slane %v561_v18, 4 }
 0x17d   :  { %v431_v38 = vrot.slane %v430_v27, 2  ;;  %v563_v2 = vadd.f32 %v562_v28, %v561_v18 }
 0x17f   :  { %v432_v29 = vadd.f32 %v431_v38, %v430_v27  ;;  %v564_v53 = vrot.slane %v563_v2, 2 }
 0x181   :  { %v433_v12 = vrot.slane %v432_v29, 1  ;;  %v565_v11 = vadd.f32 %v564_v53, %v563_v2 }
 0x183   :  { %v566_v14 = vrot.slane %v565_v11, 1  ;;  %v434_v26 = vadd.f32 %v433_v12, %v432_v29 }
 0x185   :  { %v567_v51 = vadd.f32 %v566_v14, %v565_v11 }
 0x187   :  { %v569_v36 = vsel %vm568_vm0, %v434_v26, %v567_v51 }
 0x188   :  { %570 = vst [vmem:[%s1367_s3] sm:$0x3] %v569_v36 }

// kernel: block_forward.7
= control target key start
LH: loop header
LB: loop body
LE: loop exit
PB: predicated region body
PF: predicated region fallthrough
CT: control target
= control target key end

     0   :  { %s1529_s12 = smov 0   ;;  %s2215_s0 = inlined_call_operand.vmem [shape: f32[1,2,18,18,128], index: 0, kind: input, shape index: {}]   ;;  %s2216_s1 = inlined_call_operand.vmem [shape: f32[9,128], index: 1, kind: input, shape index: {}]   ;;  %s2217_s2 = inlined_call_operand.vmem [shape: f32[2,16,16,128], index: 2, kind: output, shape index: {0}]   ;;  %s2218_s3 = inlined_call_operand.vmem [shape: f32[2,2,128], index: 3, kind: output, shape index: {1}]  }
   0x1 LB: > { %s1286_s13 = sadd.s32 4294967295, %s1507_s12   ;;  %p1290_p0 = scmp.ge.s32.totalorder %s1507_s12, 1  ;;  %s1507_s12 = sphi %s1529_s12, %s14_s12  }
   0x2   : > { %p140_p1 = scmp.lt.s32.totalorder %s1507_s12, 3 }
   0x4   : > { %p141_p2 = pnand %p1290_p0, %p140_p1 }
   0x5   : > { %p168_p3 = scmp.lt.s32.totalorder (!%p141_p2), %s1286_s13, 1 }
   0x6   : > { %144 = sbr.rel (%p141_p2) target bundleno = 200 (0xc8), region = 28 }
   0xb   : > { %v182_v0 = vld [vmem:[%s2216_s1] sm:$0xff]  ;;  %s2220_s13 = smov (!%p168_p3, %s1286_s13), 1  ;;  %v1576_v18 = vld [vmem:[%s2216_s1 + $0x8] ss:$0 sm:$0xff]  ;;  %vm1197_vm0 = vcmask 1040384  }
   0xc   : > { %s1490_s16 = smul.u32 432, %s2220_s13  ;;  %v1543_v1 = vperm.slane %v182_v0, 0  ;;  %v1545_v2 = vperm.slane %v182_v0, 1  ;;  %v1547_v3 = vperm.slane %v182_v0, 2  ;;  %v1554_v4 = vperm.slane %v182_v0, 3  ;;  %s1489_s22 = sshll.u32 %s2220_s13, 8 }
   0xd   : > { %v1556_v5 = vperm.slane %v182_v0, 4  ;;  %v1561_v9 = vperm.slane %v182_v0, 5  ;;  %v1563_v10 = vperm.slane %v182_v0, 6  ;;  %v1570_v16 = vperm.slane %v182_v0, 7  ;;  %s1643_s25 = scalar_lea.vmem %s2217_s2, %s1489_s22  ;;  %s1294_s28 = sshll.u32 %s2220_s13, 1 }
   0xe   : > { %s1552_s19 = scalar_lea.vmem %s2215_s0, %s1490_s16  ;;  %s181_s4 = scalar_lea.vmem %s2218_s3, %s1294_s28 }
   0xf   : > { %v184_v6 = vld [vmem:[%s1552_s19] sm:$0xff]  ;;  %v1295_v14 = vld [vmem:[%s1552_s19 + $0x18] sm:$0xff]  ;;  %v185_v22 = vld [vmem:[%s1552_s19 + $0x8] sm:$0xff] }
  0x10   : > { %v281_v7 = vld [vmem:[%s1552_s19 + $0x1] sm:$0xff]  ;;  %v217_v11 = vmul.f32 %v1543_v1, %v184_v6  ;;  %v1327_v15 = vld [vmem:[%s1552_s19 + $0x19] sm:$0xff]  ;;  %v509_v20 = vmul.f32 %v1295_v14, %v1554_v4  ;;  %v282_v23 = vld [vmem:[%s1552_s19 + $0x9] sm:$0xff]  ;;  %v219_v25 = vmul.f32 %v1295_v14, %v1543_v1  ;;  %v218_v28 = vmul.f32 %v1543_v1, %v185_v22 }
  0x11   : > { %v378_v8 = vld [vmem:[%s1552_s19 + $0x2] sm:$0xff]  ;;  %v314_v12 = vmul.f32 %v1545_v2, %v281_v7  ;;  %v1359_v17 = vld [vmem:[%s1552_s19 + $0x1a] sm:$0xff]  ;;  %v606_v21 = vmul.f32 %v1327_v15, %v1556_v5  ;;  %v379_v24 = vld [vmem:[%s1552_s19 + $0xa] sm:$0xff]  ;;  %v315_v29 = vmul.f32 %v1545_v2, %v282_v23  ;;  %v316_v32 = vmul.f32 %v1327_v15, %v1545_v2 }
  0x12   : > { %v411_v13 = vmul.f32 %v1547_v3, %v378_v8  ;;  %v1391_v26 = vld [vmem:[%s1552_s19 + $0x30] sm:$0xff]  ;;  %v412_v30 = vmul.f32 %v1547_v3, %v379_v24  ;;  %v1296_v31 = vld [vmem:[%s1552_s19 + $0x20] sm:$0xff]  ;;  %v703_v34 = vmul.f32 %v1359_v17, %v1561_v9  ;;  %v1392_v45 = vld [vmem:[%s1552_s19 + $0x38] sm:$0xff]  ;;  %v413_v48 = vmul.f32 %v1359_v17, %v1547_v3 }
  0x13   : > { %v346_v19 = vadd.f32 %v314_v12, %v217_v11  ;;  %v1423_v27 = vld [vmem:[%s1552_s19 + $0x31] sm:$0xff]  ;;  %v801_v35 = vmul.f32 %v1391_v26, %v1563_v10  ;;  %v1328_v38 = vld [vmem:[%s1552_s19 + $0x21] sm:$0xff]  ;;  %v347_v40 = vadd.f32 %v315_v29, %v218_v28  ;;  %v510_v41 = vmul.f32 %v1296_v31, %v1554_v4  ;;  %v1602_v46 = vld [vmem:[%s1552_s19 + $0x39] sm:$0xff] }
  0x14   : > { %v898_v36 = vmul.f32 %v1423_v27, %v1570_v16  ;;  %v1455_v37 = vld [vmem:[%s1552_s19 + $0x32] sm:$0xff]  ;;  %v607_v42 = vmul.f32 %v1328_v38, %v1556_v5  ;;  %v1360_v44 = vld [vmem:[%s1552_s19 + $0x22] sm:$0xff]  ;;  %v348_v47 = vadd.f32 %v316_v32, %v219_v25  ;;  %v511_v49 = vmul.f32 %v1391_v26, %v1554_v4  ;;  %v1456_v54 = vld [vmem:[%s1552_s19 + $0x3a] sm:$0xff] }
  0x15   : > { %v443_v33 = vadd.f32 %v411_v13, %v346_v19  ;;  %v995_v39 = vmul.f32 %v1576_v18, %v1455_v37  ;;  %v444_v50 = vadd.f32 %v412_v30, %v347_v40  ;;  %v704_v51 = vmul.f32 %v1360_v44, %v1561_v9  ;;  %v1614_v60 = vld [vmem:[%s1552_s19 + $0x48] sm:$0xff] }
  0x16   : > { %v802_v52 = vmul.f32 %v1392_v45, %v1563_v10  ;;  %v899_v53 = vmul.f32 %v1602_v46, %v1570_v16  ;;  %v996_v56 = vmul.f32 %v1576_v18, %v1456_v54  ;;  %v445_v57 = vadd.f32 %v413_v48, %v348_v47  ;;  %v1623_v11 = vld [vmem:[%s1552_s19 + $0x49] sm:$0xff] }
  0x17   : > { %v541_v43 = vadd.f32 %v509_v20, %v443_v33  ;;  %v608_v58 = vmul.f32 %v1423_v27, %v1556_v5  ;;  %v542_v59 = vadd.f32 %v510_v41, %v444_v50  ;;  %v220_v61 = vmul.f32 %v1296_v31, %v1543_v1  ;;  %v1628_v14 = vld [vmem:[%s1552_s19 + $0x4a] sm:$0xff] }
  0x18   : > { %v317_v62 = vmul.f32 %v1328_v38, %v1545_v2  ;;  %v414_v63 = vmul.f32 %v1360_v44, %v1547_v3  ;;  %v543_v6 = vadd.f32 %v511_v49, %v445_v57  ;;  %v705_v7 = vmul.f32 %v1455_v37, %v1561_v9  ;;  %v1649_v38 = vld [vmem:[%s1552_s19 + $0x51] sm:$0xff]  ;;  %v1665_v57 = vld [vmem:[%s1552_s19 + $0x60] sm:$0xff] }
  0x19   : > { %v638_v55 = vadd.f32 %v606_v21, %v541_v43  ;;  %v803_v8 = vmul.f32 %v1614_v60, %v1563_v10  ;;  %v639_v12 = vadd.f32 %v607_v42, %v542_v59  ;;  %v900_v13 = vmul.f32 %v1623_v11, %v1570_v16 }
  0x1a   : > { %v349_v15 = vadd.f32 %v317_v62, %v220_v61  ;;  %v512_v17 = vmul.f32 %v1392_v45, %v1554_v4  ;;  %v640_v20 = vadd.f32 %v608_v58, %v543_v6  ;;  %v997_v21 = vmul.f32 %v1576_v18, %v1628_v14 }
  0x1b   : > { %v735_v0 = vadd.f32 %v703_v34, %v638_v55  ;;  %v609_v22 = vmul.f32 %v1602_v46, %v1556_v5  ;;  %v736_v23 = vadd.f32 %v704_v51, %v639_v12  ;;  %v221_v25 = vmul.f32 %v1391_v26, %v1543_v1  ;;  %v1458_v55 = vld [vmem:[%s1552_s19 + $0x52] sm:$0xff] }
  0x1c   : > { %v446_v24 = vadd.f32 %v414_v63, %v349_v15  ;;  %v318_v28 = vmul.f32 %v1423_v27, %v1545_v2  ;;  %v737_v30 = vadd.f32 %v705_v7, %v640_v20  ;;  %v706_v31 = vmul.f32 %v1456_v54, %v1561_v9  ;;  %v1675_v7 = vld [vmem:[%s1552_s19 + $0x61] sm:$0xff] }
  0x1d   : > { %v833_v19 = vadd.f32 %v801_v35, %v735_v0  ;;  %v415_v32 = vmul.f32 %v1455_v37, %v1547_v3  ;;  %v834_v33 = vadd.f32 %v802_v52, %v736_v23  ;;  %v1646_v35 = vld [vmem:[%s1552_s19 + $0x50] sm:$0xff]  ;;  %v513_v27 = vmul.f32 %v1614_v60, %v1554_v4  ;;  %v1459_v20 = vld [vmem:[%s1552_s19 + $0x62] sm:$0xff] }
  0x1e   : > { %v544_v34 = vadd.f32 %v512_v17, %v446_v24  ;;  %v350_v26 = vadd.f32 %v318_v28, %v221_v25  ;;  %v835_v40 = vadd.f32 %v803_v8, %v737_v30  ;;  %v804_v37 = vmul.f32 %v1646_v35, %v1563_v10 }
  0x1f   : > { %v930_v29 = vadd.f32 %v898_v36, %v833_v19  ;;  %v901_v41 = vmul.f32 %v1649_v38, %v1570_v16  ;;  %v931_v42 = vadd.f32 %v899_v53, %v834_v33  ;;  %v610_v47 = vmul.f32 %v1623_v11, %v1556_v5 }
  0x20   : > { %v641_v43 = vadd.f32 %v609_v22, %v544_v34  ;;  %v447_v44 = vadd.f32 %v415_v32, %v350_v26  ;;  %v932_v49 = vadd.f32 %v900_v13, %v835_v40  ;;  %v222_v50 = vmul.f32 %v1392_v45, %v1543_v1  ;;  %v1428_v40 = vld [vmem:[%s1552_s19 + $0x69] sm:$0xff] }
  0x21   : > { %v1027_v36 = vadd.f32 %v995_v39, %v930_v29  ;;  %v707_v39 = vmul.f32 %v1628_v14, %v1561_v9  ;;  %v1028_v51 = vadd.f32 %v996_v56, %v931_v42  ;;  %v319_v58 = vmul.f32 %v1602_v46, %v1545_v2 }
  0x22   : > { %v738_v52 = vadd.f32 %v706_v31, %v641_v43  ;;  %v545_v53 = vadd.f32 %v513_v27, %v447_v44  ;;  %v1029_v59 = vadd.f32 %v997_v21, %v932_v49  ;;  %v998_v61 = vmul.f32 %v1576_v18, %v1458_v55 }
  0x23   : > { %1059 = vst [vmem:[%s1643_s25] sm:$0xff] %v1027_v36  ;;  %v1128_v48 = vmul.f32 %v1027_v36, %v1027_v36  ;;  %v805_v62 = vmul.f32 %v1665_v57, %v1563_v10  ;;  %v416_v63 = vmul.f32 %v1456_v54, %v1547_v3  ;;  %v1091_v45 = vadd.f32 %v1028_v51, %v1027_v36 }
  0x24   : > { %1060 = vst [vmem:[%s1643_s25 + $0x8] sm:$0xff] %v1028_v51  ;;  %v1129_v56 = vmul.f32 %v1028_v51, %v1028_v51  ;;  %v836_v0 = vadd.f32 %v804_v37, %v738_v52  ;;  %v642_v6 = vadd.f32 %v610_v47, %v545_v53  ;;  %v1130_v8 = vmul.f32 %v1029_v59, %v1029_v59  ;;  %v1460_v37 = vld [vmem:[%s1552_s19 + $0x6a] sm:$0xff] }
  0x25   : > { %1061 = vst [vmem:[%s1643_s25 + $0x10] sm:$0xff] %v1029_v59  ;;  %v902_v46 = vmul.f32 %v1675_v7, %v1570_v16  ;;  %v351_v12 = vadd.f32 %v319_v58, %v222_v50  ;;  %v514_v13 = vmul.f32 %v1646_v35, %v1554_v4  ;;  %v1092_v17 = vadd.f32 %v1091_v45, %v1029_v59 }
  0x26   : > { %v1160_v15 = vadd.f32 %v1129_v56, %v1128_v48  ;;  %v933_v54 = vadd.f32 %v901_v41, %v836_v0  ;;  %v739_v19 = vadd.f32 %v707_v39, %v642_v6  ;;  %v999_v21 = vmul.f32 %v1576_v18, %v1459_v20  ;;  %v1429_v56 = vld [vmem:[%s1552_s19 + $0x79] sm:$0xff] }
  0x27   : > { %v448_v22 = vadd.f32 %v416_v63, %v351_v12  ;;  %v611_v23 = vmul.f32 %v1649_v38, %v1556_v5  ;;  %v223_v24 = vmul.f32 %v1614_v60, %v1543_v1  ;;  %v320_v30 = vmul.f32 %v1623_v11, %v1545_v2  ;;  %v1396_v60 = vld [vmem:[%s1552_s19 + $0x68] sm:$0xff]  ;;  %v1461_v0 = vld [vmem:[%s1552_s19 + $0x7a] sm:$0xff] }
  0x28   : > { %v1161_v25 = vadd.f32 %v1160_v15, %v1130_v8  ;;  %v1030_v28 = vadd.f32 %v998_v61, %v933_v54  ;;  %v837_v29 = vadd.f32 %v805_v62, %v739_v19  ;;  %v708_v32 = vmul.f32 %v1458_v55, %v1561_v9  ;;  %v1397_v62 = vld [vmem:[%s1552_s19 + $0x78] sm:$0xff] }
  0x29   : > { %v546_v31 = vadd.f32 %v514_v13, %v448_v22  ;;  %v417_v33 = vmul.f32 %v1628_v14, %v1547_v3  ;;  %v515_v34 = vmul.f32 %v1665_v57, %v1554_v4  ;;  %v352_v41 = vadd.f32 %v320_v30, %v223_v24  ;;  %v1726_v22 = vld [vmem:[%s1552_s19 + $0x81] sm:$0xff] }
  0x2a   : > { %1062 = vst [vmem:[%s1643_s25 + $0x18] sm:$0xff] %v1030_v28  ;;  %v1093_v26 = vadd.f32 %v1092_v17, %v1030_v28  ;;  %v1131_v27 = vmul.f32 %v1030_v28, %v1030_v28  ;;  %v934_v36 = vadd.f32 %v902_v46, %v837_v29  ;;  %v806_v11 = vmul.f32 %v1396_v60, %v1563_v10  ;;  %v1736_v30 = vld [vmem:[%s1552_s19 + $0x82] sm:$0xff] }
  0x2b   : > { %v643_v42 = vadd.f32 %v611_v23, %v546_v31  ;;  %v903_v43 = vmul.f32 %v1428_v40, %v1570_v16  ;;  %v1000_v14 = vmul.f32 %v1576_v18, %v1460_v37  ;;  %v449_v48 = vadd.f32 %v417_v33, %v352_v41 }
  0x2c   : > { %v1162_v44 = vadd.f32 %v1161_v25, %v1131_v27  ;;  %v1031_v47 = vadd.f32 %v999_v21, %v934_v36  ;;  %v612_v49 = vmul.f32 %v1675_v7, %v1556_v5  ;;  %v224_v50 = vmul.f32 %v1646_v35, %v1543_v1  ;;  %v1723_v21 = vld [vmem:[%s1552_s19 + $0x80] sm:$0xff] }
  0x2d   : > { %v740_v39 = vadd.f32 %v708_v32, %v643_v42  ;;  %v321_v51 = vmul.f32 %v1649_v38, %v1545_v2  ;;  %v418_v52 = vmul.f32 %v1458_v55, %v1547_v3  ;;  %v547_v59 = vadd.f32 %v515_v34, %v449_v48 }
  0x2e   : > { %1063 = vst [vmem:[%s1643_s25 + $0x20] sm:$0xff] %v1031_v47  ;;  %v1094_v53 = vadd.f32 %v1093_v26, %v1031_v47  ;;  %v1132_v58 = vmul.f32 %v1031_v47, %v1031_v47  ;;  %v709_v61 = vmul.f32 %v1459_v20, %v1561_v9  ;;  %v807_v45 = vmul.f32 %v1397_v62, %v1563_v10 }
  0x2f   : > { %v838_v63 = vadd.f32 %v806_v11, %v740_v39  ;;  %v353_v35 = vadd.f32 %v321_v51, %v224_v50  ;;  %v516_v6 = vmul.f32 %v1396_v60, %v1554_v4  ;;  %v644_v8 = vadd.f32 %v612_v49, %v547_v59  ;;  %v1748_v39 = vld [vmem:[%s1552_s19 + $0x90] sm:$0xff] }
  0x30   : > { %v1163_v38 = vadd.f32 %v1162_v44, %v1132_v58  ;;  %v904_v55 = vmul.f32 %v1429_v56, %v1570_v16  ;;  %v1001_v46 = vmul.f32 %v1576_v18, %v1461_v0  ;;  %v613_v15 = vmul.f32 %v1428_v40, %v1556_v5  ;;  %v1751_v50 = vld [vmem:[%s1552_s19 + $0x91] sm:$0xff] }
  0x31   : > { %v935_v12 = vadd.f32 %v903_v43, %v838_v63  ;;  %v450_v13 = vadd.f32 %v418_v52, %v353_v35  ;;  %v225_v17 = vmul.f32 %v1665_v57, %v1543_v1  ;;  %v741_v54 = vadd.f32 %v709_v61, %v644_v8 }
  0x32   : > { %v710_v19 = vmul.f32 %v1460_v37, %v1561_v9  ;;  %v322_v23 = vmul.f32 %v1675_v7, %v1545_v2  ;;  %v419_v24 = vmul.f32 %v1459_v20, %v1547_v3  ;;  %v808_v29 = vmul.f32 %v1723_v21, %v1563_v10 }
  0x33   : > { %v1032_v25 = vadd.f32 %v1000_v14, %v935_v12  ;;  %v548_v28 = vadd.f32 %v516_v6, %v450_v13  ;;  %v905_v57 = vmul.f32 %v1726_v22, %v1570_v16  ;;  %v839_v31 = vadd.f32 %v807_v45, %v741_v54  ;;  %v1770_v54 = vld [vmem:[%s1552_s19 + $0x98] sm:$0xff] }
  0x34   : > { %v1002_v32 = vmul.f32 %v1576_v18, %v1736_v30  ;;  %v354_v33 = vadd.f32 %v322_v23, %v225_v17  ;;  %v517_v34 = vmul.f32 %v1397_v62, %v1554_v4  ;;  %v614_v27 = vmul.f32 %v1429_v56, %v1556_v5 }
  0x35   : > { %1064 = vst [vmem:[%s1643_s25 + $0x28] sm:$0xff] %v1032_v25  ;;  %v1095_v7 = vadd.f32 %v1094_v53, %v1032_v25  ;;  %v1133_v20 = vmul.f32 %v1032_v25, %v1032_v25  ;;  %v645_v26 = vadd.f32 %v613_v15, %v548_v28  ;;  %v936_v36 = vadd.f32 %v904_v55, %v839_v31 }
  0x36   : > { %v451_v41 = vadd.f32 %v419_v24, %v354_v33  ;;  %v226_v42 = vmul.f32 %v1396_v60, %v1543_v1  ;;  %v323_v11 = vmul.f32 %v1428_v40, %v1545_v2  ;;  %v711_v44 = vmul.f32 %v1461_v0, %v1561_v9 }
  0x37   : > { %v1164_v43 = vadd.f32 %v1163_v38, %v1133_v20  ;;  %v742_v14 = vadd.f32 %v710_v19, %v645_v26  ;;  %v420_v47 = vmul.f32 %v1460_v37, %v1547_v3  ;;  %v1033_v48 = vadd.f32 %v1001_v46, %v936_v36  ;;  %v1463_v46 = vld [vmem:[%s1552_s19 + $0x92] sm:$0xff]  ;;  %v1464_v26 = vld [vmem:[%s1552_s19 + $0x9a] sm:$0xff] }
  0x38   : > { %v549_v49 = vadd.f32 %v517_v34, %v451_v41  ;;  %v355_v51 = vadd.f32 %v323_v11, %v226_v42  ;;  %v518_v52 = vmul.f32 %v1723_v21, %v1554_v4  ;;  %v809_v40 = vmul.f32 %v1748_v39, %v1563_v10  ;;  %v1773_v19 = vld [vmem:[%s1552_s19 + $0x99] sm:$0xff] }
  0x39   : > { %v840_v60 = vadd.f32 %v808_v29, %v742_v14  ;;  %v906_v53 = vmul.f32 %v1751_v50, %v1570_v16  ;;  %v615_v37 = vmul.f32 %v1726_v22, %v1556_v5  ;;  %1065 = vst [vmem:[%s1643_s25 + $0x30] sm:$0xff] %v1033_v48  ;;  %v1096_v58 = vadd.f32 %v1095_v7, %v1033_v48  ;;  %v1401_v14 = vld [vmem:[%s1552_s19 + $0xa8] sm:$0xff] }
  0x3a   : > { %v1134_v59 = vmul.f32 %v1033_v48, %v1033_v48  ;;  %v646_v61 = vadd.f32 %v614_v27, %v549_v49  ;;  %v452_v63 = vadd.f32 %v420_v47, %v355_v51  ;;  %v712_v35 = vmul.f32 %v1736_v30, %v1561_v9  ;;  %v1433_v48 = vld [vmem:[%s1552_s19 + $0xa9] sm:$0xff] }
  0x3b   : > { %v937_v45 = vadd.f32 %v905_v57, %v840_v60  ;;  %v227_v6 = vmul.f32 %v1397_v62, %v1543_v1  ;;  %v324_v38 = vmul.f32 %v1429_v56, %v1545_v2  ;;  %v421_v13 = vmul.f32 %v1461_v0, %v1547_v3 }
  0x3c   : > { %v1165_v8 = vadd.f32 %v1164_v43, %v1134_v59  ;;  %v743_v55 = vadd.f32 %v711_v44, %v646_v61  ;;  %v550_v12 = vadd.f32 %v518_v52, %v452_v63  ;;  %v1003_v17 = vmul.f32 %v1576_v18, %v1463_v46  ;;  %v1465_v61 = vld [vmem:[%s1552_s19 + $0xaa] sm:$0xff] }
  0x3d   : > { %v1034_v15 = vadd.f32 %v1002_v32, %v937_v45  ;;  %v356_v23 = vadd.f32 %v324_v38, %v227_v6  ;;  %v519_v62 = vmul.f32 %v1748_v39, %v1554_v4  ;;  %v810_v25 = vmul.f32 %v1770_v54, %v1563_v10 }
  0x3e   : > { %v841_v56 = vadd.f32 %v809_v40, %v743_v55  ;;  %v647_v24 = vadd.f32 %v615_v37, %v550_v12  ;;  %v907_v0 = vmul.f32 %v1773_v19, %v1570_v16  ;;  %v616_v31 = vmul.f32 %v1751_v50, %v1556_v5 }
  0x3f   : > { %1066 = vst [vmem:[%s1643_s25 + $0x38] sm:$0xff] %v1034_v15  ;;  %v1097_v28 = vadd.f32 %v1096_v58, %v1034_v15  ;;  %v1135_v29 = vmul.f32 %v1034_v15, %v1034_v15  ;;  %v453_v57 = vadd.f32 %v421_v13, %v356_v23  ;;  %v713_v34 = vmul.f32 %v1463_v46, %v1561_v9  ;;  %v1402_v13 = vld [vmem:[%s1552_s19 + $0xb0] sm:$0xff] }
  0x40   : > { %v938_v32 = vadd.f32 %v906_v53, %v841_v56  ;;  %v744_v33 = vadd.f32 %v712_v35, %v647_v24  ;;  %v228_v7 = vmul.f32 %v1723_v21, %v1543_v1  ;;  %v325_v36 = vmul.f32 %v1726_v22, %v1545_v2 }
  0x41   : > { %v1166_v20 = vadd.f32 %v1165_v8, %v1135_v29  ;;  %v551_v27 = vadd.f32 %v519_v62, %v453_v57  ;;  %v422_v41 = vmul.f32 %v1736_v30, %v1547_v3  ;;  %v1004_v43 = vmul.f32 %v1576_v18, %v1464_v26  ;;  %v1466_v57 = vld [vmem:[%s1552_s19 + $0xb2] sm:$0xff] }
  0x42   : > { %v1035_v42 = vadd.f32 %v1003_v17, %v938_v32  ;;  %v842_v11 = vadd.f32 %v810_v25, %v744_v33  ;;  %v811_v47 = vmul.f32 %v1401_v14, %v1563_v10  ;;  %v357_v21 = vadd.f32 %v325_v36, %v228_v7 }
  0x43   : > { %v648_v44 = vadd.f32 %v616_v31, %v551_v27  ;;  %v520_v49 = vmul.f32 %v1770_v54, %v1554_v4  ;;  %v908_v30 = vmul.f32 %v1433_v48, %v1570_v16  ;;  %v617_v53 = vmul.f32 %v1773_v19, %v1556_v5 }
  0x44   : > { %1067 = vst [vmem:[%s1643_s25 + $0x40] sm:$0xff] %v1035_v42  ;;  %v1098_v51 = vadd.f32 %v1097_v28, %v1035_v42  ;;  %v1136_v22 = vmul.f32 %v1035_v42, %v1035_v42  ;;  %v939_v52 = vadd.f32 %v907_v0, %v842_v11  ;;  %v454_v40 = vadd.f32 %v422_v41, %v357_v21  ;;  %v1403_v41 = vld [vmem:[%s1552_s19 + $0xc0] sm:$0xff] }
  0x45   : > { %v745_v60 = vadd.f32 %v713_v34, %v648_v44  ;;  %v229_v37 = vmul.f32 %v1748_v39, %v1543_v1  ;;  %v326_v63 = vmul.f32 %v1751_v50, %v1545_v2  ;;  %v423_v45 = vmul.f32 %v1463_v46, %v1547_v3  ;;  %v1434_v39 = vld [vmem:[%s1552_s19 + $0xb1] sm:$0xff] }
  0x46   : > { %v1167_v58 = vadd.f32 %v1166_v20, %v1136_v22  ;;  %v1036_v59 = vadd.f32 %v1004_v43, %v939_v52  ;;  %v1005_v6 = vmul.f32 %v1576_v18, %v1465_v61  ;;  %v552_v38 = vadd.f32 %v520_v49, %v454_v40  ;;  %v1467_v52 = vld [vmem:[%s1552_s19 + $0xc2] sm:$0xff] }
  0x47   : > { %v843_v35 = vadd.f32 %v811_v47, %v745_v60  ;;  %v714_v8 = vmul.f32 %v1464_v26, %v1561_v9  ;;  %v358_v15 = vadd.f32 %v326_v63, %v229_v37  ;;  %v521_v17 = vmul.f32 %v1401_v14, %v1554_v4  ;;  %v1435_v47 = vld [vmem:[%s1552_s19 + $0xc1] sm:$0xff] }
  0x48   : > { %1068 = vst [vmem:[%s1643_s25 + $0x48] sm:$0xff] %v1036_v59  ;;  %v1099_v55 = vadd.f32 %v1098_v51, %v1036_v59  ;;  %v1137_v12 = vmul.f32 %v1036_v59, %v1036_v59  ;;  %v649_v62 = vadd.f32 %v617_v53, %v552_v38  ;;  %v812_v50 = vmul.f32 %v1402_v13, %v1563_v10  ;;  %v1404_v59 = vld [vmem:[%s1552_s19 + $0xc8] sm:$0xff] }
  0x49   : > { %v940_v23 = vadd.f32 %v908_v30, %v843_v35  ;;  %v909_v46 = vmul.f32 %v1434_v39, %v1570_v16  ;;  %v455_v24 = vadd.f32 %v423_v45, %v358_v15  ;;  %v618_v25 = vmul.f32 %v1433_v48, %v1556_v5  ;;  %v1841_v45 = vld [vmem:[%s1552_s19 + $0xc9] sm:$0xff] }
  0x4a   : > { %v1168_v56 = vadd.f32 %v1167_v58, %v1137_v12  ;;  %v230_v0 = vmul.f32 %v1770_v54, %v1543_v1  ;;  %v746_v29 = vadd.f32 %v714_v8, %v649_v62  ;;  %v327_v31 = vmul.f32 %v1773_v19, %v1545_v2  ;;  %v1468_v12 = vld [vmem:[%s1552_s19 + $0xca] sm:$0xff] }
  0x4b   : > { %v1037_v28 = vadd.f32 %v1005_v6, %v940_v23  ;;  %v424_v32 = vmul.f32 %v1464_v26, %v1547_v3  ;;  %v1006_v33 = vmul.f32 %v1576_v18, %v1466_v57  ;;  %v553_v34 = vadd.f32 %v521_v17, %v455_v24 }
  0x4c   : > { %v715_v7 = vmul.f32 %v1465_v61, %v1561_v9  ;;  %v522_v20 = vmul.f32 %v1402_v13, %v1554_v4  ;;  %v844_v36 = vadd.f32 %v812_v50, %v746_v29  ;;  %v359_v42 = vadd.f32 %v327_v31, %v230_v0  ;;  %v1855_v0 = vld [vmem:[%s1552_s19 + $0xd8] sm:$0xff] }
  0x4d   : > { %1069 = vst [vmem:[%s1643_s25 + $0x50] sm:$0xff] %v1037_v28  ;;  %v1100_v27 = vadd.f32 %v1099_v55, %v1037_v28  ;;  %v1138_v54 = vmul.f32 %v1037_v28, %v1037_v28  ;;  %v650_v11 = vadd.f32 %v618_v25, %v553_v34  ;;  %v813_v19 = vmul.f32 %v1403_v41, %v1563_v10  ;;  %v1858_v28 = vld [vmem:[%s1552_s19 + $0xd9] sm:$0xff] }
  0x4e   : > { %v619_v26 = vmul.f32 %v1434_v39, %v1556_v5  ;;  %v941_v44 = vadd.f32 %v909_v46, %v844_v36  ;;  %v456_v21 = vadd.f32 %v424_v32, %v359_v42  ;;  %v231_v49 = vmul.f32 %v1401_v14, %v1543_v1 }
  0x4f   : > { %v1169_v43 = vadd.f32 %v1168_v56, %v1138_v54  ;;  %v747_v51 = vadd.f32 %v715_v7, %v650_v11  ;;  %v910_v22 = vmul.f32 %v1435_v47, %v1570_v16  ;;  %v328_v30 = vmul.f32 %v1433_v48, %v1545_v2 }
  0x50   : > { %v425_v60 = vmul.f32 %v1465_v61, %v1547_v3  ;;  %v1038_v40 = vadd.f32 %v1006_v33, %v941_v44  ;;  %v1007_v53 = vmul.f32 %v1576_v18, %v1467_v52  ;;  %v554_v37 = vadd.f32 %v522_v20, %v456_v21 }
  0x51   : > { %v716_v58 = vmul.f32 %v1466_v57, %v1561_v9  ;;  %v845_v63 = vadd.f32 %v813_v19, %v747_v51  ;;  %v814_v14 = vmul.f32 %v1404_v59, %v1563_v10  ;;  %v360_v35 = vadd.f32 %v328_v30, %v231_v49  ;;  %v1469_v19 = vld [vmem:[%s1552_s19 + $0xda] sm:$0xff] }
  0x52   : > { %v523_v6 = vmul.f32 %v1403_v41, %v1554_v4  ;;  %1070 = vst [vmem:[%s1643_s25 + $0x58] sm:$0xff] %v1038_v40  ;;  %v1139_v48 = vmul.f32 %v1038_v40, %v1038_v40  ;;  %v651_v61 = vadd.f32 %v619_v26, %v554_v37  ;;  %v911_v38 = vmul.f32 %v1841_v45, %v1570_v16  ;;  %v1875_v51 = vld [vmem:[%s1552_s19 + $0xe0] sm:$0xff] }
  0x53   : > { %v620_v8 = vmul.f32 %v1435_v47, %v1556_v5  ;;  %v942_v55 = vadd.f32 %v910_v22, %v845_v63  ;;  %v457_v15 = vadd.f32 %v425_v60, %v360_v35  ;;  %v232_v17 = vmul.f32 %v1402_v13, %v1543_v1  ;;  %v1878_v22 = vld [vmem:[%s1552_s19 + $0xe1] sm:$0xff] }
  0x54   : > { %v329_v23 = vmul.f32 %v1434_v39, %v1545_v2  ;;  %v748_v62 = vadd.f32 %v716_v58, %v651_v61  ;;  %v1008_v50 = vmul.f32 %v1576_v18, %v1468_v12  ;;  %v717_v46 = vmul.f32 %v1467_v52, %v1561_v9  ;;  %v1470_v61 = vld [vmem:[%s1552_s19 + $0xe2] sm:$0xff] }
  0x55   : > { %v426_v56 = vmul.f32 %v1466_v57, %v1547_v3  ;;  %v1039_v24 = vadd.f32 %v1007_v53, %v942_v55  ;;  %v555_v25 = vadd.f32 %v523_v6, %v457_v15  ;;  %v524_v13 = vmul.f32 %v1404_v59, %v1554_v4  ;;  %v1893_v55 = vld [vmem:[%s1552_s19 + $0xf0] sm:$0xff] }
  0x56   : > { %v361_v29 = vadd.f32 %v329_v23, %v232_v17  ;;  %v1101_v31 = vadd.f32 %v1100_v27, %v1038_v40  ;;  %v846_v39 = vadd.f32 %v814_v14, %v748_v62  ;;  %v815_v32 = vmul.f32 %v1855_v0, %v1563_v10 }
  0x57   : > { %v912_v33 = vmul.f32 %v1858_v28, %v1570_v16  ;;  %v1170_v34 = vadd.f32 %v1169_v43, %v1139_v48  ;;  %1071 = vst [vmem:[%s1643_s25 + $0x60] sm:$0xff] %v1039_v24  ;;  %v652_v57 = vadd.f32 %v620_v8, %v555_v25  ;;  %v621_v20 = vmul.f32 %v1841_v45, %v1556_v5 }
  0x58   : > { %v458_v7 = vadd.f32 %v426_v56, %v361_v29  ;;  %v1140_v54 = vmul.f32 %v1039_v24, %v1039_v24  ;;  %v943_v36 = vadd.f32 %v911_v38, %v846_v39  ;;  %v233_v27 = vmul.f32 %v1403_v41, %v1543_v1 }
  0x59   : > { %v330_v42 = vmul.f32 %v1435_v47, %v1545_v2  ;;  %v749_v11 = vadd.f32 %v717_v46, %v652_v57  ;;  %v718_v43 = vmul.f32 %v1468_v12, %v1561_v9  ;;  %v427_v44 = vmul.f32 %v1467_v52, %v1547_v3 }
  0x5a   : > { %v556_v26 = vadd.f32 %v524_v13, %v458_v7  ;;  %v1040_v21 = vadd.f32 %v1008_v50, %v943_v36  ;;  %v1009_v49 = vmul.f32 %v1576_v18, %v1469_v19  ;;  %v525_v41 = vmul.f32 %v1855_v0, %v1554_v4 }
  0x5b   : > { %v362_v30 = vadd.f32 %v330_v42, %v233_v27  ;;  %v847_v47 = vadd.f32 %v815_v32, %v749_v11  ;;  %v816_v40 = vmul.f32 %v1875_v51, %v1563_v10  ;;  %v913_v52 = vmul.f32 %v1878_v22, %v1570_v16 }
  0x5c   : > { %v653_v60 = vadd.f32 %v621_v20, %v556_v26  ;;  %v1102_v53 = vadd.f32 %v1101_v31, %v1039_v24  ;;  %v1171_v37 = vadd.f32 %v1170_v34, %v1140_v54  ;;  %1072 = vst [vmem:[%s1643_s25 + $0x68] sm:$0xff] %v1040_v21  ;;  %v622_v63 = vmul.f32 %v1858_v28, %v1556_v5  ;;  %v1902_v24 = vld [vmem:[%s1552_s19 + $0xf1] sm:$0xff] }
  0x5d   : > { %v459_v58 = vadd.f32 %v427_v44, %v362_v30  ;;  %v1141_v14 = vmul.f32 %v1040_v21, %v1040_v21  ;;  %v944_v35 = vadd.f32 %v912_v33, %v847_v47  ;;  %v234_v48 = vmul.f32 %v1404_v59, %v1543_v1  ;;  %v1471_v33 = vld [vmem:[%s1552_s19 + $0xf2] sm:$0xff] }
  0x5e   : > { %v750_v6 = vadd.f32 %v718_v43, %v653_v60  ;;  %v719_v8 = vmul.f32 %v1469_v19, %v1561_v9  ;;  %v331_v15 = vmul.f32 %v1841_v45, %v1545_v2  ;;  %v428_v17 = vmul.f32 %v1468_v12, %v1547_v3  ;;  %v1916_v54 = vld [vmem:[%s1552_s19 + $0xf8] sm:$0xff] }
  0x5f   : > { %v557_v38 = vadd.f32 %v525_v41, %v459_v58  ;;  %v1041_v23 = vadd.f32 %v1009_v49, %v944_v35  ;;  %v1010_v50 = vmul.f32 %v1576_v18, %v1470_v61  ;;  %v817_v59 = vmul.f32 %v1893_v55, %v1563_v10  ;;  %v1440_v44 = vld [vmem:[%s1552_s19 + $0xf9] sm:$0xff] }
  0x60   : > { %v848_v62 = vadd.f32 %v816_v40, %v750_v6  ;;  %v1103_v46 = vadd.f32 %v1102_v53, %v1040_v21  ;;  %v363_v25 = vadd.f32 %v331_v15, %v234_v48  ;;  %v526_v29 = vmul.f32 %v1875_v51, %v1554_v4  ;;  %v1472_v49 = vld [vmem:[%s1552_s19 + $0xfa] sm:$0xff] }
  0x61   : > { %v654_v56 = vadd.f32 %v622_v63, %v557_v38  ;;  %v1172_v45 = vadd.f32 %v1171_v37, %v1141_v14  ;;  %1073 = vst [vmem:[%s1643_s25 + $0x70] sm:$0xff] %v1041_v23  ;;  %v914_v13 = vmul.f32 %v1902_v24, %v1570_v16  ;;  %v623_v31 = vmul.f32 %v1878_v22, %v1556_v5  ;;  %v1936_v14 = vld [vmem:[%s1552_s19 + $0x108] sm:$0xff] }
  0x62   : > { %v945_v12 = vadd.f32 %v913_v52, %v848_v62  ;;  %v1142_v39 = vmul.f32 %v1041_v23, %v1041_v23  ;;  %v460_v34 = vadd.f32 %v428_v17, %v363_v25  ;;  %v235_v57 = vmul.f32 %v1855_v0, %v1543_v1  ;;  %v1441_v17 = vld [vmem:[%s1552_s19 + $0x109] sm:$0xff] }
  0x63   : > { %v751_v32 = vadd.f32 %v719_v8, %v654_v56  ;;  %v1011_v20 = vmul.f32 %v1576_v18, %v1471_v33  ;;  %v332_v36 = vmul.f32 %v1858_v28, %v1545_v2  ;;  %v429_v27 = vmul.f32 %v1469_v19, %v1547_v3  ;;  %v1473_v62 = vld [vmem:[%s1552_s19 + $0x10a] sm:$0xff] }
  0x64   : > { %v1042_v7 = vadd.f32 %v1010_v50, %v945_v12  ;;  %v558_v11 = vadd.f32 %v526_v29, %v460_v34  ;;  %v720_v26 = vmul.f32 %v1470_v61, %v1561_v9  ;;  %v818_v43 = vmul.f32 %v1916_v54, %v1563_v10 }
  0x65   : > { %v849_v42 = vadd.f32 %v817_v59, %v751_v32  ;;  %v1104_v21 = vadd.f32 %v1103_v46, %v1041_v23  ;;  %v915_v0 = vmul.f32 %v1440_v44, %v1570_v16  ;;  %v364_v30 = vadd.f32 %v332_v36, %v235_v57 }
  0x66   : > { %1074 = vst [vmem:[%s1643_s25 + $0x78] sm:$0xff] %v1042_v7  ;;  %v527_v28 = vmul.f32 %v1893_v55, %v1554_v4  ;;  %v1173_v41 = vadd.f32 %v1172_v45, %v1142_v39  ;;  %v655_v47 = vadd.f32 %v623_v31, %v558_v11  ;;  %v1012_v60 = vmul.f32 %v1576_v18, %v1472_v49  ;;  %v1956_v39 = vld [vmem:[%s1552_s19 + $0x110] sm:$0xff] }
  0x67   : > { %v946_v19 = vadd.f32 %v914_v13, %v849_v42  ;;  %v1143_v40 = vmul.f32 %v1042_v7, %v1042_v7  ;;  %v461_v52 = vadd.f32 %v429_v27, %v364_v30  ;;  %v624_v53 = vmul.f32 %v1902_v24, %v1556_v5  ;;  %v1964_v27 = vld [vmem:[%s1552_s19 + $0x111] sm:$0xff] }
  0x68   : > { %v236_v37 = vmul.f32 %v1875_v51, %v1543_v1  ;;  %v752_v63 = vadd.f32 %v720_v26, %v655_v47  ;;  %v333_v35 = vmul.f32 %v1878_v22, %v1545_v2  ;;  %v430_v6 = vmul.f32 %v1470_v61, %v1547_v3  ;;  %v1474_v30 = vld [vmem:[%s1552_s19 + $0x112] sm:$0xff] }
  0x69   : > { %v1043_v58 = vadd.f32 %v1011_v20, %v946_v19  ;;  %v1105_v48 = vadd.f32 %v1104_v21, %v1042_v7  ;;  %v559_v38 = vadd.f32 %v527_v28, %v461_v52  ;;  %v721_v8 = vmul.f32 %v1471_v33, %v1561_v9 }
  0x6a   : > { %v819_v15 = vmul.f32 %v1936_v14, %v1563_v10  ;;  %v850_v51 = vadd.f32 %v818_v43, %v752_v63  ;;  %v916_v23 = vmul.f32 %v1441_v17, %v1570_v16  ;;  %v365_v50 = vadd.f32 %v333_v35, %v236_v37  ;;  %v1983_v63 = vld [vmem:[%s1552_s19 + $0x121] sm:$0xff] }
  0x6b   : > { %1075 = vst [vmem:[%s1643_s25 + $0x80] sm:$0xff] %v1043_v58  ;;  %v528_v22 = vmul.f32 %v1916_v54, %v1554_v4  ;;  %v1174_v59 = vadd.f32 %v1173_v41, %v1143_v40  ;;  %v656_v61 = vadd.f32 %v624_v53, %v559_v38  ;;  %v1013_v46 = vmul.f32 %v1576_v18, %v1473_v62 }
  0x6c   : > { %v625_v56 = vmul.f32 %v1440_v44, %v1556_v5  ;;  %v1144_v25 = vmul.f32 %v1043_v58, %v1043_v58  ;;  %v947_v29 = vadd.f32 %v915_v0, %v850_v51  ;;  %v462_v45 = vadd.f32 %v430_v6, %v365_v50 }
  0x6d   : > { %v237_v12 = vmul.f32 %v1893_v55, %v1543_v1  ;;  %v753_v13 = vadd.f32 %v721_v8, %v656_v61  ;;  %v722_v31 = vmul.f32 %v1472_v49, %v1561_v9  ;;  %v334_v32 = vmul.f32 %v1902_v24, %v1545_v2 }
  0x6e   : > { %v431_v34 = vmul.f32 %v1471_v33, %v1547_v3  ;;  %v1106_v57 = vadd.f32 %v1105_v48, %v1043_v58  ;;  %v1044_v7 = vadd.f32 %v1012_v60, %v947_v29  ;;  %v560_v20 = vadd.f32 %v528_v22, %v462_v45  ;;  %v1980_v58 = vld [vmem:[%s1552_s19 + $0x120] sm:$0xff] }
  0x6f   : > { %v820_v36 = vmul.f32 %v1956_v39, %v1563_v10  ;;  %v851_v55 = vadd.f32 %v819_v15, %v753_v13  ;;  %v917_v42 = vmul.f32 %v1964_v27, %v1570_v16  ;;  %v366_v11 = vadd.f32 %v334_v32, %v237_v12  ;;  %v2002_v13 = vld [vmem:[%s1552_s19 + $0x128] sm:$0xff] }
  0x70   : > { %v529_v26 = vmul.f32 %v1936_v14, %v1554_v4  ;;  %v1175_v24 = vadd.f32 %v1174_v59, %v1144_v25  ;;  %1076 = vst [vmem:[%s1643_s25 + $0x88] sm:$0xff] %v1044_v7  ;;  %v1145_v33 = vmul.f32 %v1044_v7, %v1044_v7  ;;  %v657_v43 = vadd.f32 %v625_v56, %v560_v20 }
  0x71   : > { %v626_v21 = vmul.f32 %v1441_v17, %v1556_v5  ;;  %v948_v0 = vadd.f32 %v916_v23, %v851_v55  ;;  %v463_v28 = vadd.f32 %v431_v34, %v366_v11  ;;  %v238_v41 = vmul.f32 %v1916_v54, %v1543_v1 }
  0x72   : > { %v335_v19 = vmul.f32 %v1440_v44, %v1545_v2  ;;  %v754_v47 = vadd.f32 %v722_v31, %v657_v43  ;;  %v1014_v60 = vmul.f32 %v1576_v18, %v1474_v30  ;;  %v723_v40 = vmul.f32 %v1473_v62, %v1561_v9  ;;  %v2005_v31 = vld [vmem:[%s1552_s19 + $0x129] sm:$0xff] }
  0x73   : > { %v432_v52 = vmul.f32 %v1472_v49, %v1547_v3  ;;  %v1045_v53 = vadd.f32 %v1013_v46, %v948_v0  ;;  %v561_v37 = vadd.f32 %v529_v26, %v463_v28  ;;  %v530_v54 = vmul.f32 %v1956_v39, %v1554_v4  ;;  %v1475_v46 = vld [vmem:[%s1552_s19 + $0x122] sm:$0xff] }
  0x74   : > { %v367_v35 = vadd.f32 %v335_v19, %v238_v41  ;;  %v1107_v44 = vadd.f32 %v1106_v57, %v1044_v7  ;;  %v852_v6 = vadd.f32 %v820_v36, %v754_v47  ;;  %v821_v48 = vmul.f32 %v1980_v58, %v1563_v10  ;;  %v2029_v47 = vld [vmem:[%s2216_s1 + $0x8] ss:$0 sm:$0xff] }
  0x75   : > { %v918_v38 = vmul.f32 %v1983_v63, %v1570_v16  ;;  %v1176_v49 = vadd.f32 %v1175_v24, %v1145_v33  ;;  %1077 = vst [vmem:[%s1643_s25 + $0x90] sm:$0xff] %v1045_v53  ;;  %v658_v8 = vadd.f32 %v626_v21, %v561_v37  ;;  %v627_v51 = vmul.f32 %v1964_v27, %v1556_v5  ;;  %v1476_v24 = vld [vmem:[%s1552_s19 + $0x12a] sm:$0xff]  ;;  %v2021_v21 = vld [vmem:[%s1552_s19 + $0x138] sm:$0xff] }
  0x76   : > { %v464_v15 = vadd.f32 %v432_v52, %v367_v35  ;;  %v1146_v23 = vmul.f32 %v1045_v53, %v1045_v53  ;;  %v949_v50 = vadd.f32 %v917_v42, %v852_v6  ;;  %v239_v22 = vmul.f32 %v1936_v14, %v1543_v1 }
  0x77   : > { %v336_v59 = vmul.f32 %v1441_v17, %v1545_v2  ;;  %v755_v61 = vadd.f32 %v723_v40, %v658_v8  ;;  %v724_v25 = vmul.f32 %v1474_v30, %v1561_v9  ;;  %v433_v29 = vmul.f32 %v1473_v62, %v1547_v3 }
  0x78   : > { %v562_v56 = vadd.f32 %v530_v54, %v464_v15  ;;  %v1046_v45 = vadd.f32 %v1014_v60, %v949_v50  ;;  %v1015_v12 = vmul.f32 %v1576_v18, %v1475_v46  ;;  %v531_v14 = vmul.f32 %v1980_v58, %v1554_v4 }
  0x79   : > { %v368_v32 = vadd.f32 %v336_v59, %v239_v22  ;;  %v853_v17 = vadd.f32 %v821_v48, %v755_v61  ;;  %v822_v57 = vmul.f32 %v2002_v13, %v1563_v10  ;;  %v919_v62 = vmul.f32 %v2005_v31, %v1570_v16 }
  0x7a   : > { %v659_v34 = vadd.f32 %v627_v51, %v562_v56  ;;  %v1108_v7 = vadd.f32 %v1107_v44, %v1045_v53  ;;  %v1177_v18 = vadd.f32 %v1176_v49, %v1146_v23  ;;  %1078 = vst [vmem:[%s1643_s25 + $0x98] sm:$0xff] %v1046_v45  ;;  %v628_v36 = vmul.f32 %v1983_v63, %v1556_v5  ;;  %v2035_v53 = vld [vmem:[%s1552_s19 + $0x139] sm:$0xff] }
  0x7b   : > { %v465_v20 = vadd.f32 %v433_v29, %v368_v32  ;;  %v1147_v55 = vmul.f32 %v1046_v45, %v1046_v45  ;;  %v950_v42 = vadd.f32 %v918_v38, %v853_v17  ;;  %v240_v26 = vmul.f32 %v1956_v39, %v1543_v1  ;;  %v1477_v38 = vld [vmem:[%s1552_s19 + $0x13a] sm:$0xff] }
  0x7c   : > { %v756_v11 = vadd.f32 %v724_v25, %v659_v34  ;;  %v725_v43 = vmul.f32 %v1475_v46, %v1561_v9  ;;  %v337_v0 = vmul.f32 %v1964_v27, %v1545_v2  ;;  %v434_v28 = vmul.f32 %v1474_v30, %v1547_v3  ;;  %v2049_v23 = vld [vmem:[%s1552_s19 + $0x140] sm:$0xff] }
  0x7d   : > { %v563_v33 = vadd.f32 %v531_v14, %v465_v20  ;;  %v1047_v41 = vadd.f32 %v1015_v12, %v950_v42  ;;  %v1016_v39 = vmul.f32 %v2029_v47, %v1476_v24  ;;  %v823_v60 = vmul.f32 %v2021_v21, %v1563_v10  ;;  %v1446_v29 = vld [vmem:[%s1552_s19 + $0x141] sm:$0xff] }
  0x7e   : > { %v854_v19 = vadd.f32 %v822_v57, %v756_v11  ;;  %v1109_v40 = vadd.f32 %v1108_v7, %v1046_v45  ;;  %v369_v27 = vadd.f32 %v337_v0, %v240_v26  ;;  %v532_v30 = vmul.f32 %v2002_v13, %v1554_v4  ;;  %v1478_v12 = vld [vmem:[%s1552_s19 + $0x142] sm:$0xff] }
  0x7f   : > { %v660_v52 = vadd.f32 %v628_v36, %v563_v33  ;;  %v1178_v37 = vadd.f32 %v1177_v18, %v1147_v55  ;;  %1079 = vst [vmem:[%s1643_s25 + $0xa0] sm:$0xff] %v1047_v41  ;;  %v920_v54 = vmul.f32 %v2035_v53, %v1570_v16  ;;  %v629_v44 = vmul.f32 %v2005_v31, %v1556_v5  ;;  %v2069_v55 = vld [vmem:[%s1552_s19 + $0x150] sm:$0xff] }
  0x80   : > { %v951_v35 = vadd.f32 %v919_v62, %v854_v19  ;;  %v1148_v6 = vmul.f32 %v1047_v41, %v1047_v41  ;;  %v466_v49 = vadd.f32 %v434_v28, %v369_v27  ;;  %v241_v8 = vmul.f32 %v1980_v58, %v1543_v1  ;;  %v1447_v28 = vld [vmem:[%s1552_s19 + $0x151] sm:$0xff] }
  0x81   : > { %v757_v48 = vadd.f32 %v725_v43, %v660_v52  ;;  %v1017_v51 = vmul.f32 %v2029_v47, %v1477_v38  ;;  %v338_v50 = vmul.f32 %v1983_v63, %v1545_v2  ;;  %v435_v22 = vmul.f32 %v1475_v46, %v1547_v3  ;;  %v1479_v19 = vld [vmem:[%s1552_s19 + $0x152] sm:$0xff] }
  0x82   : > { %v1048_v15 = vadd.f32 %v1016_v39, %v951_v35  ;;  %v564_v61 = vadd.f32 %v532_v30, %v466_v49  ;;  %v726_v56 = vmul.f32 %v1476_v24, %v1561_v9  ;;  %v824_v25 = vmul.f32 %v2049_v23, %v1563_v10 }
  0x83   : > { %v855_v59 = vadd.f32 %v823_v60, %v757_v48  ;;  %v1110_v45 = vadd.f32 %v1109_v40, %v1047_v41  ;;  %v921_v58 = vmul.f32 %v1446_v29, %v1570_v16  ;;  %v370_v32 = vadd.f32 %v338_v50, %v241_v8 }
  0x84   : > { %1080 = vst [vmem:[%s1643_s25 + $0xa8] sm:$0xff] %v1048_v15  ;;  %v533_v63 = vmul.f32 %v2021_v21, %v1554_v4  ;;  %v1179_v14 = vadd.f32 %v1178_v37, %v1148_v6  ;;  %v661_v17 = vadd.f32 %v629_v44, %v564_v61  ;;  %v1018_v34 = vmul.f32 %v2029_v47, %v1478_v12  ;;  %v2089_v6 = vld [vmem:[%s1552_s19 + $0x158] sm:$0xff] }
  0x85   : > { %v952_v46 = vadd.f32 %v920_v54, %v855_v59  ;;  %v1149_v57 = vmul.f32 %v1048_v15, %v1048_v15  ;;  %v467_v62 = vadd.f32 %v435_v22, %v370_v32  ;;  %v630_v7 = vmul.f32 %v2035_v53, %v1556_v5  ;;  %v2097_v22 = vld [vmem:[%s1552_s19 + $0x159] sm:$0xff] }
  0x86   : > { %v242_v18 = vmul.f32 %v2002_v13, %v1543_v1  ;;  %v758_v36 = vadd.f32 %v726_v56, %v661_v17  ;;  %v339_v42 = vmul.f32 %v2005_v31, %v1545_v2  ;;  %v436_v11 = vmul.f32 %v1476_v24, %v1547_v3  ;;  %v1480_v32 = vld [vmem:[%s1552_s19 + $0x15a] sm:$0xff] }
  0x87   : > { %v1049_v20 = vadd.f32 %v1017_v51, %v952_v46  ;;  %v1111_v26 = vadd.f32 %v1110_v45, %v1048_v15  ;;  %v565_v33 = vadd.f32 %v533_v63, %v467_v62  ;;  %v727_v43 = vmul.f32 %v1477_v38, %v1561_v9 }
  0x88   : > { %v825_v0 = vmul.f32 %v2069_v55, %v1563_v10  ;;  %v856_v13 = vadd.f32 %v824_v25, %v758_v36  ;;  %v922_v41 = vmul.f32 %v1447_v28, %v1570_v16  ;;  %v371_v39 = vadd.f32 %v339_v42, %v242_v18  ;;  %v2116_v36 = vld [vmem:[%s1552_s19 + $0x169] sm:$0xff] }
  0x89   : > { %1081 = vst [vmem:[%s1643_s25 + $0xb0] sm:$0xff] %v1049_v20  ;;  %v534_v31 = vmul.f32 %v2049_v23, %v1554_v4  ;;  %v1180_v60 = vadd.f32 %v1179_v14, %v1149_v57  ;;  %v662_v24 = vadd.f32 %v630_v7, %v565_v33  ;;  %v1019_v40 = vmul.f32 %v2029_v47, %v1479_v19 }
  0x8a   : > { %v631_v52 = vmul.f32 %v1446_v29, %v1556_v5  ;;  %v1150_v27 = vmul.f32 %v1049_v20, %v1049_v20  ;;  %v953_v30 = vadd.f32 %v921_v58, %v856_v13  ;;  %v468_v37 = vadd.f32 %v436_v11, %v371_v39 }
  0x8b   : > { %v243_v35 = vmul.f32 %v2021_v21, %v1543_v1  ;;  %v759_v54 = vadd.f32 %v727_v43, %v662_v24  ;;  %v728_v44 = vmul.f32 %v1478_v12, %v1561_v9  ;;  %v340_v48 = vmul.f32 %v2035_v53, %v1545_v2 }
  0x8c   : > { %v437_v49 = vmul.f32 %v1477_v38, %v1547_v3  ;;  %v1112_v8 = vadd.f32 %v1111_v26, %v1049_v20  ;;  %v1050_v15 = vadd.f32 %v1018_v34, %v953_v30  ;;  %v566_v51 = vadd.f32 %v534_v31, %v468_v37  ;;  %v2113_v20 = vld [vmem:[%s1552_s19 + $0x168] sm:$0xff] }
  0x8d   : > { %v826_v50 = vmul.f32 %v2089_v6, %v1563_v10  ;;  %v857_v21 = vadd.f32 %v825_v0, %v759_v54  ;;  %v923_v59 = vmul.f32 %v2097_v22, %v1570_v16  ;;  %v372_v61 = vadd.f32 %v340_v48, %v243_v35  ;;  %v2135_v54 = vld [vmem:[%s1552_s19 + $0x170] sm:$0xff] }
  0x8e   : > { %v535_v56 = vmul.f32 %v2069_v55, %v1554_v4  ;;  %v1181_v53 = vadd.f32 %v1180_v60, %v1150_v27  ;;  %1082 = vst [vmem:[%s1643_s25 + $0xb8] sm:$0xff] %v1050_v15  ;;  %v1151_v38 = vmul.f32 %v1050_v15, %v1050_v15  ;;  %v663_v25 = vadd.f32 %v631_v52, %v566_v51 }
  0x8f   : > { %v632_v45 = vmul.f32 %v1447_v28, %v1556_v5  ;;  %v954_v58 = vadd.f32 %v922_v41, %v857_v21  ;;  %v469_v63 = vadd.f32 %v437_v49, %v372_v61  ;;  %v244_v14 = vmul.f32 %v2049_v23, %v1543_v1 }
  0x90   : > { %v341_v46 = vmul.f32 %v1446_v29, %v1545_v2  ;;  %v760_v17 = vadd.f32 %v728_v44, %v663_v25  ;;  %v1020_v34 = vmul.f32 %v2029_v47, %v1480_v32  ;;  %v729_v57 = vmul.f32 %v1479_v19, %v1561_v9  ;;  %v2138_v44 = vld [vmem:[%s1552_s19 + $0x171] sm:$0xff] }
  0x91   : > { %v438_v62 = vmul.f32 %v1478_v12, %v1547_v3  ;;  %v1051_v7 = vadd.f32 %v1019_v40, %v954_v58  ;;  %v567_v18 = vadd.f32 %v535_v56, %v469_v63  ;;  %v536_v23 = vmul.f32 %v2089_v6, %v1554_v4  ;;  %v1481_v40 = vld [vmem:[%s1552_s19 + $0x16a] sm:$0xff]  ;;  %v1419_v58 = vld [vmem:[%s1552_s19 + $0x180] sm:$0xff] }
  0x92   : > { %v373_v42 = vadd.f32 %v341_v46, %v244_v14  ;;  %v1113_v29 = vadd.f32 %v1112_v8, %v1050_v15  ;;  %v858_v11 = vadd.f32 %v826_v50, %v760_v17  ;;  %v827_v26 = vmul.f32 %v2113_v20, %v1563_v10 }
  0x93   : > { %v924_v33 = vmul.f32 %v2116_v36, %v1570_v16  ;;  %v1182_v12 = vadd.f32 %v1181_v53, %v1151_v38  ;;  %1083 = vst [vmem:[%s1643_s25 + $0xc0] sm:$0xff] %v1051_v7  ;;  %v664_v43 = vadd.f32 %v632_v45, %v567_v18  ;;  %v633_v13 = vmul.f32 %v2097_v22, %v1556_v5  ;;  %v1482_v38 = vld [vmem:[%s1552_s19 + $0x172] sm:$0xff] }
  0x94   : > { %v470_v0 = vadd.f32 %v438_v62, %v373_v42  ;;  %v1152_v41 = vmul.f32 %v1051_v7, %v1051_v7  ;;  %v955_v39 = vadd.f32 %v923_v59, %v858_v11  ;;  %v245_v31 = vmul.f32 %v2069_v55, %v1543_v1 }
  0x95   : > { %v342_v60 = vmul.f32 %v1447_v28, %v1545_v2  ;;  %v761_v24 = vadd.f32 %v729_v57, %v664_v43  ;;  %v730_v27 = vmul.f32 %v1480_v32, %v1561_v9  ;;  %v439_v30 = vmul.f32 %v1479_v19, %v1547_v3 }
  0x96   : > { %v568_v52 = vadd.f32 %v536_v23, %v470_v0  ;;  %v1052_v37 = vadd.f32 %v1020_v34, %v955_v39  ;;  %v1021_v35 = vmul.f32 %v2029_v47, %v1481_v40  ;;  %v537_v55 = vmul.f32 %v2113_v20, %v1554_v4  ;;  %v1483_v0 = vld [vmem:[%s1552_s19 + $0x182] sm:$0xff] }
  0x97   : > { %v374_v48 = vadd.f32 %v342_v60, %v245_v31  ;;  %v859_v28 = vadd.f32 %v827_v26, %v761_v24  ;;  %v828_v8 = vmul.f32 %v2135_v54, %v1563_v10  ;;  %v925_v19 = vmul.f32 %v2138_v44, %v1570_v16 }
  0x98   : > { %v665_v49 = vadd.f32 %v633_v13, %v568_v52  ;;  %v1114_v15 = vadd.f32 %v1113_v29, %v1051_v7  ;;  %v1183_v51 = vadd.f32 %v1182_v12, %v1152_v41  ;;  %1084 = vst [vmem:[%s1643_s25 + $0xc8] sm:$0xff] %v1052_v37  ;;  %v634_v21 = vmul.f32 %v2116_v36, %v1556_v5  ;;  %v1451_v7 = vld [vmem:[%s1552_s19 + $0x181] sm:$0xff] }
  0x99   : > { %v471_v50 = vadd.f32 %v439_v30, %v374_v48  ;;  %v1153_v59 = vmul.f32 %v1052_v37, %v1052_v37  ;;  %v956_v61 = vadd.f32 %v924_v33, %v859_v28  ;;  %v246_v53 = vmul.f32 %v2089_v6, %v1543_v1  ;;  %v1420_v52 = vld [vmem:[%s1552_s19 + $0x188] sm:$0xff] }
  0x9a   : > { %v762_v56 = vadd.f32 %v730_v27, %v665_v49  ;;  %v731_v45 = vmul.f32 %v1481_v40, %v1561_v9  ;;  %v343_v63 = vmul.f32 %v2097_v22, %v1545_v2  ;;  %v440_v14 = vmul.f32 %v1480_v32, %v1547_v3  ;;  %v1452_v30 = vld [vmem:[%s1552_s19 + $0x189] sm:$0xff] }
  0x9b   : > { %v569_v25 = vadd.f32 %v537_v55, %v471_v50  ;;  %v1053_v46 = vadd.f32 %v1021_v35, %v956_v61  ;;  %v1022_v34 = vmul.f32 %v2029_v47, %v1482_v38  ;;  %v829_v57 = vmul.f32 %v1419_v58, %v1563_v10  ;;  %v1484_v50 = vld [vmem:[%s1552_s19 + $0x18a] sm:$0xff] }
  0x9c   : > { %v860_v17 = vadd.f32 %v828_v8, %v762_v56  ;;  %v1115_v62 = vadd.f32 %v1114_v15, %v1052_v37  ;;  %v375_v18 = vadd.f32 %v343_v63, %v246_v53  ;;  %v538_v42 = vmul.f32 %v2135_v54, %v1554_v4 }
  0x9d   : > { %v666_v6 = vadd.f32 %v634_v21, %v569_v25  ;;  %v1184_v23 = vadd.f32 %v1183_v51, %v1153_v59  ;;  %1085 = vst [vmem:[%s1643_s25 + $0xd0] sm:$0xff] %v1053_v46  ;;  %v926_v32 = vmul.f32 %v1451_v7, %v1570_v16  ;;  %v635_v29 = vmul.f32 %v2138_v44, %v1556_v5  ;;  %v1421_v21 = vld [vmem:[%s1552_s19 + $0x198] sm:$0xff] }
  0x9e   : > { %v957_v22 = vadd.f32 %v925_v19, %v860_v17  ;;  %v1154_v11 = vmul.f32 %v1053_v46, %v1053_v46  ;;  %v472_v33 = vadd.f32 %v440_v14, %v375_v18  ;;  %v247_v12 = vmul.f32 %v2113_v20, %v1543_v1 }
  0x9f   : > { %v763_v26 = vadd.f32 %v731_v45, %v666_v6  ;;  %v344_v13 = vmul.f32 %v2116_v36, %v1545_v2  ;;  %v441_v41 = vmul.f32 %v1481_v40, %v1547_v3  ;;  %v1023_v31 = vmul.f32 %v2029_v47, %v1483_v0  ;;  %v1422_v6 = vld [vmem:[%s1552_s19 + $0x1a0] sm:$0xff] }
  0xa0   : > { %v1054_v43 = vadd.f32 %v1022_v34, %v957_v22  ;;  %v570_v60 = vadd.f32 %v538_v42, %v472_v33  ;;  %v732_v24 = vmul.f32 %v1482_v38, %v1561_v9  ;;  %v1116_v27 = vadd.f32 %v1115_v62, %v1053_v46 }
  0xa1   : > { %v861_v39 = vadd.f32 %v829_v57, %v763_v26  ;;  %v830_v20 = vmul.f32 %v1420_v52, %v1563_v10  ;;  %v376_v37 = vadd.f32 %v344_v13, %v247_v12  ;;  %v539_v35 = vmul.f32 %v1419_v58, %v1554_v4  ;;  %v1486_v12 = vld [vmem:[%s1552_s19 + $0x1a2] sm:$0xff] }
  0xa2   : > { %1086 = vst [vmem:[%s1643_s25 + $0xd8] sm:$0xff] %v1054_v43  ;;  %v1185_v36 = vadd.f32 %v1184_v23, %v1154_v11  ;;  %v667_v40 = vadd.f32 %v635_v29, %v570_v60  ;;  %v927_v55 = vmul.f32 %v1452_v30, %v1570_v16  ;;  %v1155_v28 = vmul.f32 %v1054_v43, %v1054_v43 }
  0xa3   : > { %v958_v48 = vadd.f32 %v926_v32, %v861_v39  ;;  %v473_v49 = vadd.f32 %v441_v41, %v376_v37  ;;  %v636_v8 = vmul.f32 %v1451_v7, %v1556_v5  ;;  %v248_v19 = vmul.f32 %v2135_v54, %v1543_v1  ;;  %v1453_v1 = vld [vmem:[%s1552_s19 + $0x199] sm:$0xff]  ;;  %v1454_v32 = vld [vmem:[%s1552_s19 + $0x1a1] sm:$0xff] }
  0xa4   : > { %v764_v51 = vadd.f32 %v732_v24, %v667_v40  ;;  %v345_v59 = vmul.f32 %v2138_v44, %v1545_v2  ;;  %v442_v61 = vmul.f32 %v1482_v38, %v1547_v3  ;;  %v1024_v56 = vmul.f32 %v2029_v47, %v1484_v50  ;;  %v1485_v38 = vld [vmem:[%s1552_s19 + $0x19a] sm:$0xff] }
  0xa5   : > { %v1055_v15 = vadd.f32 %v1023_v31, %v958_v48  ;;  %v571_v53 = vadd.f32 %v539_v35, %v473_v49  ;;  %v733_v25 = vmul.f32 %v1483_v0, %v1561_v9  ;;  %v1117_v45 = vadd.f32 %v1116_v27, %v1054_v43 }
  0xa6   : > { %v862_v58 = vadd.f32 %v830_v20, %v764_v51  ;;  %v377_v54 = vadd.f32 %v345_v59, %v248_v19  ;;  %v540_v63 = vmul.f32 %v1420_v52, %v1554_v4  ;;  %v1186_v14 = vadd.f32 %v1185_v36, %v1155_v28 }
  0xa7   : > { %1087 = vst [vmem:[%s1643_s25 + $0xe0] sm:$0xff] %v1055_v15  ;;  %v668_v46 = vadd.f32 %v636_v8, %v571_v53  ;;  %v831_v2 = vmul.f32 %v1421_v21, %v1563_v10  ;;  %v1156_v44 = vmul.f32 %v1055_v15, %v1055_v15  ;;  %v637_v34 = vmul.f32 %v1452_v30, %v1556_v5 }
  0xa8   : > { %v959_v3 = vadd.f32 %v927_v55, %v862_v58  ;;  %v474_v17 = vadd.f32 %v442_v61, %v377_v54  ;;  %v928_v62 = vmul.f32 %v1453_v1, %v1570_v16  ;;  %v1118_v7 = vadd.f32 %v1117_v45, %v1055_v15 }
  0xa9   : > { %v765_v57 = vadd.f32 %v733_v25, %v668_v46  ;;  %v734_v42 = vmul.f32 %v1484_v50, %v1561_v9  ;;  %v1025_v22 = vmul.f32 %v2029_v47, %v1485_v38  ;;  %v1187_v29 = vadd.f32 %v1186_v14, %v1156_v44 }
  0xaa   : > { %v1056_v18 = vadd.f32 %v1024_v56, %v959_v3  ;;  %v572_v4 = vadd.f32 %v540_v63, %v474_v17  ;;  %v832_v5 = vmul.f32 %v1422_v6, %v1563_v10  ;;  %v929_v13 = vmul.f32 %v1454_v32, %v1570_v16 }
  0xab   : > { %v863_v23 = vadd.f32 %v831_v2, %v765_v57  ;;  %v1026_v31 = vmul.f32 %v2029_v47, %v1486_v12 }
  0xac   : > { %1088 = vst [vmem:[%s1643_s25 + $0xe8] sm:$0xff] %v1056_v18  ;;  %v1157_v11 = vmul.f32 %v1056_v18, %v1056_v18  ;;  %v669_v26 = vadd.f32 %v637_v34, %v572_v4  ;;  %v1119_v43 = vadd.f32 %v1118_v7, %v1056_v18 }
  0xad   : > { %v960_v33 = vadd.f32 %v928_v62, %v863_v23 }
  0xae   : > { %v766_v0 = vadd.f32 %v734_v42, %v669_v26  ;;  %v1188_v9 = vadd.f32 %v1187_v29, %v1157_v11 }
  0xaf   : > { %v1057_v41 = vadd.f32 %v1025_v22, %v960_v33 }
  0xb0   : > { %v864_v39 = vadd.f32 %v832_v5, %v766_v0 }
  0xb1   : > { %1089 = vst [vmem:[%s1643_s25 + $0xf0] sm:$0xff] %v1057_v41  ;;  %v1158_v60 = vmul.f32 %v1057_v41, %v1057_v41  ;;  %v1120_v24 = vadd.f32 %v1119_v43, %v1057_v41 }
  0xb2   : > { %v961_v52 = vadd.f32 %v929_v13, %v864_v39 }
  0xb3   : > { %v1189_v27 = vadd.f32 %v1188_v9, %v1158_v60 }
  0xb4   : > { %v1058_v20 = vadd.f32 %v1026_v31, %v961_v52 }
  0xb6   : > { %1090 = vst [vmem:[%s1643_s25 + $0xf8] sm:$0xff] %v1058_v20  ;;  %v1121_v10 = vadd.f32 %v1120_v24, %v1058_v20  ;;  %v1159_v30 = vmul.f32 %v1058_v20, %v1058_v20 }
  0xb8   : > { %v1122_v37 = vrot.slane %v1121_v10, 4  ;;  %v1190_v35 = vadd.f32 %v1189_v27, %v1159_v30 }
  0xba   : > { %v1123_v36 = vadd.f32 %v1122_v37, %v1121_v10  ;;  %v1191_v48 = vrot.slane %v1190_v35, 4 }
  0xbc   : > { %v1124_v16 = vrot.slane %v1123_v36, 2  ;;  %v1192_v40 = vadd.f32 %v1191_v48, %v1190_v35 }
  0xbe   : > { %v1125_v55 = vadd.f32 %v1124_v16, %v1123_v36  ;;  %v1193_v28 = vrot.slane %v1192_v40, 2 }
  0xc0   : > { %v1126_v49 = vrot.slane %v1125_v55, 1  ;;  %v1194_v47 = vadd.f32 %v1193_v28, %v1192_v40 }
  0xc2   : > { %v1127_v8 = vadd.f32 %v1126_v49, %v1125_v55  ;;  %v1195_v19 = vrot.slane %v1194_v47, 1 }
  0xc4   : > { %v1196_v15 = vadd.f32 %v1195_v19, %v1194_v47 }
  0xc6   : > { %v1198_v51 = vsel %vm1197_vm0, %v1127_v8, %v1196_v15 }
  0xc7   : > { %1199 = vst [vmem:[%s181_s4] sm:$0x3] %v1198_v51 }
  0xc8 PF: > { %s14_s12 = sadd.s32 1, %s1507_s12  }
  0xc9   : > { %p11_p4 = scmp.ge.s32.totalorder %s14_s12, 4  }
  0xcb   :  { %13 = sbr.rel (!%p11_p4) target bundleno = 1 (0x1), region = 72 }

// kernel: block_forward.8
= control target key start
LH: loop header
LB: loop body
LE: loop exit
PB: predicated region body
PF: predicated region fallthrough
CT: control target
= control target key end

     0   :  { %vm782_vm0 = vcmask 1040384   ;;  %s3039_s3 = inlined_call_operand.vmem [shape: f32[128,128], index: 3, kind: input, shape index: {}]   ;;  %s3040_s5 = inlined_call_operand.vmem [shape: f32[128,128], index: 5, kind: input, shape index: {}]   ;;  %s3041_s1 = inlined_call_operand.vmem [shape: f32[1,128], index: 1, kind: input, shape index: {}]   ;;  %s3042_s2 = inlined_call_operand.vmem [shape: f32[1,128], index: 2, kind: input, shape index: {}]   ;;  %s3043_s0 = inlined_call_operand.vmem [shape: f32[512,128], index: 0, kind: input, shape index: {}]   ;;  %s3044_s4 = inlined_call_operand.vmem [shape: f32[512,128], index: 4, kind: input, shape index: {}]   ;;  %s3045_s6 = inlined_call_operand.vmem [shape: f32[512,128], index: 6, kind: output, shape index: {0}]   ;;  %s3046_s7 = inlined_call_operand.vmem [shape: f32[512,128], index: 7, kind: output, shape index: {1}]   ;;  %s3047_s8 = inlined_call_operand.vmem [shape: f32[1,2,128], index: 8, kind: output, shape index: {2}]   ;;  %s3048_s9 = inlined_call_operand.vmem [shape: f32[1,2,128], index: 9, kind: output, shape index: {3}]  }
   0x1   :  { %v306_v0 = vld [vmem:[%s3039_s3 + $0x78] sm:$0xff]  ;;  %v305_v2 = vld [vmem:[%s3039_s3 + $0x70] sm:$0xff]  ;;  %v304_v4 = vld [vmem:[%s3039_s3 + $0x68] sm:$0xff] }
   0x2   :  { %v864_v1 = vld [vmem:[%s3040_s5 + $0x78] sm:$0xff]  ;;  %307 = vmatpush.msra.mxu0 %v306_v0  ;;  %v863_v3 = vld [vmem:[%s3040_s5 + $0x70] sm:$0xff]  ;;  %v862_v5 = vld [vmem:[%s3040_s5 + $0x68] sm:$0xff]  ;;  %1358 = vmatpush.msra.mxu2 %v306_v0 }
   0x3   :  { %865 = vmatpush.msra.mxu1 %v864_v1  ;;  %1374 = vmatpush.msra.mxu3 %v864_v1  ;;  %v303_v6 = vld [vmem:[%s3039_s3 + $0x60] sm:$0xff]  ;;  %v302_v8 = vld [vmem:[%s3039_s3 + $0x58] sm:$0xff]  ;;  %v301_v10 = vld [vmem:[%s3039_s3 + $0x50] sm:$0xff] }
   0x4   :  { %308 = vmatpush.msra.mxu0 %v305_v2  ;;  %v861_v7 = vld [vmem:[%s3040_s5 + $0x60] sm:$0xff]  ;;  %1359 = vmatpush.msra.mxu2 %v305_v2  ;;  %v860_v9 = vld [vmem:[%s3040_s5 + $0x58] sm:$0xff]  ;;  %v859_v11 = vld [vmem:[%s3040_s5 + $0x50] sm:$0xff] }
   0x5   :  { %866 = vmatpush.msra.mxu1 %v863_v3  ;;  %1375 = vmatpush.msra.mxu3 %v863_v3  ;;  %v300_v12 = vld [vmem:[%s3039_s3 + $0x48] sm:$0xff]  ;;  %v299_v14 = vld [vmem:[%s3039_s3 + $0x40] sm:$0xff]  ;;  %v298_v16 = vld [vmem:[%s3039_s3 + $0x38] sm:$0xff] }
   0x6   :  { %309 = vmatpush.msra.mxu0 %v304_v4  ;;  %1360 = vmatpush.msra.mxu2 %v304_v4  ;;  %v858_v13 = vld [vmem:[%s3040_s5 + $0x48] sm:$0xff]  ;;  %v857_v15 = vld [vmem:[%s3040_s5 + $0x40] sm:$0xff]  ;;  %v856_v17 = vld [vmem:[%s3040_s5 + $0x38] sm:$0xff] }
   0x7   :  { %867 = vmatpush.msra.mxu1 %v862_v5  ;;  %1376 = vmatpush.msra.mxu3 %v862_v5  ;;  %v297_v18 = vld [vmem:[%s3039_s3 + $0x30] sm:$0xff]  ;;  %v1515_v20 = vld [vmem:[%s3041_s1] ss:$0 sm:$0xff]  ;;  %v296_v22 = vld [vmem:[%s3039_s3 + $0x28] sm:$0xff] }
   0x8   :  { %310 = vmatpush.msra.mxu0 %v303_v6  ;;  %1361 = vmatpush.msra.mxu2 %v303_v6  ;;  %v855_v19 = vld [vmem:[%s3040_s5 + $0x30] sm:$0xff]  ;;  %v27_v21 = vld [vmem:[%s3043_s0] sm:$0xff]  ;;  %v854_v23 = vld [vmem:[%s3040_s5 + $0x28] sm:$0xff] }
   0x9   :  { %868 = vmatpush.msra.mxu1 %v861_v7  ;;  %1377 = vmatpush.msra.mxu3 %v861_v7  ;;  %v295_v24 = vld [vmem:[%s3039_s3 + $0x20] sm:$0xff]  ;;  %v95_v26 = vmul.f32 %v1515_v20, %v27_v21  ;;  %v294_v28 = vld [vmem:[%s3039_s3 + $0x18] sm:$0xff]  ;;  %v293_v30 = vld [vmem:[%s3039_s3 + $0x10] sm:$0xff] }
   0xa   :  { %311 = vmatpush.msra.mxu0 %v302_v8  ;;  %1362 = vmatpush.msra.mxu2 %v302_v8  ;;  %v853_v25 = vld [vmem:[%s3040_s5 + $0x20] sm:$0xff]  ;;  %v852_v29 = vld [vmem:[%s3040_s5 + $0x18] sm:$0xff]  ;;  %v851_v31 = vld [vmem:[%s3040_s5 + $0x10] sm:$0xff] }
   0xb   :  { %869 = vmatpush.msra.mxu1 %v860_v9  ;;  %1378 = vmatpush.msra.mxu3 %v860_v9  ;;  %v1536_v27 = vld [vmem:[%s3042_s2] ss:$0 sm:$0xff]  ;;  %v28_v33 = vld [vmem:[%s3043_s0 + $0x8] sm:$0xff]  ;;  %v29_v42 = vld [vmem:[%s3043_s0 + $0x10] sm:$0xff] }
   0xc   :  { %312 = vmatpush.msra.mxu0 %v301_v10  ;;  %1363 = vmatpush.msra.mxu2 %v301_v10  ;;  %v163_v32 = vadd.f32 %v1536_v27, %v95_v26  ;;  %v292_v34 = vld [vmem:[%s3039_s3 + $0x8] sm:$0xff]  ;;  %v291_v36 = vld [vmem:[%s3039_s3] sm:$0xff]  ;;  %v96_v39 = vmul.f32 %v1515_v20, %v28_v33  ;;  %v97_v44 = vmul.f32 %v1515_v20, %v29_v42  ;;  %v30_v47 = vld [vmem:[%s3043_s0 + $0x18] sm:$0xff] }
   0xd   :  { %870 = vmatpush.msra.mxu1 %v859_v11  ;;  %1379 = vmatpush.msra.mxu3 %v859_v11  ;;  %v850_v35 = vld [vmem:[%s3040_s5 + $0x8] sm:$0xff]  ;;  %v849_v37 = vld [vmem:[%s3040_s5] sm:$0xff]  ;;  %v98_v49 = vmul.f32 %v1515_v20, %v30_v47  ;;  %v787_v50 = vld [vmem:[%s3044_s4 + $0x10] sm:$0xff] }
   0xe   :  { %313 = vmatpush.msra.mxu0 %v300_v12  ;;  %1364 = vmatpush.msra.mxu2 %v300_v12  ;;  %v227_v38 = vmax.f32 %v163_v32, 0.0  ;;  %v785_v40 = vld [vmem:[%s3044_s4] sm:$0xff]  ;;  %v164_v41 = vadd.f32 %v1536_v27, %v96_v39  ;;  %v786_v45 = vld [vmem:[%s3044_s4 + $0x8] sm:$0xff]  ;;  %v165_v46 = vadd.f32 %v1536_v27, %v97_v44  ;;  %v788_v57 = vld [vmem:[%s3044_s4 + $0x18] sm:$0xff] }
   0xf   :  { %871 = vmatpush.msra.mxu1 %v858_v13  ;;  %1380 = vmatpush.msra.mxu3 %v858_v13  ;;  %v166_v51 = vadd.f32 %v1536_v27, %v98_v49  ;;  %v31_v52 = vld [vmem:[%s3043_s0 + $0x20] sm:$0xff]  ;;  %v32_v62 = vld [vmem:[%s3043_s0 + $0x28] sm:$0xff]  ;;  %v33_v8 = vld [vmem:[%s3043_s0 + $0x30] sm:$0xff] }
  0x10   :  { %314 = vmatpush.msra.mxu0 %v299_v14  ;;  %1365 = vmatpush.msra.mxu2 %v299_v14  ;;  %v228_v43 = vmax.f32 %v164_v41, 0.0  ;;  %v229_v48 = vmax.f32 %v165_v46, 0.0  ;;  %v59_v53 = vld [vmem:[%s3043_s0 + $0x100] sm:$0xff]  ;;  %v99_v55 = vmul.f32 %v1515_v20, %v31_v52  ;;  %v60_v63 = vld [vmem:[%s3043_s0 + $0x108] sm:$0xff]  ;;  %v100_v1 = vmul.f32 %v1515_v20, %v32_v62  ;;  %v61_v9 = vld [vmem:[%s3043_s0 + $0x110] sm:$0xff] }
  0x11   :  { %872 = vmatpush.msra.mxu1 %v857_v15  ;;  %1381 = vmatpush.msra.mxu3 %v857_v15  ;;  %v230_v54 = vmax.f32 %v166_v51, 0.0  ;;  %v127_v56 = vmul.f32 %v1515_v20, %v59_v53  ;;  %v817_v61 = vld [vmem:[%s3044_s4 + $0x100] sm:$0xff]  ;;  %v128_v2 = vmul.f32 %v1515_v20, %v60_v63  ;;  %v818_v7 = vld [vmem:[%s3044_s4 + $0x108] sm:$0xff]  ;;  %v101_v11 = vmul.f32 %v1515_v20, %v33_v8  ;;  %v65_v51 = vld [vmem:[%s3043_s0 + $0x130] sm:$0xff] }
  0x12   :  { %315 = vmatpush.msra.mxu0 %v298_v16  ;;  %1366 = vmatpush.msra.mxu2 %v298_v16  ;;  %v167_v59 = vadd.f32 %v1536_v27, %v99_v55  ;;  %v789_v3 = vld [vmem:[%s3044_s4 + $0x20] sm:$0xff]  ;;  %v168_v5 = vadd.f32 %v1536_v27, %v100_v1  ;;  %v129_v12 = vmul.f32 %v1515_v20, %v61_v9  ;;  %v790_v13 = vld [vmem:[%s3044_s4 + $0x28] sm:$0xff]  ;;  %v795_v1 = vld [vmem:[%s3044_s4 + $0x50] sm:$0xff] }
  0x13   :  { %873 = vmatpush.msra.mxu1 %v856_v17  ;;  %1382 = vmatpush.msra.mxu3 %v856_v17  ;;  %v195_v58 = vadd.f32 %v1536_v27, %v127_v56  ;;  %v196_v4 = vadd.f32 %v1536_v27, %v128_v2  ;;  %v169_v15 = vadd.f32 %v1536_v27, %v101_v11  ;;  %v819_v17 = vld [vmem:[%s3044_s4 + $0x110] sm:$0xff]  ;;  %v821_v39 = vld [vmem:[%s3044_s4 + $0x120] sm:$0xff]  ;;  %v64_v41 = vld [vmem:[%s3043_s0 + $0x128] sm:$0xff] }
  0x14   :  { %316 = vmatpush.msra.mxu0 %v297_v18  ;;  %1367 = vmatpush.msra.mxu2 %v297_v18  ;;  %v231_v0 = vmax.f32 %v167_v59, 0.0  ;;  %v232_v10 = vmax.f32 %v168_v5, 0.0  ;;  %v197_v14 = vadd.f32 %v1536_v27, %v129_v12  ;;  %v34_v18 = vld [vmem:[%s3043_s0 + $0x38] sm:$0xff]  ;;  %v132_v44 = vmul.f32 %v1515_v20, %v64_v41  ;;  %v822_v49 = vld [vmem:[%s3044_s4 + $0x128] sm:$0xff]  ;;  %v823_v59 = vld [vmem:[%s3044_s4 + $0x130] sm:$0xff] }
  0x15   :  { %874 = vmatpush.msra.mxu1 %v855_v19  ;;  %1383 = vmatpush.msra.mxu3 %v855_v19  ;;  %v259_v60 = vmax.f32 %v195_v58, 0.0  ;;  %v260_v6 = vmax.f32 %v196_v4, 0.0  ;;  %v62_v19 = vld [vmem:[%s3043_s0 + $0x118] sm:$0xff]  ;;  %v233_v21 = vmax.f32 %v169_v15, 0.0  ;;  %v794_v55 = vld [vmem:[%s3044_s4 + $0x48] sm:$0xff]  ;;  %v825_v15 = vld [vmem:[%s3044_s4 + $0x140] sm:$0xff] }
  0x16   :  { %317 = vmatpush.msra.mxu0 %v296_v22  ;;  %1368 = vmatpush.msra.mxu2 %v296_v22  ;;  %v261_v16 = vmax.f32 %v197_v14, 0.0  ;;  %v102_v22 = vmul.f32 %v1515_v20, %v34_v18  ;;  %v200_v46 = vadd.f32 %v1536_v27, %v132_v44  ;;  %v824_v5 = vld [vmem:[%s3044_s4 + $0x138] sm:$0xff] }
  0x17   :  { %875 = vmatpush.msra.mxu1 %v854_v23  ;;  %1384 = vmatpush.msra.mxu3 %v854_v23  ;;  %v130_v23 = vmul.f32 %v1515_v20, %v62_v19  ;;  %v796_v11 = vld [vmem:[%s3044_s4 + $0x58] sm:$0xff]  ;;  %v68_v19 = vld [vmem:[%s3043_s0 + $0x148] sm:$0xff] }
  0x18   :  { %318 = vmatpush.msra.mxu0 %v295_v24  ;;  %1369 = vmatpush.msra.mxu2 %v295_v24  ;;  %v791_v24 = vld [vmem:[%s3044_s4 + $0x30] sm:$0xff]  ;;  %v170_v26 = vadd.f32 %v1536_v27, %v102_v22  ;;  %v136_v22 = vmul.f32 %v1515_v20, %v68_v19  ;;  %v70_v41 = vld [vmem:[%s3043_s0 + $0x158] sm:$0xff] }
  0x19   :  { %876 = vmatpush.msra.mxu1 %v853_v25  ;;  %1385 = vmatpush.msra.mxu3 %v853_v25  ;;  %v198_v25 = vadd.f32 %v1536_v27, %v130_v23 }
  0x1a   :  { %319 = vmatpush.msra.mxu0 %v294_v28  ;;  %1370 = vmatpush.msra.mxu2 %v294_v28  ;;  %v234_v32 = vmax.f32 %v170_v26, 0.0  ;;  %v204_v23 = vadd.f32 %v1536_v27, %v136_v22  ;;  %v41_v26 = vld [vmem:[%s3043_s0 + $0x70] sm:$0xff]  ;;  %v74_v22 = vld [vmem:[%s3043_s0 + $0x178] sm:$0xff] }
  0x1b   :  { %877 = vmatpush.msra.mxu1 %v852_v29  ;;  %1386 = vmatpush.msra.mxu3 %v852_v29  ;;  %v262_v28 = vmax.f32 %v198_v25, 0.0  ;;  %v820_v29 = vld [vmem:[%s3044_s4 + $0x118] sm:$0xff]  ;;  %v826_v25 = vld [vmem:[%s3044_s4 + $0x148] sm:$0xff] }
  0x1c   :  { %320 = vmatpush.msra.mxu0 %v293_v30  ;;  %1371 = vmatpush.msra.mxu2 %v293_v30  ;;  %v35_v30 = vld [vmem:[%s3043_s0 + $0x40] sm:$0xff] }
  0x1d   :  { %878 = vmatpush.msra.mxu1 %v851_v31  ;;  %1387 = vmatpush.msra.mxu3 %v851_v31  ;;  %v63_v31 = vld [vmem:[%s3043_s0 + $0x120] sm:$0xff]  ;;  %v103_v33 = vmul.f32 %v1515_v20, %v35_v30  ;;  %v109_v30 = vmul.f32 %v1515_v20, %v41_v26  ;;  %v142_v26 = vmul.f32 %v1515_v20, %v74_v22 }
  0x1e   :  { %321 = vmatpush.msra.mxu0 %v292_v34  ;;  %1372 = vmatpush.msra.mxu2 %v292_v34  ;;  %v131_v34 = vmul.f32 %v1515_v20, %v63_v31  ;;  %v69_v31 = vld [vmem:[%s3043_s0 + $0x150] sm:$0xff] }
  0x1f   :  { %879 = vmatpush.msra.mxu1 %v850_v35  ;;  %1388 = vmatpush.msra.mxu3 %v850_v35  ;;  %v792_v35 = vld [vmem:[%s3044_s4 + $0x38] sm:$0xff] }
  0x20   :  { %322 = vmatpush.msra.mxu0 %v291_v36  ;;  %1373 = vmatpush.msra.mxu2 %v291_v36  ;;  %v199_v36 = vadd.f32 %v1536_v27, %v131_v34 }
  0x21   :  { %880 = vmatpush.msra.mxu1 %v849_v37  ;;  %323 = vmatmul.f32.vlgmr.msra.gmra.mxu0 %v227_v38 }
  0x22   :  { %881 = vmatmul.f32.vlgmr.msra.gmra.mxu1 %v785_v40  ;;  %1389 = vmatpush.msra.mxu3 %v849_v37  ;;  %v171_v37 = vadd.f32 %v1536_v27, %v103_v33  ;;  %v263_v38 = vmax.f32 %v199_v36, 0.0  ;;  %v36_v40 = vld [vmem:[%s3043_s0 + $0x48] sm:$0xff]  ;;  %v137_v33 = vmul.f32 %v1515_v20, %v69_v31  ;;  %v827_v36 = vld [vmem:[%s3044_s4 + $0x150] sm:$0xff]  ;;  %v47_v31 = vld [vmem:[%s3043_s0 + $0xa0] sm:$0xff] }
  0x23   :  { %977 = vmatmul.f32.vlgmr.msra.gmra.mxu3 %v817_v61  ;;  %419 = vmatmul.f32.vlgmr.msra.gmra.mxu2 %v259_v60  ;;  %v38_v60 = vld [vmem:[%s3043_s0 + $0x58] sm:$0xff] }
  0x24   :  { %v235_v42 = vmax.f32 %v171_v37, 0.0  ;;  %v66_v61 = vld [vmem:[%s3043_s0 + $0x138] sm:$0xff]  ;;  %v106_v63 = vmul.f32 %v1515_v20, %v38_v60  ;;  %v205_v34 = vadd.f32 %v1536_v27, %v137_v33 }
  0x25   :  { %v42_v37 = vld [vmem:[%s3043_s0 + $0x78] sm:$0xff] }
  0x29   :  { %326 = vmatmul.f32.gmra.mxu0 %v228_v43  ;;  %v104_v43 = vmul.f32 %v1515_v20, %v36_v40  ;;  %v110_v40 = vmul.f32 %v1515_v20, %v42_v37 }
  0x2a   :  { %884 = vmatmul.f32.gmra.mxu1 %v786_v45  ;;  %v793_v45 = vld [vmem:[%s3044_s4 + $0x40] sm:$0xff] }
  0x2b   :  { %980 = vmatmul.f32.gmra.mxu3 %v818_v7  ;;  %422 = vmatmul.f32.gmra.mxu2 %v260_v6  ;;  %v172_v47 = vadd.f32 %v1536_v27, %v104_v43  ;;  %v39_v6 = vld [vmem:[%s3043_s0 + $0x60] sm:$0xff]  ;;  %v138_v43 = vmul.f32 %v1515_v20, %v70_v41 }
  0x2c   :  { %v67_v7 = vld [vmem:[%s3043_s0 + $0x140] sm:$0xff]  ;;  %v107_v9 = vmul.f32 %v1515_v20, %v39_v6 }
  0x2d   :  { %v236_v52 = vmax.f32 %v172_v47, 0.0  ;;  %v206_v44 = vadd.f32 %v1536_v27, %v138_v43  ;;  %v43_v47 = vld [vmem:[%s3043_s0 + $0x80] sm:$0xff]  ;;  %v48_v43 = vld [vmem:[%s3043_s0 + $0xa8] sm:$0xff] }
  0x31   :  { %329 = vmatmul.f32.gmra.mxu0 %v229_v48  ;;  %v264_v48 = vmax.f32 %v200_v46, 0.0  ;;  %v828_v46 = vld [vmem:[%s3044_s4 + $0x158] sm:$0xff] }
  0x32   :  { %887 = vmatmul.f32.gmra.mxu1 %v787_v50  ;;  %v37_v50 = vld [vmem:[%s3043_s0 + $0x50] sm:$0xff] }
  0x33   :  { %983 = vmatmul.f32.gmra.mxu3 %v819_v17  ;;  %425 = vmatmul.f32.gmra.mxu2 %v261_v16  ;;  %v105_v53 = vmul.f32 %v1515_v20, %v37_v50  ;;  %v40_v16 = vld [vmem:[%s3043_s0 + $0x68] sm:$0xff]  ;;  %v111_v50 = vmul.f32 %v1515_v20, %v43_v47 }
  0x34   :  { %v108_v18 = vmul.f32 %v1515_v20, %v40_v16  ;;  %v831_v16 = vld [vmem:[%s3044_s4 + $0x170] sm:$0xff]  ;;  %v76_v47 = vld [vmem:[%s3043_s0 + $0x188] sm:$0xff] }
  0x39   :  { %332 = vmatmul.f32.gmra.mxu0 %v230_v54  ;;  %v133_v54 = vmul.f32 %v1515_v20, %v65_v51  ;;  %v71_v51 = vld [vmem:[%s3043_s0 + $0x160] sm:$0xff] }
  0x3a   :  { %890 = vmatmul.f32.gmra.mxu1 %v788_v57  ;;  %v173_v57 = vadd.f32 %v1536_v27, %v105_v53  ;;  %v139_v53 = vmul.f32 %v1515_v20, %v71_v51  ;;  %v144_v51 = vmul.f32 %v1515_v20, %v76_v47 }
  0x3b   :  { %986 = vmatmul.f32.gmra.mxu3 %v820_v29  ;;  %428 = vmatmul.f32.gmra.mxu2 %v262_v28  ;;  %v201_v56 = vadd.f32 %v1536_v27, %v133_v54  ;;  %v268_v28 = vmax.f32 %v204_v23, 0.0 }
  0x3c   :  { %v237_v62 = vmax.f32 %v173_v57, 0.0  ;;  %v207_v54 = vadd.f32 %v1536_v27, %v139_v53  ;;  %v44_v57 = vld [vmem:[%s3043_s0 + $0x88] sm:$0xff] }
  0x3d   :  { %v265_v58 = vmax.f32 %v201_v56, 0.0  ;;  %v829_v56 = vld [vmem:[%s3044_s4 + $0x160] sm:$0xff]  ;;  %v112_v60 = vmul.f32 %v1515_v20, %v44_v57  ;;  %v49_v57 = vld [vmem:[%s3043_s0 + $0xb0] sm:$0xff] }
  0x41   :  { %335 = vmatmul.f32.gmra.mxu0 %v231_v0  ;;  %v134_v0 = vmul.f32 %v1515_v20, %v66_v61  ;;  %v72_v61 = vld [vmem:[%s3043_s0 + $0x168] sm:$0xff] }
  0x42   :  { %893 = vmatmul.f32.gmra.mxu1 %v789_v3  ;;  %v174_v3 = vadd.f32 %v1536_v27, %v106_v63 }
  0x43   :  { %989 = vmatmul.f32.gmra.mxu3 %v821_v39  ;;  %431 = vmatmul.f32.gmra.mxu2 %v263_v38  ;;  %v202_v2 = vadd.f32 %v1536_v27, %v134_v0  ;;  %v269_v38 = vmax.f32 %v205_v34, 0.0  ;;  %v801_v0 = vld [vmem:[%s3044_s4 + $0x80] sm:$0xff]  ;;  %v115_v34 = vmul.f32 %v1515_v20, %v47_v31 }
  0x44   :  { %v238_v8 = vmax.f32 %v174_v3, 0.0  ;;  %v180_v3 = vadd.f32 %v1536_v27, %v112_v60  ;;  %v117_v60 = vmul.f32 %v1515_v20, %v49_v57  ;;  %v837_v57 = vld [vmem:[%s3044_s4 + $0x1a0] sm:$0xff] }
  0x45   :  { %v266_v4 = vmax.f32 %v202_v2, 0.0  ;;  %v183_v41 = vadd.f32 %v1536_v27, %v115_v34 }
  0x49   :  { %338 = vmatmul.f32.gmra.mxu0 %v232_v10  ;;  %v135_v10 = vmul.f32 %v1515_v20, %v67_v7  ;;  %v244_v7 = vmax.f32 %v180_v3, 0.0 }
  0x4a   :  { %896 = vmatmul.f32.gmra.mxu1 %v790_v13  ;;  %v175_v13 = vadd.f32 %v1536_v27, %v107_v9  ;;  %v73_v9 = vld [vmem:[%s3043_s0 + $0x170] sm:$0xff] }
  0x4b   :  { %992 = vmatmul.f32.gmra.mxu3 %v822_v49  ;;  %434 = vmatmul.f32.gmra.mxu2 %v264_v48  ;;  %v203_v12 = vadd.f32 %v1536_v27, %v135_v10  ;;  %v270_v48 = vmax.f32 %v206_v44, 0.0 }
  0x4c   :  { %v239_v17 = vmax.f32 %v175_v13, 0.0  ;;  %v141_v13 = vmul.f32 %v1515_v20, %v73_v9  ;;  %v50_v9 = vld [vmem:[%s3043_s0 + $0xb8] sm:$0xff] }
  0x4d   :  { %v267_v14 = vmax.f32 %v203_v12, 0.0  ;;  %v802_v12 = vld [vmem:[%s3044_s4 + $0x88] sm:$0xff] }
  0x51   :  { %341 = vmatmul.f32.gmra.mxu0 %v233_v21  ;;  %v797_v21 = vld [vmem:[%s3044_s4 + $0x60] sm:$0xff] }
  0x52   :  { %899 = vmatmul.f32.gmra.mxu1 %v791_v24  ;;  %v176_v24 = vadd.f32 %v1536_v27, %v108_v18 }
  0x53   :  { %995 = vmatmul.f32.gmra.mxu3 %v823_v59  ;;  %437 = vmatmul.f32.gmra.mxu2 %v265_v58  ;;  %v271_v58 = vmax.f32 %v207_v54, 0.0  ;;  %v212_v54 = vadd.f32 %v1536_v27, %v144_v51 }
  0x54   :  { %v240_v29 = vmax.f32 %v176_v24, 0.0 }
  0x59   :  { %344 = vmatmul.f32.gmra.mxu0 %v234_v32  ;;  %v798_v32 = vld [vmem:[%s3044_s4 + $0x68] sm:$0xff] }
  0x5a   :  { %902 = vmatmul.f32.gmra.mxu1 %v792_v35  ;;  %v177_v35 = vadd.f32 %v1536_v27, %v109_v30  ;;  %v832_v30 = vld [vmem:[%s3044_s4 + $0x178] sm:$0xff] }
  0x5b   :  { %998 = vmatmul.f32.gmra.mxu3 %v824_v5  ;;  %440 = vmatmul.f32.gmra.mxu2 %v266_v4  ;;  %v830_v4 = vld [vmem:[%s3044_s4 + $0x168] sm:$0xff]  ;;  %v45_v5 = vld [vmem:[%s3043_s0 + $0x90] sm:$0xff] }
  0x5c   :  { %v241_v39 = vmax.f32 %v177_v35, 0.0  ;;  %v75_v35 = vld [vmem:[%s3043_s0 + $0x180] sm:$0xff] }
  0x61   :  { %347 = vmatmul.f32.gmra.mxu0 %v235_v42  ;;  %v799_v42 = vld [vmem:[%s3044_s4 + $0x70] sm:$0xff] }
  0x62   :  { %905 = vmatmul.f32.gmra.mxu1 %v793_v45  ;;  %v178_v45 = vadd.f32 %v1536_v27, %v110_v40 }
  0x63   :  { %1001 = vmatmul.f32.gmra.mxu3 %v825_v15  ;;  %443 = vmatmul.f32.gmra.mxu2 %v267_v14  ;;  %v209_v14 = vadd.f32 %v1536_v27, %v141_v13 }
  0x64   :  { %v242_v49 = vmax.f32 %v178_v45, 0.0  ;;  %v247_v45 = vmax.f32 %v183_v41, 0.0 }
  0x65   :  { %v273_v18 = vmax.f32 %v209_v14, 0.0  ;;  %v118_v14 = vmul.f32 %v1515_v20, %v50_v9 }
  0x69   :  { %350 = vmatmul.f32.gmra.mxu0 %v236_v52  ;;  %v800_v52 = vld [vmem:[%s3044_s4 + $0x78] sm:$0xff] }
  0x6a   :  { %908 = vmatmul.f32.gmra.mxu1 %v794_v55  ;;  %v179_v55 = vadd.f32 %v1536_v27, %v111_v50  ;;  %v805_v50 = vld [vmem:[%s3044_s4 + $0xa0] sm:$0xff] }
  0x6b   :  { %1004 = vmatmul.f32.gmra.mxu3 %v826_v25  ;;  %446 = vmatmul.f32.gmra.mxu2 %v268_v28  ;;  %v803_v25 = vld [vmem:[%s3044_s4 + $0x90] sm:$0xff]  ;;  %v210_v28 = vadd.f32 %v1536_v27, %v142_v26  ;;  %v186_v26 = vadd.f32 %v1536_v27, %v118_v14 }
  0x6c   :  { %v243_v59 = vmax.f32 %v179_v55, 0.0 }
  0x71   :  { %353 = vmatmul.f32.gmra.mxu0 %v237_v62 }
  0x72   :  { %911 = vmatmul.f32.gmra.mxu1 %v795_v1  ;;  %v140_v1 = vmul.f32 %v1515_v20, %v72_v61  ;;  %v77_v61 = vld [vmem:[%s3043_s0 + $0x190] sm:$0xff] }
  0x73   :  { %1007 = vmatmul.f32.gmra.mxu3 %v827_v36  ;;  %449 = vmatmul.f32.gmra.mxu2 %v269_v38  ;;  %v804_v38 = vld [vmem:[%s3044_s4 + $0x98] sm:$0xff]  ;;  %v145_v3 = vmul.f32 %v1515_v20, %v77_v61 }
  0x74   :  { %v208_v2 = vadd.f32 %v1536_v27, %v140_v1 }
  0x76   :  { %v272_v6 = vmax.f32 %v208_v2, 0.0  ;;  %v806_v2 = vld [vmem:[%s3044_s4 + $0xa8] sm:$0xff] }
  0x79   :  { %356 = vmatmul.f32.gmra.mxu0 %v238_v8  ;;  %v113_v8 = vmul.f32 %v1515_v20, %v45_v5 }
  0x7a   :  { %914 = vmatmul.f32.gmra.mxu1 %v796_v11 }
  0x7b   :  { %1010 = vmatmul.f32.gmra.mxu3 %v828_v46  ;;  %452 = vmatmul.f32.gmra.mxu2 %v270_v48  ;;  %v181_v15 = vadd.f32 %v1536_v27, %v113_v8  ;;  %v116_v46 = vmul.f32 %v1515_v20, %v48_v43  ;;  %v835_v8 = vld [vmem:[%s3044_s4 + $0x190] sm:$0xff] }
  0x7d   :  { %v245_v19 = vmax.f32 %v181_v15, 0.0  ;;  %v184_v55 = vadd.f32 %v1536_v27, %v116_v46  ;;  %v78_v15 = vld [vmem:[%s3043_s0 + $0x198] sm:$0xff] }
  0x7e   :  { %v808_v46 = vld [vmem:[%s3044_s4 + $0xb8] sm:$0xff] }
  0x81   :  { %359 = vmatmul.f32.gmra.mxu0 %v239_v17  ;;  %v46_v17 = vld [vmem:[%s3043_s0 + $0x98] sm:$0xff] }
  0x82   :  { %917 = vmatmul.f32.gmra.mxu1 %v797_v21  ;;  %v114_v21 = vmul.f32 %v1515_v20, %v46_v17 }
  0x83   :  { %1013 = vmatmul.f32.gmra.mxu3 %v829_v56  ;;  %455 = vmatmul.f32.gmra.mxu2 %v271_v58  ;;  %v834_v56 = vld [vmem:[%s3044_s4 + $0x188] sm:$0xff]  ;;  %v276_v58 = vmax.f32 %v212_v54, 0.0 }
  0x84   :  { %v52_v54 = vld [vmem:[%s3043_s0 + $0xc8] sm:$0xff] }
  0x89   :  { %362 = vmatmul.f32.gmra.mxu0 %v240_v29  ;;  %v182_v29 = vadd.f32 %v1536_v27, %v114_v21 }
  0x8a   :  { %920 = vmatmul.f32.gmra.mxu1 %v798_v32  ;;  %v274_v32 = vmax.f32 %v210_v28, 0.0  ;;  %v836_v28 = vld [vmem:[%s3044_s4 + $0x198] sm:$0xff] }
  0x8b   :  { %1016 = vmatmul.f32.gmra.mxu3 %v830_v4  ;;  %458 = vmatmul.f32.gmra.mxu2 %v272_v6  ;;  %v246_v33 = vmax.f32 %v182_v29, 0.0  ;;  %v213_v6 = vadd.f32 %v1536_v27, %v145_v3  ;;  %v51_v29 = vld [vmem:[%s3043_s0 + $0xc0] sm:$0xff] }
  0x91   :  { %365 = vmatmul.f32.gmra.mxu0 %v241_v39  ;;  %v143_v39 = vmul.f32 %v1515_v20, %v75_v35 }
  0x92   :  { %923 = vmatmul.f32.gmra.mxu1 %v799_v42  ;;  %v833_v42 = vld [vmem:[%s3044_s4 + $0x180] sm:$0xff] }
  0x93   :  { %1019 = vmatmul.f32.gmra.mxu3 %v831_v16  ;;  %461 = vmatmul.f32.gmra.mxu2 %v273_v18  ;;  %v211_v40 = vadd.f32 %v1536_v27, %v143_v39  ;;  %v807_v18 = vld [vmem:[%s3044_s4 + $0xb0] sm:$0xff]  ;;  %v119_v39 = vmul.f32 %v1515_v20, %v51_v29 }
  0x95   :  { %v275_v44 = vmax.f32 %v211_v40, 0.0  ;;  %v79_v40 = vld [vmem:[%s3043_s0 + $0x1a0] sm:$0xff] }
  0x96   :  { %v147_v47 = vmul.f32 %v1515_v20, %v79_v40 }
  0x99   :  { %368 = vmatmul.f32.gmra.mxu0 %v242_v49 }
  0x9a   :  { %926 = vmatmul.f32.gmra.mxu1 %v800_v52 }
  0x9b   :  { %1022 = vmatmul.f32.gmra.mxu3 %v832_v30  ;;  %464 = vmatmul.f32.gmra.mxu2 %v274_v32 }
  0x9e   :  { %v1802_v62 = vpop.f32.mrf.mxu0 }
  0x9f   :  { %v1804_v63 = vpop.f32.mrf.mxu1  ;;  %516 = vst [vmem:[%s3045_s6] sm:$0xff] %v1802_v62 }
  0xa0   :  { %1074 = vst [vmem:[%s3046_s7] sm:$0xff] %v1804_v63  ;;  %v1207_v34 = vmul.f32 %v1804_v63, %v1804_v63 }
  0xa1   :  { %371 = vmatmul.f32.gmra.mxu0 %v243_v59  ;;  %v248_v59 = vmax.f32 %v184_v55, 0.0  ;;  %v215_v55 = vadd.f32 %v1536_v27, %v147_v47 }
  0xa2   :  { %929 = vmatmul.f32.gmra.mxu1 %v801_v0 }
  0xa3   :  { %1025 = vmatmul.f32.gmra.mxu3 %v833_v42  ;;  %467 = vmatmul.f32.gmra.mxu2 %v275_v44  ;;  %v279_v61 = vmax.f32 %v215_v55, 0.0 }
  0xa6   :  { %v1830_v10 = vpop.f32.mrf.mxu0  ;;  %v420_v52 = vpop.f32.mrf.mxu2 }
  0xa7   :  { %v1832_v11 = vpop.f32.mrf.mxu1  ;;  %517 = vst [vmem:[%s3045_s6 + $0x8] sm:$0xff] %v1830_v10  ;;  %v978_v53 = vpop.f32.mrf.mxu3  ;;  %v650_v31 = vmul.f32 %v1830_v10, %v1830_v10  ;;  %v580_v41 = vadd.f32 %v1830_v10, %v1802_v62 }
  0xa8   :  { %1075 = vst [vmem:[%s3046_s7 + $0x8] sm:$0xff] %v1832_v11  ;;  %v1208_v32 = vmul.f32 %v1832_v11, %v1832_v11  ;;  %v1138_v42 = vadd.f32 %v1832_v11, %v1804_v63 }
  0xa9   :  { %374 = vmatmul.f32.gmra.mxu0 %v244_v7  ;;  %548 = vst [vmem:[%s3045_s6 + $0x100] sm:$0xff] %v420_v52  ;;  %v185_v7 = vadd.f32 %v1536_v27, %v117_v60 }
  0xaa   :  { %932 = vmatmul.f32.gmra.mxu1 %v802_v12  ;;  %1106 = vst [vmem:[%s3046_s7 + $0x100] sm:$0xff] %v978_v53  ;;  %v277_v12 = vmax.f32 %v213_v6, 0.0  ;;  %v1271_v51 = vadd.f32 %v1208_v32, %v1207_v34 }
  0xab   :  { %1028 = vmatmul.f32.gmra.mxu3 %v834_v56  ;;  %470 = vmatmul.f32.gmra.mxu2 %v276_v58  ;;  %v249_v13 = vmax.f32 %v185_v7, 0.0 }
  0xae   :  { %v1858_v23 = vpop.f32.mrf.mxu0  ;;  %v423_v4 = vpop.f32.mrf.mxu2 }
  0xaf   :  { %v1860_v24 = vpop.f32.mrf.mxu1  ;;  %518 = vst [vmem:[%s3045_s6 + $0x10] sm:$0xff] %v1858_v23  ;;  %v981_v5 = vpop.f32.mrf.mxu3  ;;  %v651_v35 = vmul.f32 %v1858_v23, %v1858_v23  ;;  %v581_v11 = vadd.f32 %v580_v41, %v1858_v23 }
  0xb0   :  { %1076 = vst [vmem:[%s3046_s7 + $0x10] sm:$0xff] %v1860_v24  ;;  %v1209_v43 = vmul.f32 %v1860_v24, %v1860_v24  ;;  %v1139_v52 = vadd.f32 %v1138_v42, %v1860_v24  ;;  %v187_v24 = vadd.f32 %v1536_v27, %v119_v39 }
  0xb1   :  { %377 = vmatmul.f32.gmra.mxu0 %v245_v19  ;;  %549 = vst [vmem:[%s3045_s6 + $0x108] sm:$0xff] %v423_v4  ;;  %v146_v19 = vmul.f32 %v1515_v20, %v78_v15 }
  0xb2   :  { %935 = vmatmul.f32.gmra.mxu1 %v803_v25  ;;  %1107 = vst [vmem:[%s3046_s7 + $0x108] sm:$0xff] %v981_v5  ;;  %v1272_v58 = vadd.f32 %v1271_v51, %v1209_v43  ;;  %v120_v5 = vmul.f32 %v1515_v20, %v52_v54 }
  0xb3   :  { %1031 = vmatmul.f32.gmra.mxu3 %v835_v8  ;;  %473 = vmatmul.f32.gmra.mxu2 %v277_v12  ;;  %v214_v25 = vadd.f32 %v1536_v27, %v146_v19  ;;  %v809_v19 = vld [vmem:[%s3044_s4 + $0xc0] sm:$0xff] }
  0xb5   :  { %v278_v30 = vmax.f32 %v214_v25, 0.0 }
  0xb6   :  { %v1886_v36 = vpop.f32.mrf.mxu0  ;;  %v426_v21 = vpop.f32.mrf.mxu2 }
  0xb7   :  { %v1888_v37 = vpop.f32.mrf.mxu1  ;;  %519 = vst [vmem:[%s3045_s6 + $0x18] sm:$0xff] %v1886_v36  ;;  %v984_v22 = vpop.f32.mrf.mxu3 }
  0xb8   :  { %1077 = vst [vmem:[%s3046_s7 + $0x18] sm:$0xff] %v1888_v37  ;;  %v1210_v53 = vmul.f32 %v1888_v37, %v1888_v37  ;;  %v1140_v3 = vadd.f32 %v1139_v52, %v1888_v37  ;;  %v80_v37 = vld [vmem:[%s3043_s0 + $0x1a8] sm:$0xff] }
  0xb9   :  { %380 = vmatmul.f32.gmra.mxu0 %v246_v33  ;;  %550 = vst [vmem:[%s3045_s6 + $0x110] sm:$0xff] %v426_v21  ;;  %v649_v33 = vmul.f32 %v1802_v62, %v1802_v62  ;;  %v652_v62 = vmul.f32 %v1886_v36, %v1886_v36 }
  0xba   :  { %938 = vmatmul.f32.gmra.mxu1 %v804_v38  ;;  %1108 = vst [vmem:[%s3046_s7 + $0x110] sm:$0xff] %v984_v22  ;;  %v250_v38 = vmax.f32 %v186_v26, 0.0  ;;  %v1273_v6 = vadd.f32 %v1272_v58, %v1210_v53  ;;  %v188_v26 = vadd.f32 %v1536_v27, %v120_v5  ;;  %v2168_v5 = vld [vmem:[%s3041_s1] ss:$0 sm:$0xff] }
  0xbb   :  { %1034 = vmatmul.f32.gmra.mxu3 %v836_v28  ;;  %476 = vmatmul.f32.gmra.mxu2 %v278_v30 }
  0xbc   :  { %v252_v51 = vmax.f32 %v188_v26, 0.0  ;;  %v840_v26 = vld [vmem:[%s3044_s4 + $0x1b8] sm:$0xff] }
  0xbe   :  { %v1914_v48 = vpop.f32.mrf.mxu0  ;;  %v429_v63 = vpop.f32.mrf.mxu2 }
  0xbf   :  { %v1916_v49 = vpop.f32.mrf.mxu1  ;;  %520 = vst [vmem:[%s3045_s6 + $0x20] sm:$0xff] %v1914_v48  ;;  %v2046_v10 = vpop.f32.mrf.mxu3  ;;  %v653_v23 = vmul.f32 %v1914_v48, %v1914_v48 }
  0xc0   :  { %1078 = vst [vmem:[%s3046_s7 + $0x20] sm:$0xff] %v1916_v49  ;;  %v1211_v60 = vmul.f32 %v1916_v49, %v1916_v49  ;;  %v1141_v9 = vadd.f32 %v1140_v3, %v1916_v49  ;;  %v148_v49 = vmul.f32 %v1515_v20, %v80_v37  ;;  %v54_v3 = vld [vmem:[%s3043_s0 + $0xd8] sm:$0xff] }
  0xc1   :  { %383 = vmatmul.f32.gmra.mxu0 %v247_v45  ;;  %551 = vst [vmem:[%s3045_s6 + $0x118] sm:$0xff] %v429_v63  ;;  %v81_v63 = vld [vmem:[%s3043_s0 + $0x1b0] sm:$0xff] }
  0xc2   :  { %941 = vmatmul.f32.gmra.mxu1 %v805_v50  ;;  %v713_v50 = vadd.f32 %v650_v31, %v649_v33  ;;  %1109 = vst [vmem:[%s3046_s7 + $0x118] sm:$0xff] %v2046_v10  ;;  %v1274_v14 = vadd.f32 %v1273_v6, %v1211_v60  ;;  %v122_v6 = vmul.f32 %v2168_v5, %v54_v3 }
  0xc3   :  { %1037 = vmatmul.f32.gmra.mxu3 %v837_v57  ;;  %479 = vmatmul.f32.gmra.mxu2 %v279_v61 }
  0xc4   :  { %v714_v56 = vadd.f32 %v713_v50, %v651_v35  ;;  %v838_v35 = vld [vmem:[%s3044_s4 + $0x1a8] sm:$0xff] }
  0xc6   :  { %v1948_v0 = vpop.f32.mrf.mxu0  ;;  %v2101_v28 = vpop.f32.mrf.mxu2 }
  0xc7   :  { %v1950_v1 = vpop.f32.mrf.mxu1  ;;  %521 = vst [vmem:[%s3045_s6 + $0x28] sm:$0xff] %v1948_v0  ;;  %v654_v4 = vmul.f32 %v1948_v0, %v1948_v0  ;;  %v2103_v29 = vpop.f32.mrf.mxu3 }
  0xc8   :  { %1079 = vst [vmem:[%s3046_s7 + $0x28] sm:$0xff] %v1950_v1  ;;  %v1212_v7 = vmul.f32 %v1950_v1, %v1950_v1  ;;  %v1142_v25 = vadd.f32 %v1141_v9, %v1950_v1  ;;  %v216_v1 = vadd.f32 %v1536_v27, %v148_v49  ;;  %v811_v9 = vld [vmem:[%s3044_s4 + $0xd0] sm:$0xff] }
  0xc9   :  { %386 = vmatmul.f32.gmra.mxu0 %v248_v59  ;;  %v582_v59 = vadd.f32 %v581_v11, %v1886_v36  ;;  %552 = vst [vmem:[%s3045_s6 + $0x120] sm:$0xff] %v2101_v28 }
  0xca   :  { %944 = vmatmul.f32.gmra.mxu1 %v806_v2  ;;  %v715_v2 = vadd.f32 %v714_v56, %v652_v62  ;;  %v1275_v30 = vadd.f32 %v1274_v14, %v1212_v7  ;;  %1110 = vst [vmem:[%s3046_s7 + $0x120] sm:$0xff] %v2103_v29 }
  0xcb   :  { %v583_v36 = vadd.f32 %v582_v59, %v1914_v48  ;;  %1040 = vmatmul.f32.gmra.mxu3 %v838_v35  ;;  %v812_v35 = vld [vmem:[%s3044_s4 + $0xd8] sm:$0xff] }
  0xcc   :  { %v716_v8 = vadd.f32 %v715_v2, %v653_v23  ;;  %v839_v2 = vld [vmem:[%s3044_s4 + $0x1b0] sm:$0xff] }
  0xcd   :  { %v584_v21 = vadd.f32 %v583_v36, %v1948_v0  ;;  %v82_v36 = vld [vmem:[%s3043_s0 + $0x1b8] sm:$0xff] }
  0xce   :  { %v1982_v16 = vpop.f32.mrf.mxu0  ;;  %v717_v22 = vadd.f32 %v716_v8, %v654_v4  ;;  %v2142_v57 = vpop.f32.mrf.mxu2 }
  0xcf   :  { %v1984_v17 = vpop.f32.mrf.mxu1  ;;  %522 = vst [vmem:[%s3045_s6 + $0x30] sm:$0xff] %v1982_v16  ;;  %v655_v12 = vmul.f32 %v1982_v16, %v1982_v16  ;;  %v585_v32 = vadd.f32 %v584_v21, %v1982_v16  ;;  %v53_v16 = vld [vmem:[%s3043_s0 + $0xd0] sm:$0xff]  ;;  %v2144_v58 = vpop.f32.mrf.mxu3 }
  0xd0   :  { %1080 = vst [vmem:[%s3046_s7 + $0x30] sm:$0xff] %v1984_v17  ;;  %v1213_v15 = vmul.f32 %v1984_v17, %v1984_v17  ;;  %v1143_v34 = vadd.f32 %v1142_v25, %v1984_v17  ;;  %v280_v17 = vmax.f32 %v216_v1, 0.0  ;;  %v121_v62 = vmul.f32 %v1515_v20, %v53_v16 }
  0xd1   :  { %389 = vmatmul.f32.gmra.mxu0 %v249_v13  ;;  %v251_v13 = vmax.f32 %v187_v24, 0.0  ;;  %v718_v33 = vadd.f32 %v717_v22, %v655_v12  ;;  %553 = vst [vmem:[%s3045_s6 + $0x128] sm:$0xff] %v2142_v57  ;;  %v150_v12 = vmul.f32 %v2168_v5, %v82_v36 }
  0xd2   :  { %947 = vmatmul.f32.gmra.mxu1 %v807_v18  ;;  %482 = vmatmul.f32.gmra.mxu2 %v280_v17  ;;  %v189_v61 = vadd.f32 %v1536_v27, %v121_v62  ;;  %1111 = vst [vmem:[%s3046_s7 + $0x128] sm:$0xff] %v2144_v58  ;;  %v56_v62 = vld [vmem:[%s3043_s0 + $0xe8] sm:$0xff] }
  0xd3   :  { %1043 = vmatmul.f32.gmra.mxu3 %v839_v2 }
  0xd6   :  { %v2032_v44 = vpop.f32.mrf.mxu0 }
  0xd7   :  { %v2034_v45 = vpop.f32.mrf.mxu1  ;;  %523 = vst [vmem:[%s3045_s6 + $0x38] sm:$0xff] %v2032_v44  ;;  %v656_v31 = vmul.f32 %v2032_v44, %v2032_v44  ;;  %v586_v41 = vadd.f32 %v585_v32, %v2032_v44  ;;  %v810_v44 = vld [vmem:[%s3044_s4 + $0xc8] sm:$0xff]  ;;  %v83_v32 = vld [vmem:[%s3043_s0 + $0x1c0] sm:$0xff] }
  0xd8   :  { %1081 = vst [vmem:[%s3046_s7 + $0x38] sm:$0xff] %v2034_v45  ;;  %v1214_v0 = vmul.f32 %v2034_v45, %v2034_v45  ;;  %v1144_v42 = vadd.f32 %v1143_v34, %v2034_v45  ;;  %v149_v45 = vmul.f32 %v1515_v20, %v81_v63 }
  0xd9   :  { %392 = vmatmul.f32.gmra.mxu0 %v250_v38  ;;  %v1276_v38 = vadd.f32 %v1275_v30, %v1213_v15  ;;  %v719_v43 = vadd.f32 %v718_v33, %v656_v31  ;;  %v55_v30 = vld [vmem:[%s3043_s0 + $0xe0] sm:$0xff] }
  0xda   :  { %950 = vmatmul.f32.gmra.mxu1 %v808_v46  ;;  %v217_v59 = vadd.f32 %v1536_v27, %v149_v45  ;;  %v253_v27 = vmax.f32 %v189_v61, 0.0  ;;  %v123_v1 = vmul.f32 %v2168_v5, %v55_v30  ;;  %v813_v45 = vld [vmem:[%s3044_s4 + $0xe0] sm:$0xff] }
  0xdb   :  { %v1277_v46 = vadd.f32 %v1276_v38, %v1214_v0  ;;  %1046 = vmatmul.f32.gmra.mxu3 %v840_v26  ;;  %v151_v38 = vmul.f32 %v2168_v5, %v83_v32  ;;  %v843_v32 = vld [vmem:[%s3044_s4 + $0x1d0] sm:$0xff] }
  0xdc   :  { %v281_v4 = vmax.f32 %v217_v59, 0.0 }
  0xde   :  { %v348_v48 = vpop.f32.mrf.mxu0  ;;  %485 = vmatmul.f32.gmra.mxu2 %v281_v4 }
  0xdf   :  { %v906_v18 = vpop.f32.mrf.mxu1  ;;  %524 = vst [vmem:[%s3045_s6 + $0x40] sm:$0xff] %v348_v48  ;;  %v657_v39 = vmul.f32 %v348_v48, %v348_v48  ;;  %v587_v47 = vadd.f32 %v586_v41, %v348_v48  ;;  %v2181_v48 = vpop.f32.mrf.mxu2 }
  0xe0   :  { %1082 = vst [vmem:[%s3046_s7 + $0x40] sm:$0xff] %v906_v18  ;;  %v1215_v40 = vmul.f32 %v906_v18, %v906_v18  ;;  %v1145_v50 = vadd.f32 %v1144_v42, %v906_v18  ;;  %v2183_v18 = vpop.f32.mrf.mxu3 }
  0xe1   :  { %395 = vmatmul.f32.gmra.mxu0 %v251_v13  ;;  %v720_v11 = vadd.f32 %v719_v43, %v657_v39  ;;  %554 = vst [vmem:[%s3045_s6 + $0x130] sm:$0xff] %v2181_v48 }
  0xe2   :  { %953 = vmatmul.f32.gmra.mxu1 %v809_v19  ;;  %v1278_v52 = vadd.f32 %v1277_v46, %v1215_v40  ;;  %v2191_v19 = vld [vmem:[%s3042_s2] ss:$0 sm:$0xff]  ;;  %1112 = vst [vmem:[%s3046_s7 + $0x130] sm:$0xff] %v2183_v18 }
  0xe3   :  { %v218_v49 = vadd.f32 %v2191_v19, %v150_v12  ;;  %v190_v25 = vadd.f32 %v2191_v19, %v122_v6  ;;  %v219_v43 = vadd.f32 %v2191_v19, %v151_v38  ;;  %v57_v6 = vld [vmem:[%s3043_s0 + $0xf0] sm:$0xff] }
  0xe5   :  { %v282_v31 = vmax.f32 %v218_v49, 0.0  ;;  %v254_v0 = vmax.f32 %v190_v25, 0.0  ;;  %v283_v63 = vmax.f32 %v219_v43, 0.0 }
  0xe6   :  { %v351_v53 = vpop.f32.mrf.mxu0 }
  0xe7   :  { %v909_v54 = vpop.f32.mrf.mxu1  ;;  %525 = vst [vmem:[%s3045_s6 + $0x48] sm:$0xff] %v351_v53  ;;  %v588_v55 = vadd.f32 %v587_v47, %v351_v53  ;;  %v658_v56 = vmul.f32 %v351_v53, %v351_v53  ;;  %488 = vmatmul.f32.gmra.mxu2 %v282_v31  ;;  %v2220_v41 = vpop.f32.mrf.mxu2  ;;  %v84_v53 = vld [vmem:[%s3043_s0 + $0x1c8] sm:$0xff] }
  0xe8   :  { %v1146_v23 = vadd.f32 %v1145_v50, %v909_v54  ;;  %v1216_v24 = vmul.f32 %v909_v54, %v909_v54  ;;  %1083 = vst [vmem:[%s3046_s7 + $0x48] sm:$0xff] %v909_v54  ;;  %v2222_v42 = vpop.f32.mrf.mxu3  ;;  %v191_v50 = vadd.f32 %v2191_v19, %v123_v1 }
  0xe9   :  { %v721_v60 = vadd.f32 %v720_v11, %v658_v56  ;;  %398 = vmatmul.f32.gmra.mxu0 %v252_v51  ;;  %555 = vst [vmem:[%s3045_s6 + $0x138] sm:$0xff] %v2220_v41  ;;  %v841_v51 = vld [vmem:[%s3044_s4 + $0x1c0] sm:$0xff] }
  0xea   :  { %v1279_v20 = vadd.f32 %v1278_v52, %v1216_v24  ;;  %956 = vmatmul.f32.gmra.mxu1 %v810_v44  ;;  %1113 = vst [vmem:[%s3046_s7 + $0x138] sm:$0xff] %v2222_v42  ;;  %1049 = vmatmul.f32.gmra.mxu3 %v841_v51  ;;  %v255_v11 = vmax.f32 %v191_v50, 0.0  ;;  %v124_v52 = vmul.f32 %v2168_v5, %v56_v62 }
  0xec   :  { %v192_v4 = vadd.f32 %v2191_v19, %v124_v52 }
  0xee   :  { %v354_v7 = vpop.f32.mrf.mxu0 }
  0xef   :  { %v912_v8 = vpop.f32.mrf.mxu1  ;;  %526 = vst [vmem:[%s3045_s6 + $0x50] sm:$0xff] %v354_v7  ;;  %v589_v13 = vadd.f32 %v588_v55, %v354_v7  ;;  %v659_v37 = vmul.f32 %v354_v7, %v354_v7  ;;  %491 = vmatmul.f32.gmra.mxu2 %v283_v63  ;;  %v152_v55 = vmul.f32 %v2168_v5, %v84_v53  ;;  %v256_v7 = vmax.f32 %v192_v4, 0.0 }
  0xf0   :  { %v1147_v14 = vadd.f32 %v1146_v23, %v912_v8  ;;  %v1217_v15 = vmul.f32 %v912_v8, %v912_v8  ;;  %1084 = vst [vmem:[%s3046_s7 + $0x50] sm:$0xff] %v912_v8  ;;  %v125_v8 = vmul.f32 %v2168_v5, %v57_v6 }
  0xf1   :  { %v722_v21 = vadd.f32 %v721_v60, %v659_v37  ;;  %401 = vmatmul.f32.gmra.mxu0 %v253_v27  ;;  %v2254_v60 = vpop.f32.mrf.mxu2  ;;  %v220_v61 = vadd.f32 %v2191_v19, %v152_v55  ;;  %v842_v27 = vld [vmem:[%s3044_s4 + $0x1c8] sm:$0xff] }
  0xf2   :  { %v1280_v22 = vadd.f32 %v1279_v20, %v1217_v15  ;;  %959 = vmatmul.f32.gmra.mxu1 %v811_v9  ;;  %v2256_v20 = vpop.f32.mrf.mxu3  ;;  %556 = vst [vmem:[%s3045_s6 + $0x140] sm:$0xff] %v2254_v60  ;;  %1052 = vmatmul.f32.gmra.mxu3 %v842_v27  ;;  %v85_v9 = vld [vmem:[%s3043_s0 + $0x1d0] sm:$0xff]  ;;  %v814_v37 = vld [vmem:[%s3044_s4 + $0xe8] sm:$0xff]  ;;  %v193_v1 = vadd.f32 %v2191_v19, %v125_v8 }
  0xf3   :  { %1114 = vst [vmem:[%s3046_s7 + $0x140] sm:$0xff] %v2256_v20  ;;  %v284_v36 = vmax.f32 %v220_v61, 0.0 }
  0xf6   :  { %v357_v33 = vpop.f32.mrf.mxu0 }
  0xf7   :  { %v915_v34 = vpop.f32.mrf.mxu1  ;;  %527 = vst [vmem:[%s3045_s6 + $0x58] sm:$0xff] %v357_v33  ;;  %v590_v39 = vadd.f32 %v589_v13, %v357_v33  ;;  %v660_v40 = vmul.f32 %v357_v33, %v357_v33  ;;  %494 = vmatmul.f32.gmra.mxu2 %v284_v36  ;;  %v58_v33 = vld [vmem:[%s3043_s0 + $0xf8] sm:$0xff] }
  0xf8   :  { %v1148_v16 = vadd.f32 %v1147_v14, %v915_v34  ;;  %v1218_v17 = vmul.f32 %v915_v34, %v915_v34  ;;  %1085 = vst [vmem:[%s3046_s7 + $0x58] sm:$0xff] %v915_v34  ;;  %v153_v14 = vmul.f32 %v2168_v5, %v85_v9  ;;  %v126_v38 = vmul.f32 %v2168_v5, %v58_v33 }
  0xf9   :  { %v723_v46 = vadd.f32 %v722_v21, %v660_v40  ;;  %404 = vmatmul.f32.gmra.mxu0 %v254_v0  ;;  %v2288_v25 = vpop.f32.mrf.mxu2 }
  0xfa   :  { %v1281_v47 = vadd.f32 %v1280_v22, %v1218_v17  ;;  %962 = vmatmul.f32.gmra.mxu1 %v812_v35  ;;  %v2290_v26 = vpop.f32.mrf.mxu3  ;;  %v221_v30 = vadd.f32 %v2191_v19, %v153_v14  ;;  %557 = vst [vmem:[%s3045_s6 + $0x148] sm:$0xff] %v2288_v25  ;;  %1055 = vmatmul.f32.gmra.mxu3 %v843_v32  ;;  %v257_v35 = vmax.f32 %v193_v1, 0.0  ;;  %v815_v17 = vld [vmem:[%s3044_s4 + $0xf0] sm:$0xff] }
  0xfb   :  { %1115 = vst [vmem:[%s3046_s7 + $0x148] sm:$0xff] %v2290_v26 }
  0xfc   :  { %v285_v34 = vmax.f32 %v221_v30, 0.0 }
  0xfe   :  { %v360_v54 = vpop.f32.mrf.mxu0 }
  0xff   :  { %v918_v44 = vpop.f32.mrf.mxu1  ;;  %528 = vst [vmem:[%s3045_s6 + $0x60] sm:$0xff] %v360_v54  ;;  %v591_v56 = vadd.f32 %v590_v39, %v360_v54  ;;  %v661_v23 = vmul.f32 %v360_v54, %v360_v54  ;;  %497 = vmatmul.f32.gmra.mxu2 %v285_v34  ;;  %v86_v39 = vld [vmem:[%s3043_s0 + $0x1d8] sm:$0xff]  ;;  %v194_v54 = vadd.f32 %v2191_v19, %v126_v38 }
 0x100   :  { %v1149_v24 = vadd.f32 %v1148_v16, %v918_v44  ;;  %v1219_v59 = vmul.f32 %v918_v44, %v918_v44  ;;  %1086 = vst [vmem:[%s3046_s7 + $0x60] sm:$0xff] %v918_v44  ;;  %v154_v43 = vmul.f32 %v2168_v5, %v86_v39  ;;  %v844_v44 = vld [vmem:[%s3044_s4 + $0x1d8] sm:$0xff]  ;;  %v89_v39 = vld [vmem:[%s3043_s0 + $0x1f0] sm:$0xff] }
 0x101   :  { %v724_v2 = vadd.f32 %v723_v46, %v661_v23  ;;  %407 = vmatmul.f32.gmra.mxu0 %v255_v11  ;;  %v2322_v62 = vpop.f32.mrf.mxu2  ;;  %v258_v55 = vmax.f32 %v194_v54, 0.0 }
 0x102   :  { %v1282_v3 = vadd.f32 %v1281_v47, %v1219_v59  ;;  %965 = vmatmul.f32.gmra.mxu1 %v813_v45  ;;  %v2324_v63 = vpop.f32.mrf.mxu3  ;;  %v222_v11 = vadd.f32 %v2191_v19, %v154_v43  ;;  %558 = vst [vmem:[%s3045_s6 + $0x150] sm:$0xff] %v2322_v62  ;;  %1058 = vmatmul.f32.gmra.mxu3 %v844_v44  ;;  %v816_v59 = vld [vmem:[%s3044_s4 + $0xf8] sm:$0xff]  ;;  %v847_v44 = vld [vmem:[%s3044_s4 + $0x1f0] sm:$0xff] }
 0x103   :  { %1116 = vst [vmem:[%s3046_s7 + $0x150] sm:$0xff] %v2324_v63 }
 0x104   :  { %v286_v45 = vmax.f32 %v222_v11, 0.0 }
 0x106   :  { %v363_v12 = vpop.f32.mrf.mxu0 }
 0x107   :  { %v921_v13 = vpop.f32.mrf.mxu1  ;;  %529 = vst [vmem:[%s3045_s6 + $0x68] sm:$0xff] %v363_v12  ;;  %v592_v15 = vadd.f32 %v591_v56, %v363_v12  ;;  %v662_v49 = vmul.f32 %v363_v12, %v363_v12  ;;  %500 = vmatmul.f32.gmra.mxu2 %v286_v45  ;;  %v87_v56 = vld [vmem:[%s3043_s0 + $0x1e0] sm:$0xff] }
 0x108   :  { %v1150_v21 = vadd.f32 %v1149_v24, %v921_v13  ;;  %v1220_v22 = vmul.f32 %v921_v13, %v921_v13  ;;  %1087 = vst [vmem:[%s3046_s7 + $0x68] sm:$0xff] %v921_v13  ;;  %v155_v61 = vmul.f32 %v2168_v5, %v87_v56  ;;  %v845_v12 = vld [vmem:[%s3044_s4 + $0x1e0] sm:$0xff] }
 0x109   :  { %v725_v31 = vadd.f32 %v724_v2, %v662_v49  ;;  %410 = vmatmul.f32.gmra.mxu0 %v256_v7  ;;  %v2352_v6 = vpop.f32.mrf.mxu2 }
 0x10a   :  { %v1283_v0 = vadd.f32 %v1282_v3, %v1220_v22  ;;  %968 = vmatmul.f32.gmra.mxu1 %v814_v37  ;;  %v2354_v36 = vpop.f32.mrf.mxu3  ;;  %v223_v7 = vadd.f32 %v2191_v19, %v155_v61  ;;  %559 = vst [vmem:[%s3045_s6 + $0x158] sm:$0xff] %v2352_v6  ;;  %1061 = vmatmul.f32.gmra.mxu3 %v845_v12  ;;  %v88_v37 = vld [vmem:[%s3043_s0 + $0x1e8] sm:$0xff] }
 0x10b   :  { %1117 = vst [vmem:[%s3046_s7 + $0x158] sm:$0xff] %v2354_v36  ;;  %v156_v49 = vmul.f32 %v2168_v5, %v88_v37 }
 0x10c   :  { %v287_v13 = vmax.f32 %v223_v7, 0.0 }
 0x10d   :  { %v224_v32 = vadd.f32 %v2191_v19, %v156_v49 }
 0x10e   :  { %v366_v40 = vpop.f32.mrf.mxu0 }
 0x10f   :  { %v924_v16 = vpop.f32.mrf.mxu1  ;;  %530 = vst [vmem:[%s3045_s6 + $0x70] sm:$0xff] %v366_v40  ;;  %v593_v46 = vadd.f32 %v592_v15, %v366_v40  ;;  %v663_v47 = vmul.f32 %v366_v40, %v366_v40  ;;  %503 = vmatmul.f32.gmra.mxu2 %v287_v13  ;;  %v288_v38 = vmax.f32 %v224_v32, 0.0 }
 0x110   :  { %v1151_v50 = vadd.f32 %v1150_v21, %v924_v16  ;;  %v1221_v51 = vmul.f32 %v924_v16, %v924_v16  ;;  %1088 = vst [vmem:[%s3046_s7 + $0x70] sm:$0xff] %v924_v16 }
 0x111   :  { %v726_v52 = vadd.f32 %v725_v31, %v663_v47  ;;  %413 = vmatmul.f32.gmra.mxu0 %v257_v35  ;;  %v846_v35 = vld [vmem:[%s3044_s4 + $0x1e8] sm:$0xff] }
 0x112   :  { %v1284_v53 = vadd.f32 %v1283_v0, %v1221_v51  ;;  %971 = vmatmul.f32.gmra.mxu1 %v815_v17  ;;  %v2378_v0 = vpop.f32.mrf.mxu2  ;;  %v2380_v1 = vpop.f32.mrf.mxu3  ;;  %1064 = vmatmul.f32.gmra.mxu3 %v846_v35  ;;  %v157_v17 = vmul.f32 %v2168_v5, %v89_v39 }
 0x113   :  { %560 = vst [vmem:[%s3045_s6 + $0x160] sm:$0xff] %v2378_v0 }
 0x114   :  { %1118 = vst [vmem:[%s3046_s7 + $0x160] sm:$0xff] %v2380_v1 }
 0x116   :  { %v369_v23 = vpop.f32.mrf.mxu0 }
 0x117   :  { %v927_v24 = vpop.f32.mrf.mxu1  ;;  %531 = vst [vmem:[%s3045_s6 + $0x78] sm:$0xff] %v369_v23  ;;  %v594_v2 = vadd.f32 %v593_v46, %v369_v23  ;;  %v664_v3 = vmul.f32 %v369_v23, %v369_v23  ;;  %506 = vmatmul.f32.gmra.mxu2 %v288_v38 }
 0x118   :  { %v1152_v4 = vadd.f32 %v1151_v50, %v927_v24  ;;  %v1222_v27 = vmul.f32 %v927_v24, %v927_v24  ;;  %1089 = vst [vmem:[%s3046_s7 + $0x78] sm:$0xff] %v927_v24 }
 0x119   :  { %v727_v8 = vadd.f32 %v726_v52, %v664_v3  ;;  %416 = vmatmul.f32.gmra.mxu0 %v258_v55  ;;  %v225_v52 = vadd.f32 %v2191_v19, %v157_v17  ;;  %v90_v55 = vld [vmem:[%s3043_s0 + $0x1f8] sm:$0xff] }
 0x11a   :  { %v1285_v9 = vadd.f32 %v1284_v53, %v1222_v27  ;;  %974 = vmatmul.f32.gmra.mxu1 %v816_v59  ;;  %v2404_v51 = vpop.f32.mrf.mxu2  ;;  %v2406_v11 = vpop.f32.mrf.mxu3  ;;  %1067 = vmatmul.f32.gmra.mxu3 %v847_v44  ;;  %v158_v24 = vmul.f32 %v2168_v5, %v90_v55 }
 0x11b   :  { %561 = vst [vmem:[%s3045_s6 + $0x168] sm:$0xff] %v2404_v51  ;;  %v289_v45 = vmax.f32 %v225_v52, 0.0 }
 0x11c   :  { %1119 = vst [vmem:[%s3046_s7 + $0x168] sm:$0xff] %v2406_v11  ;;  %v226_v7 = vadd.f32 %v2191_v19, %v158_v24 }
 0x11e   :  { %v372_v14 = vpop.f32.mrf.mxu0  ;;  %v290_v12 = vmax.f32 %v226_v7, 0.0 }
 0x11f   :  { %v930_v15 = vpop.f32.mrf.mxu1  ;;  %532 = vst [vmem:[%s3045_s6 + $0x80] sm:$0xff] %v372_v14  ;;  %v595_v21 = vadd.f32 %v594_v2, %v372_v14  ;;  %v665_v22 = vmul.f32 %v372_v14, %v372_v14  ;;  %509 = vmatmul.f32.gmra.mxu2 %v289_v45 }
 0x120   :  { %v1153_v30 = vadd.f32 %v1152_v4, %v930_v15  ;;  %v1223_v31 = vmul.f32 %v930_v15, %v930_v15  ;;  %1090 = vst [vmem:[%s3046_s7 + $0x80] sm:$0xff] %v930_v15 }
 0x121   :  { %v728_v33 = vadd.f32 %v727_v8, %v665_v22 }
 0x122   :  { %v1286_v34 = vadd.f32 %v1285_v9, %v1223_v31  ;;  %v2430_v4 = vpop.f32.mrf.mxu2  ;;  %v2432_v27 = vpop.f32.mrf.mxu3  ;;  %v848_v9 = vld [vmem:[%s3044_s4 + $0x1f8] sm:$0xff] }
 0x123   :  { %562 = vst [vmem:[%s3045_s6 + $0x170] sm:$0xff] %v2430_v4  ;;  %1070 = vmatmul.f32.gmra.mxu3 %v848_v9 }
 0x124   :  { %1120 = vst [vmem:[%s3046_s7 + $0x170] sm:$0xff] %v2432_v27 }
 0x126   :  { %v375_v40 = vpop.f32.mrf.mxu0 }
 0x127   :  { %v933_v16 = vpop.f32.mrf.mxu1  ;;  %533 = vst [vmem:[%s3045_s6 + $0x88] sm:$0xff] %v375_v40  ;;  %v596_v43 = vadd.f32 %v595_v21, %v375_v40  ;;  %v666_v46 = vmul.f32 %v375_v40, %v375_v40  ;;  %512 = vmatmul.f32.gmra.mxu2 %v290_v12 }
 0x128   :  { %v1154_v47 = vadd.f32 %v1153_v30, %v933_v16  ;;  %v1224_v50 = vmul.f32 %v933_v16, %v933_v16  ;;  %1091 = vst [vmem:[%s3046_s7 + $0x88] sm:$0xff] %v933_v16 }
 0x129   :  { %v729_v53 = vadd.f32 %v728_v33, %v666_v46 }
 0x12a   :  { %v1287_v54 = vadd.f32 %v1286_v34, %v1224_v50  ;;  %v2452_v21 = vpop.f32.mrf.mxu2  ;;  %v2454_v22 = vpop.f32.mrf.mxu3 }
 0x12b   :  { %563 = vst [vmem:[%s3045_s6 + $0x178] sm:$0xff] %v2452_v21 }
 0x12c   :  { %1121 = vst [vmem:[%s3046_s7 + $0x178] sm:$0xff] %v2454_v22 }
 0x12e   :  { %v378_v56 = vpop.f32.mrf.mxu0 }
 0x12f   :  { %v936_v23 = vpop.f32.mrf.mxu1  ;;  %534 = vst [vmem:[%s3045_s6 + $0x90] sm:$0xff] %v378_v56  ;;  %v597_v59 = vadd.f32 %v596_v43, %v378_v56  ;;  %v667_v61 = vmul.f32 %v378_v56, %v378_v56 }
 0x130   :  { %v1155_v2 = vadd.f32 %v1154_v47, %v936_v23  ;;  %v1225_v3 = vmul.f32 %v936_v23, %v936_v23  ;;  %1092 = vst [vmem:[%s3046_s7 + $0x90] sm:$0xff] %v936_v23 }
 0x131   :  { %v730_v8 = vadd.f32 %v729_v53, %v667_v61 }
 0x132   :  { %v1288_v5 = vadd.f32 %v1287_v54, %v1225_v3  ;;  %v2474_v40 = vpop.f32.mrf.mxu2  ;;  %v2476_v16 = vpop.f32.mrf.mxu3 }
 0x133   :  { %564 = vst [vmem:[%s3045_s6 + $0x180] sm:$0xff] %v2474_v40 }
 0x134   :  { %1122 = vst [vmem:[%s3046_s7 + $0x180] sm:$0xff] %v2476_v16 }
 0x136   :  { %v381_v19 = vpop.f32.mrf.mxu0 }
 0x137   :  { %v939_v13 = vpop.f32.mrf.mxu1  ;;  %535 = vst [vmem:[%s3045_s6 + $0x98] sm:$0xff] %v381_v19  ;;  %v598_v37 = vadd.f32 %v597_v59, %v381_v19  ;;  %v668_v14 = vmul.f32 %v381_v19, %v381_v19 }
 0x138   :  { %v1156_v15 = vadd.f32 %v1155_v2, %v939_v13  ;;  %v1226_v49 = vmul.f32 %v939_v13, %v939_v13  ;;  %1093 = vst [vmem:[%s3046_s7 + $0x98] sm:$0xff] %v939_v13 }
 0x139   :  { %v731_v30 = vadd.f32 %v730_v8, %v668_v14 }
 0x13a   :  { %v1289_v31 = vadd.f32 %v1288_v5, %v1226_v49  ;;  %v2501_v50 = vpop.f32.mrf.mxu2  ;;  %v2503_v52 = vpop.f32.mrf.mxu3 }
 0x13b   :  { %565 = vst [vmem:[%s3045_s6 + $0x188] sm:$0xff] %v2501_v50 }
 0x13c   :  { %1123 = vst [vmem:[%s3046_s7 + $0x188] sm:$0xff] %v2503_v52 }
 0x13e   :  { %v384_v32 = vpop.f32.mrf.mxu0 }
 0x13f   :  { %v942_v33 = vpop.f32.mrf.mxu1  ;;  %536 = vst [vmem:[%s3045_s6 + $0xa0] sm:$0xff] %v384_v32  ;;  %v2470_v34 = vadd.f32 %v598_v37, %v384_v32  ;;  %v669_v35 = vmul.f32 %v384_v32, %v384_v32 }
 0x140   :  { %v2472_v38 = vadd.f32 %v1156_v15, %v942_v33  ;;  %v1227_v39 = vmul.f32 %v942_v33, %v942_v33  ;;  %1094 = vst [vmem:[%s3046_s7 + $0xa0] sm:$0xff] %v942_v33 }
 0x141   :  { %v2481_v17 = vadd.f32 %v731_v30, %v669_v35 }
 0x142   :  { %v2483_v43 = vadd.f32 %v1289_v31, %v1227_v39  ;;  %v2525_v44 = vpop.f32.mrf.mxu2  ;;  %v2527_v45 = vpop.f32.mrf.mxu3 }
 0x143   :  { %3075 = vst [vmem:[#allocation2_spill] sm:$0xff] %v2527_v45 }
 0x144   :  { %566 = vst [vmem:[%s3045_s6 + $0x190] sm:$0xff] %v2525_v44 }
 0x145   :  { %1124 = vst [vmem:[%s3046_s7 + $0x190] sm:$0xff] %v2527_v45 }
 0x146   :  { %v2493_v46 = vpop.f32.mrf.mxu0 }
 0x147   :  { %v2495_v47 = vpop.f32.mrf.mxu1  ;;  %537 = vst [vmem:[%s3045_s6 + $0xa8] sm:$0xff] %v2493_v46  ;;  %v670_v39 = vmul.f32 %v2493_v46, %v2493_v46 }
 0x148   :  { %1095 = vst [vmem:[%s3046_s7 + $0xa8] sm:$0xff] %v2495_v47 }
 0x14a   :  { %v2549_v23 = vpop.f32.mrf.mxu2  ;;  %v2551_v24 = vpop.f32.mrf.mxu3 }
 0x14b   :  { %3076 = vst [vmem:[#allocation3_spill] sm:$0xff] %v2549_v23 }
 0x14c   :  { %3077 = vst [vmem:[#allocation4_spill] sm:$0xff] %v2551_v24 }
 0x14d   :  { %567 = vst [vmem:[%s3045_s6 + $0x198] sm:$0xff] %v2549_v23 }
 0x14e   :  { %v2517_v53 = vpop.f32.mrf.mxu0  ;;  %1125 = vst [vmem:[%s3046_s7 + $0x198] sm:$0xff] %v2551_v24 }
 0x14f   :  { %v2519_v54 = vpop.f32.mrf.mxu1  ;;  %538 = vst [vmem:[%s3045_s6 + $0xb0] sm:$0xff] %v2517_v53 }
 0x150   :  { %1096 = vst [vmem:[%s3046_s7 + $0xb0] sm:$0xff] %v2519_v54 }
 0x152   :  { %v2573_v2 = vpop.f32.mrf.mxu2  ;;  %v2575_v3 = vpop.f32.mrf.mxu3 }
 0x153   :  { %3078 = vst [vmem:[#allocation5_spill] sm:$0xff] %v2573_v2 }
 0x154   :  { %3079 = vst [vmem:[#allocation6_spill] sm:$0xff] %v2575_v3 }
 0x155   :  { %568 = vst [vmem:[%s3045_s6 + $0x1a0] sm:$0xff] %v2573_v2 }
 0x156   :  { %v2541_v55 = vpop.f32.mrf.mxu0  ;;  %1126 = vst [vmem:[%s3046_s7 + $0x1a0] sm:$0xff] %v2575_v3 }
 0x157   :  { %v2543_v56 = vpop.f32.mrf.mxu1  ;;  %539 = vst [vmem:[%s3045_s6 + $0xb8] sm:$0xff] %v2541_v55  ;;  %v672_v3 = vmul.f32 %v2541_v55, %v2541_v55 }
 0x158   :  { %1097 = vst [vmem:[%s3046_s7 + $0xb8] sm:$0xff] %v2543_v56  ;;  %v1230_v2 = vmul.f32 %v2543_v56, %v2543_v56 }
 0x15a   :  { %v2597_v5 = vpop.f32.mrf.mxu2  ;;  %v2599_v9 = vpop.f32.mrf.mxu3 }
 0x15b   :  { %3080 = vst [vmem:[#allocation7_spill] sm:$0xff] %v2597_v5 }
 0x15c   :  { %3081 = vst [vmem:[#allocation8_spill] sm:$0xff] %v2599_v9 }
 0x15d   :  { %569 = vst [vmem:[%s3045_s6 + $0x1a8] sm:$0xff] %v2597_v5  ;;  %v733_v5 = vadd.f32 %v2481_v17, %v670_v39 }
 0x15e   :  { %v2565_v59 = vpop.f32.mrf.mxu0  ;;  %1127 = vst [vmem:[%s3046_s7 + $0x1a8] sm:$0xff] %v2599_v9  ;;  %v1158_v9 = vadd.f32 %v2472_v38, %v2495_v47 }
 0x15f   :  { %v2567_v61 = vpop.f32.mrf.mxu1  ;;  %540 = vst [vmem:[%s3045_s6 + $0xc0] sm:$0xff] %v2565_v59 }
 0x160   :  { %1098 = vst [vmem:[%s3046_s7 + $0xc0] sm:$0xff] %v2567_v61  ;;  %v1231_v38 = vmul.f32 %v2567_v61, %v2567_v61 }
 0x162   :  { %v2621_v13 = vpop.f32.mrf.mxu2  ;;  %v2623_v37 = vpop.f32.mrf.mxu3 }
 0x163   :  { %3082 = vst [vmem:[#allocation9_spill] sm:$0xff] %v2621_v13 }
 0x164   :  { %3083 = vst [vmem:[#allocation10_spill] sm:$0xff] %v2623_v37 }
 0x165   :  { %570 = vst [vmem:[%s3045_s6 + $0x1b0] sm:$0xff] %v2621_v13  ;;  %v600_v13 = vadd.f32 %v2470_v34, %v2493_v46  ;;  %v673_v34 = vmul.f32 %v2565_v59, %v2565_v59 }
 0x166   :  { %v2589_v7 = vpop.f32.mrf.mxu0  ;;  %1128 = vst [vmem:[%s3046_s7 + $0x1b0] sm:$0xff] %v2623_v37  ;;  %v1229_v37 = vmul.f32 %v2519_v54, %v2519_v54 }
 0x167   :  { %v2591_v8 = vpop.f32.mrf.mxu1  ;;  %541 = vst [vmem:[%s3045_s6 + $0xc8] sm:$0xff] %v2589_v7  ;;  %v601_v24 = vadd.f32 %v600_v13, %v2517_v53  ;;  %v674_v13 = vmul.f32 %v2589_v7, %v2589_v7 }
 0x168   :  { %1099 = vst [vmem:[%s3046_s7 + $0xc8] sm:$0xff] %v2591_v8 }
 0x169   :  { %v602_v46 = vadd.f32 %v601_v24, %v2541_v55 }
 0x16a   :  { %v2645_v49 = vpop.f32.mrf.mxu2  ;;  %v2647_v30 = vpop.f32.mrf.mxu3 }
 0x16b   :  { %3084 = vst [vmem:[#allocation11_spill] sm:$0xff] %v2645_v49  ;;  %v603_v55 = vadd.f32 %v602_v46, %v2565_v59 }
 0x16c   :  { %3085 = vst [vmem:[#allocation12_spill] sm:$0xff] %v2647_v30 }
 0x16d   :  { %571 = vst [vmem:[%s3045_s6 + $0x1b8] sm:$0xff] %v2645_v49  ;;  %v1228_v49 = vmul.f32 %v2495_v47, %v2495_v47  ;;  %v604_v59 = vadd.f32 %v603_v55, %v2589_v7 }
 0x16e   :  { %v2613_v12 = vpop.f32.mrf.mxu0  ;;  %1129 = vst [vmem:[%s3046_s7 + $0x1b8] sm:$0xff] %v2647_v30  ;;  %v671_v30 = vmul.f32 %v2517_v53, %v2517_v53 }
 0x16f   :  { %v2615_v19 = vpop.f32.mrf.mxu1  ;;  %542 = vst [vmem:[%s3045_s6 + $0xd0] sm:$0xff] %v2613_v12  ;;  %v675_v24 = vmul.f32 %v2613_v12, %v2613_v12 }
 0x170   :  { %1100 = vst [vmem:[%s3046_s7 + $0xd0] sm:$0xff] %v2615_v19  ;;  %v734_v23 = vadd.f32 %v733_v5, %v671_v30 }
 0x172   :  { %v2669_v33 = vpop.f32.mrf.mxu2  ;;  %v2671_v35 = vpop.f32.mrf.mxu3  ;;  %v735_v5 = vadd.f32 %v734_v23, %v672_v3 }
 0x173   :  { %3086 = vst [vmem:[#allocation13_spill] sm:$0xff] %v2669_v33 }
 0x174   :  { %3087 = vst [vmem:[#allocation14_spill] sm:$0xff] %v2671_v35 }
 0x175   :  { %572 = vst [vmem:[%s3045_s6 + $0x1c0] sm:$0xff] %v2669_v33  ;;  %v1291_v33 = vadd.f32 %v2483_v43, %v1228_v49 }
 0x176   :  { %v2637_v14 = vpop.f32.mrf.mxu0  ;;  %1130 = vst [vmem:[%s3046_s7 + $0x1c0] sm:$0xff] %v2671_v35  ;;  %v1159_v35 = vadd.f32 %v1158_v9, %v2519_v54 }
 0x177   :  { %v2639_v15 = vpop.f32.mrf.mxu1  ;;  %543 = vst [vmem:[%s3045_s6 + $0xd8] sm:$0xff] %v2637_v14  ;;  %v1292_v45 = vadd.f32 %v1291_v33, %v1229_v37  ;;  %v1232_v37 = vmul.f32 %v2591_v8, %v2591_v8  ;;  %v676_v30 = vmul.f32 %v2637_v14, %v2637_v14 }
 0x178   :  { %1101 = vst [vmem:[%s3046_s7 + $0xd8] sm:$0xff] %v2639_v15  ;;  %v1160_v47 = vadd.f32 %v1159_v35, %v2543_v56  ;;  %v1234_v33 = vmul.f32 %v2639_v15, %v2639_v15  ;;  %v605_v35 = vadd.f32 %v604_v59, %v2613_v12 }
 0x179   :  { %v1293_v9 = vadd.f32 %v1292_v45, %v1230_v2  ;;  %v736_v45 = vadd.f32 %v735_v5, %v673_v34  ;;  %v1233_v2 = vmul.f32 %v2615_v19, %v2615_v19 }
 0x17a   :  { %v2714_v53 = vpop.f32.mrf.mxu2  ;;  %v2716_v54 = vpop.f32.mrf.mxu3  ;;  %v1161_v56 = vadd.f32 %v1160_v47, %v2567_v61  ;;  %v606_v5 = vadd.f32 %v605_v35, %v2637_v14 }
 0x17b   :  { %573 = vst [vmem:[%s3045_s6 + $0x1c8] sm:$0xff] %v2714_v53  ;;  %v1294_v23 = vadd.f32 %v1293_v9, %v1231_v38  ;;  %v737_v3 = vadd.f32 %v736_v45, %v674_v13 }
 0x17c   :  { %1131 = vst [vmem:[%s3046_s7 + $0x1c8] sm:$0xff] %v2716_v54  ;;  %v1162_v61 = vadd.f32 %v1161_v56, %v2591_v8 }
 0x17d   :  { %v1295_v49 = vadd.f32 %v1294_v23, %v1232_v37  ;;  %v738_v34 = vadd.f32 %v737_v3, %v675_v24 }
 0x17e   :  { %v2661_v31 = vpop.f32.mrf.mxu0  ;;  %v1163_v39 = vadd.f32 %v1162_v61, %v2615_v19 }
 0x17f   :  { %v2663_v32 = vpop.f32.mrf.mxu1  ;;  %544 = vst [vmem:[%s3045_s6 + $0xe0] sm:$0xff] %v2661_v31  ;;  %v1296_v38 = vadd.f32 %v1295_v49, %v1233_v2  ;;  %v677_v46 = vmul.f32 %v2661_v31, %v2661_v31  ;;  %v739_v13 = vadd.f32 %v738_v34, %v676_v30  ;;  %v607_v14 = vadd.f32 %v606_v5, %v2661_v31 }
 0x180   :  { %1102 = vst [vmem:[%s3046_s7 + $0xe0] sm:$0xff] %v2663_v32  ;;  %v1235_v7 = vmul.f32 %v2663_v32, %v2663_v32  ;;  %v1164_v9 = vadd.f32 %v1163_v39, %v2639_v15 }
 0x181   :  { %v1297_v37 = vadd.f32 %v1296_v38, %v1234_v33  ;;  %v740_v45 = vadd.f32 %v739_v13, %v677_v46 }
 0x182   :  { %v2756_v12 = vpop.f32.mrf.mxu2  ;;  %v2758_v19 = vpop.f32.mrf.mxu3  ;;  %v1165_v15 = vadd.f32 %v1164_v9, %v2663_v32 }
 0x183   :  { %574 = vst [vmem:[%s3045_s6 + $0x1d0] sm:$0xff] %v2756_v12  ;;  %v1298_v23 = vadd.f32 %v1297_v37, %v1235_v7 }
 0x184   :  { %1132 = vst [vmem:[%s3046_s7 + $0x1d0] sm:$0xff] %v2758_v19 }
 0x186   :  { %v411_v17 = vpop.f32.mrf.mxu0 }
 0x187   :  { %v969_v43 = vpop.f32.mrf.mxu1  ;;  %545 = vst [vmem:[%s3045_s6 + $0xe8] sm:$0xff] %v411_v17  ;;  %v678_v55 = vmul.f32 %v411_v17, %v411_v17  ;;  %v608_v59 = vadd.f32 %v607_v14, %v411_v17  ;;  %v1396_v14 = vld [vmem:[%s3045_s6 + $0x108] sm:$0xff] }
 0x188   :  { %1103 = vst [vmem:[%s3046_s7 + $0xe8] sm:$0xff] %v969_v43  ;;  %v1236_v56 = vmul.f32 %v969_v43, %v969_v43  ;;  %v1166_v61 = vadd.f32 %v1165_v15, %v969_v43  ;;  %v1394_v43 = vld [vmem:[%s3045_s6 + $0x100] sm:$0xff]  ;;  %v682_v15 = vmul.f32 %v1396_v14, %v1396_v14 }
 0x189   :  { %v741_v3 = vadd.f32 %v740_v45, %v678_v55  ;;  %v1397_v45 = vld [vmem:[%s3046_s7 + $0x108] sm:$0xff] }
 0x18a   :  { %v1299_v31 = vadd.f32 %v1298_v23, %v1236_v56  ;;  %v2776_v5 = vpop.f32.mrf.mxu2  ;;  %v2778_v17 = vpop.f32.mrf.mxu3  ;;  %v1240_v23 = vmul.f32 %v1397_v45, %v1397_v45 }
 0x18b   :  { %575 = vst [vmem:[%s3045_s6 + $0x1d8] sm:$0xff] %v2776_v5 }
 0x18c   :  { %1133 = vst [vmem:[%s3046_s7 + $0x1d8] sm:$0xff] %v2778_v17 }
 0x18e   :  { %v414_v8 = vpop.f32.mrf.mxu0 }
 0x18f   :  { %v972_v47 = vpop.f32.mrf.mxu1  ;;  %546 = vst [vmem:[%s3045_s6 + $0xf0] sm:$0xff] %v414_v8  ;;  %v679_v24 = vmul.f32 %v414_v8, %v414_v8  ;;  %v609_v49 = vadd.f32 %v608_v59, %v414_v8  ;;  %v681_v8 = vmul.f32 %v1394_v43, %v1394_v43 }
 0x190   :  { %1104 = vst [vmem:[%s3046_s7 + $0xf0] sm:$0xff] %v972_v47  ;;  %v1237_v2 = vmul.f32 %v972_v47, %v972_v47  ;;  %v1167_v32 = vadd.f32 %v1166_v61, %v972_v47  ;;  %v1395_v47 = vld [vmem:[%s3046_s7 + $0x100] sm:$0xff] }
 0x191   :  { %v742_v30 = vadd.f32 %v741_v3, %v679_v24  ;;  %v1239_v9 = vmul.f32 %v1395_v47, %v1395_v47  ;;  %v1398_v3 = vld [vmem:[%s3045_s6 + $0x110] sm:$0xff] }
 0x192   :  { %v1300_v33 = vadd.f32 %v1299_v31, %v1237_v2  ;;  %v683_v31 = vmul.f32 %v1398_v3, %v1398_v3 }
 0x196   :  { %v417_v35 = vpop.f32.mrf.mxu0 }
 0x197   :  { %v975_v39 = vpop.f32.mrf.mxu1  ;;  %547 = vst [vmem:[%s3045_s6 + $0xf8] sm:$0xff] %v417_v35  ;;  %v610_v34 = vadd.f32 %v609_v49, %v417_v35  ;;  %v680_v38 = vmul.f32 %v417_v35, %v417_v35  ;;  %v1399_v49 = vld [vmem:[%s3046_s7 + $0x110] sm:$0xff] }
 0x198   :  { %v1168_v46 = vadd.f32 %v1167_v32, %v975_v39  ;;  %v1238_v7 = vmul.f32 %v975_v39, %v975_v39  ;;  %1105 = vst [vmem:[%s3046_s7 + $0xf8] sm:$0xff] %v975_v39  ;;  %v1241_v32 = vmul.f32 %v1399_v49, %v1399_v49 }
 0x199   :  { %v611_v13 = vadd.f32 %v1394_v43, %v610_v34  ;;  %v743_v37 = vadd.f32 %v742_v30, %v680_v38  ;;  %v1400_v34 = vld [vmem:[%s3045_s6 + $0x118] sm:$0xff] }
 0x19a   :  { %v1169_v55 = vadd.f32 %v1395_v47, %v1168_v46  ;;  %v1301_v56 = vadd.f32 %v1300_v33, %v1238_v7  ;;  %v684_v38 = vmul.f32 %v1400_v34, %v1400_v34  ;;  %v1242_v46 = vmul.f32 %v2046_v10, %v2046_v10 }
 0x19b   :  { %v612_v24 = vadd.f32 %v1396_v14, %v611_v13  ;;  %v744_v2 = vadd.f32 %v743_v37, %v681_v8  ;;  %v1401_v8 = vld [vmem:[%s3046_s7 + $0x118] sm:$0xff]  ;;  %v2817_v13 = vpop.f32.mrf.mxu2  ;;  %v2819_v37 = vpop.f32.mrf.mxu3 }
 0x19c   :  { %v1170_v59 = vadd.f32 %v1397_v45, %v1169_v55  ;;  %v1302_v61 = vadd.f32 %v1301_v56, %v1239_v9  ;;  %v685_v55 = vmul.f32 %v2101_v28, %v2101_v28  ;;  %v1243_v56 = vmul.f32 %v2103_v29, %v2103_v29  ;;  %576 = vst [vmem:[%s3045_s6 + $0x1e0] sm:$0xff] %v2817_v13 }
 0x19d   :  { %v613_v30 = vadd.f32 %v1398_v3, %v612_v24  ;;  %v745_v33 = vadd.f32 %v744_v2, %v682_v15  ;;  %1134 = vst [vmem:[%s3046_s7 + $0x1e0] sm:$0xff] %v2819_v37  ;;  %v1244_v24 = vmul.f32 %v2144_v58, %v2144_v58  ;;  %v1245_v3 = vmul.f32 %v2183_v18, %v2183_v18 }
 0x19e   :  { %v1171_v35 = vadd.f32 %v1399_v49, %v1170_v59  ;;  %v1303_v39 = vadd.f32 %v1302_v61, %v1240_v23  ;;  %v686_v23 = vmul.f32 %v2142_v57, %v2142_v57 }
 0x19f   :  { %v614_v7 = vadd.f32 %v1400_v34, %v613_v30  ;;  %v746_v43 = vadd.f32 %v745_v33, %v683_v31  ;;  %v688_v33 = vmul.f32 %v2220_v41, %v2220_v41 }
 0x1a0   :  { %v1172_v47 = vadd.f32 %v1401_v8, %v1171_v35  ;;  %v1304_v9 = vadd.f32 %v1303_v39, %v1241_v32  ;;  %v690_v8 = vmul.f32 %v2288_v25, %v2288_v25 }
 0x1a1   :  { %v615_v10 = vadd.f32 %v614_v7, %v2101_v28  ;;  %v747_v14 = vadd.f32 %v746_v43, %v684_v38 }
 0x1a2   :  { %v1173_v15 = vadd.f32 %v1172_v47, %v2103_v29  ;;  %v1305_v45 = vadd.f32 %v1304_v9, %v1242_v46  ;;  %v687_v29 = vmul.f32 %v2181_v48, %v2181_v48  ;;  %v1248_v47 = vmul.f32 %v2290_v26, %v2290_v26 }
 0x1a3   :  { %v616_v2 = vadd.f32 %v615_v10, %v2142_v57  ;;  %v748_v59 = vadd.f32 %v747_v14, %v685_v55  ;;  %v1246_v57 = vmul.f32 %v2222_v42, %v2222_v42  ;;  %v2853_v38 = vpop.f32.mrf.mxu2  ;;  %v2855_v46 = vpop.f32.mrf.mxu3  ;;  %v1249_v10 = vmul.f32 %v2324_v63, %v2324_v63 }
 0x1a4   :  { %v1174_v28 = vadd.f32 %v1173_v15, %v2144_v58  ;;  %v1306_v61 = vadd.f32 %v1305_v45, %v1243_v56  ;;  %577 = vst [vmem:[%s3045_s6 + $0x1e8] sm:$0xff] %v2853_v38 }
 0x1a5   :  { %v617_v31 = vadd.f32 %v616_v2, %v2181_v48  ;;  %v749_v49 = vadd.f32 %v748_v59, %v686_v23  ;;  %v689_v48 = vmul.f32 %v2254_v60, %v2254_v60  ;;  %1135 = vst [vmem:[%s3046_s7 + $0x1e8] sm:$0xff] %v2855_v46 }
 0x1a6   :  { %v1175_v32 = vadd.f32 %v1174_v28, %v2183_v18  ;;  %v1307_v30 = vadd.f32 %v1306_v61, %v1244_v24  ;;  %v1247_v18 = vmul.f32 %v2256_v20, %v2256_v20  ;;  %v692_v24 = vmul.f32 %v2352_v6, %v2352_v6 }
 0x1a7   :  { %v618_v58 = vadd.f32 %v617_v31, %v2220_v41  ;;  %v750_v35 = vadd.f32 %v749_v49, %v687_v29  ;;  %v694_v49 = vmul.f32 %v2404_v51, %v2404_v51 }
 0x1a8   :  { %v1176_v39 = vadd.f32 %v1175_v32, %v2222_v42  ;;  %v1308_v34 = vadd.f32 %v1307_v30, %v1245_v3  ;;  %v1252_v32 = vmul.f32 %v2406_v11, %v2406_v11 }
 0x1a9   :  { %v619_v41 = vadd.f32 %v618_v58, %v2254_v60  ;;  %v751_v7 = vadd.f32 %v750_v35, %v688_v33  ;;  %v1253_v58 = vmul.f32 %v2432_v27, %v2432_v27 }
 0x1aa   :  { %v1177_v42 = vadd.f32 %v1176_v39, %v2256_v20  ;;  %v1309_v43 = vadd.f32 %v1308_v34, %v1246_v57  ;;  %v691_v20 = vmul.f32 %v2322_v62, %v2322_v62 }
 0x1ab   :  { %v620_v9 = vadd.f32 %v619_v41, %v2288_v25  ;;  %v752_v55 = vadd.f32 %v751_v7, %v689_v48  ;;  %v1250_v25 = vmul.f32 %v2354_v36, %v2354_v36  ;;  %v2889_v61 = vpop.f32.mrf.mxu2  ;;  %v2891_v29 = vpop.f32.mrf.mxu3 }
 0x1ac   :  { %v1178_v60 = vadd.f32 %v1177_v42, %v2290_v26  ;;  %v1310_v56 = vadd.f32 %v1309_v43, %v1247_v18  ;;  %578 = vst [vmem:[%s3045_s6 + $0x1f0] sm:$0xff] %v2889_v61  ;;  %v696_v18 = vmul.f32 %v2452_v21, %v2452_v21 }
 0x1ad   :  { %v621_v14 = vadd.f32 %v620_v9, %v2322_v62  ;;  %v753_v15 = vadd.f32 %v752_v55, %v690_v8  ;;  %v693_v62 = vmul.f32 %v2378_v0, %v2378_v0  ;;  %1136 = vst [vmem:[%s3046_s7 + $0x1f0] sm:$0xff] %v2891_v29  ;;  %v698_v55 = vmul.f32 %v2501_v50, %v2501_v50 }
 0x1ae   :  { %v1179_v45 = vadd.f32 %v1178_v60, %v2324_v63  ;;  %v1311_v23 = vadd.f32 %v1310_v56, %v1248_v47  ;;  %v1251_v63 = vmul.f32 %v2380_v1, %v2380_v1  ;;  %v1256_v60 = vmul.f32 %v2503_v52, %v2503_v52 }
 0x1af   :  { %v622_v26 = vadd.f32 %v621_v14, %v2352_v6  ;;  %v754_v2 = vadd.f32 %v753_v15, %v691_v20  ;;  %v3088_v14 = vld [vmem:[#allocation2_spill] sm:$0xff] }
 0x1b0   :  { %v1180_v59 = vadd.f32 %v1179_v45, %v2354_v36  ;;  %v1312_v28 = vadd.f32 %v1311_v23, %v1249_v10  ;;  %v1257_v15 = vmul.f32 %v3088_v14, %v3088_v14 }
 0x1b1   :  { %v755_v6 = vadd.f32 %v754_v2, %v692_v24  ;;  %v623_v3 = vadd.f32 %v622_v26, %v2378_v0  ;;  %v3089_v26 = vld [vmem:[#allocation3_spill] sm:$0xff] }
 0x1b2   :  { %v1313_v36 = vadd.f32 %v1312_v28, %v1250_v25  ;;  %v1181_v31 = vadd.f32 %v1180_v59, %v2380_v1  ;;  %v695_v1 = vmul.f32 %v2430_v4, %v2430_v4  ;;  %v700_v2 = vmul.f32 %v3089_v26, %v3089_v26 }
 0x1b3   :  { %v624_v30 = vadd.f32 %v623_v3, %v2404_v51  ;;  %v756_v33 = vadd.f32 %v755_v6, %v693_v62  ;;  %v1254_v51 = vmul.f32 %v2454_v22, %v2454_v22  ;;  %v2925_v43 = vpop.f32.mrf.mxu2  ;;  %v2927_v8 = vpop.f32.mrf.mxu3  ;;  %v3091_v6 = vld [vmem:[#allocation5_spill] sm:$0xff] }
 0x1b4   :  { %v1182_v57 = vadd.f32 %v1181_v31, %v2406_v11  ;;  %v1314_v0 = vadd.f32 %v1313_v36, %v1251_v63  ;;  %579 = vst [vmem:[%s3045_s6 + $0x1f8] sm:$0xff] %v2925_v43  ;;  %v701_v3 = vmul.f32 %v3091_v6, %v3091_v6 }
 0x1b5   :  { %v625_v35 = vadd.f32 %v624_v30, %v2430_v4  ;;  %v757_v39 = vadd.f32 %v756_v33, %v694_v49  ;;  %v697_v4 = vmul.f32 %v2474_v40, %v2474_v40  ;;  %1137 = vst [vmem:[%s3046_s7 + $0x1f8] sm:$0xff] %v2927_v8  ;;  %v3093_v33 = vld [vmem:[#allocation7_spill] sm:$0xff] }
 0x1b6   :  { %v1183_v34 = vadd.f32 %v1182_v57, %v2432_v27  ;;  %v1315_v48 = vadd.f32 %v1314_v0, %v1252_v32  ;;  %v1255_v27 = vmul.f32 %v2476_v16, %v2476_v16  ;;  %v702_v57 = vmul.f32 %v3093_v33, %v3093_v33  ;;  %v3094_v0 = vld [vmem:[#allocation8_spill] sm:$0xff] }
 0x1b7   :  { %v626_v11 = vadd.f32 %v625_v35, %v2452_v21  ;;  %v758_v41 = vadd.f32 %v757_v39, %v695_v1  ;;  %v1260_v1 = vmul.f32 %v3094_v0, %v3094_v0 }
 0x1b8   :  { %v1184_v7 = vadd.f32 %v1183_v34, %v2454_v22  ;;  %v1316_v42 = vadd.f32 %v1315_v48, %v1253_v58  ;;  %v3095_v48 = vld [vmem:[#allocation9_spill] sm:$0xff] }
 0x1b9   :  { %v627_v21 = vadd.f32 %v626_v11, %v2474_v40  ;;  %v759_v47 = vadd.f32 %v758_v41, %v696_v18  ;;  %v703_v18 = vmul.f32 %v3095_v48, %v3095_v48 }
 0x1ba   :  { %v1185_v22 = vadd.f32 %v1184_v7, %v2476_v16  ;;  %v1317_v9 = vadd.f32 %v1316_v42, %v1254_v51  ;;  %v699_v16 = vmul.f32 %v2525_v44, %v2525_v44  ;;  %v3096_v51 = vld [vmem:[#allocation10_spill] sm:$0xff] }
 0x1bb   :  { %v628_v56 = vadd.f32 %v627_v21, %v2501_v50  ;;  %v760_v20 = vadd.f32 %v759_v47, %v697_v4  ;;  %v3090_v50 = vld [vmem:[#allocation4_spill] sm:$0xff]  ;;  %v1261_v11 = vmul.f32 %v3096_v51, %v3096_v51 }
 0x1bc   :  { %v1186_v40 = vadd.f32 %v1185_v22, %v2503_v52  ;;  %v1318_v10 = vadd.f32 %v1317_v9, %v1255_v27  ;;  %v1258_v59 = vmul.f32 %v3090_v50, %v3090_v50  ;;  %v3097_v27 = vld [vmem:[#allocation11_spill] sm:$0xff]  ;;  %v3098_v47 = vld [vmem:[#allocation12_spill] sm:$0xff] }
 0x1bd   :  { %v629_v45 = vadd.f32 %v628_v56, %v2525_v44  ;;  %v761_v23 = vadd.f32 %v760_v20, %v698_v55  ;;  %v3092_v44 = vld [vmem:[#allocation6_spill] sm:$0xff]  ;;  %v704_v21 = vmul.f32 %v3097_v27, %v3097_v27  ;;  %v1262_v22 = vmul.f32 %v3098_v47, %v3098_v47  ;;  %v3099_v20 = vld [vmem:[#allocation13_spill] sm:$0xff] }
 0x1be   :  { %v1187_v24 = vadd.f32 %v1186_v40, %v3088_v14  ;;  %v1319_v25 = vadd.f32 %v1318_v10, %v1256_v60  ;;  %v1259_v36 = vmul.f32 %v3092_v44, %v3092_v44  ;;  %v705_v40 = vmul.f32 %v3099_v20, %v3099_v20  ;;  %v3100_v10 = vld [vmem:[#allocation14_spill] sm:$0xff] }
 0x1bf   :  { %v630_v52 = vadd.f32 %v629_v45, %v3089_v26  ;;  %v762_v28 = vadd.f32 %v761_v23, %v699_v16  ;;  %v1263_v16 = vmul.f32 %v3100_v10, %v3100_v10 }
 0x1c0   :  { %v1188_v62 = vadd.f32 %v1187_v24, %v3090_v50  ;;  %v1320_v63 = vadd.f32 %v1319_v25, %v1257_v15  ;;  %v706_v24 = vmul.f32 %v2714_v53, %v2714_v53  ;;  %v1264_v25 = vmul.f32 %v2716_v54, %v2716_v54 }
 0x1c1   :  { %v631_v31 = vadd.f32 %v630_v52, %v3091_v6  ;;  %v763_v49 = vadd.f32 %v762_v28, %v700_v2  ;;  %v707_v52 = vmul.f32 %v2756_v12, %v2756_v12  ;;  %v1265_v28 = vmul.f32 %v2758_v19, %v2758_v19 }
 0x1c2   :  { %v1189_v32 = vadd.f32 %v1188_v62, %v3092_v44  ;;  %v1321_v30 = vadd.f32 %v1320_v63, %v1258_v59  ;;  %v708_v44 = vmul.f32 %v2776_v5, %v2776_v5 }
 0x1c3   :  { %v632_v58 = vadd.f32 %v631_v31, %v3093_v33  ;;  %v764_v35 = vadd.f32 %v763_v49, %v701_v3 }
 0x1c4   :  { %v1190_v39 = vadd.f32 %v1189_v32, %v3094_v0  ;;  %v1322_v34 = vadd.f32 %v1321_v30, %v1259_v36  ;;  %v709_v32 = vmul.f32 %v2817_v13, %v2817_v13  ;;  %v710_v0 = vmul.f32 %v2853_v38, %v2853_v38 }
 0x1c5   :  { %v633_v41 = vadd.f32 %v632_v58, %v3095_v48  ;;  %v765_v7 = vadd.f32 %v764_v35, %v702_v57 }
 0x1c6   :  { %v1191_v42 = vadd.f32 %v1190_v39, %v3096_v51  ;;  %v1323_v4 = vadd.f32 %v1322_v34, %v1260_v1  ;;  %v711_v39 = vmul.f32 %v2889_v61, %v2889_v61  ;;  %v1270_v34 = vmul.f32 %v2927_v8, %v2927_v8 }
 0x1c7   :  { %v634_v9 = vadd.f32 %v633_v41, %v3097_v27  ;;  %v766_v55 = vadd.f32 %v765_v7, %v703_v18 }
 0x1c8   :  { %v1192_v60 = vadd.f32 %v1191_v42, %v3098_v47  ;;  %v1324_v56 = vadd.f32 %v1323_v4, %v1261_v11 }
 0x1c9   :  { %v767_v14 = vadd.f32 %v766_v55, %v704_v21  ;;  %v635_v45 = vadd.f32 %v634_v9, %v3099_v20 }
 0x1ca   :  { %v1325_v15 = vadd.f32 %v1324_v56, %v1262_v22  ;;  %v1193_v23 = vadd.f32 %v1192_v60, %v3100_v10 }
 0x1cb   :  { %v768_v26 = vadd.f32 %v767_v14, %v705_v40  ;;  %v636_v50 = vadd.f32 %v635_v45, %v2714_v53  ;;  %v1266_v53 = vmul.f32 %v2778_v17, %v2778_v17 }
 0x1cc   :  { %v1326_v2 = vadd.f32 %v1325_v15, %v1263_v16  ;;  %v1194_v59 = vadd.f32 %v1193_v23, %v2716_v54 }
 0x1cd   :  { %v769_v62 = vadd.f32 %v768_v26, %v706_v24  ;;  %v637_v6 = vadd.f32 %v636_v50, %v2756_v12  ;;  %v1267_v12 = vmul.f32 %v2819_v37, %v2819_v37 }
 0x1ce   :  { %v1327_v63 = vadd.f32 %v1326_v2, %v1264_v25  ;;  %v1195_v3 = vadd.f32 %v1194_v59, %v2758_v19 }
 0x1cf   :  { %v770_v36 = vadd.f32 %v769_v62, %v707_v52  ;;  %v638_v31 = vadd.f32 %v637_v6, %v2776_v5  ;;  %v1268_v5 = vmul.f32 %v2855_v46, %v2855_v46 }
 0x1d0   :  { %v1328_v54 = vadd.f32 %v1327_v63, %v1265_v28  ;;  %v1196_v49 = vadd.f32 %v1195_v3, %v2778_v17 }
 0x1d1   :  { %v771_v30 = vadd.f32 %v770_v36, %v708_v44  ;;  %v639_v33 = vadd.f32 %v638_v31, %v2817_v13  ;;  %v1269_v13 = vmul.f32 %v2891_v29, %v2891_v29 }
 0x1d2   :  { %v1329_v19 = vadd.f32 %v1328_v54, %v1266_v53  ;;  %v1197_v57 = vadd.f32 %v1196_v49, %v2819_v37  ;;  %v712_v37 = vmul.f32 %v2925_v43, %v2925_v43 }
 0x1d3   :  { %v772_v1 = vadd.f32 %v771_v30, %v709_v32  ;;  %v640_v58 = vadd.f32 %v639_v33, %v2853_v38 }
 0x1d4   :  { %v1330_v17 = vadd.f32 %v1329_v19, %v1267_v12  ;;  %v1198_v35 = vadd.f32 %v1197_v57, %v2855_v46 }
 0x1d5   :  { %v773_v48 = vadd.f32 %v772_v1, %v710_v0  ;;  %v641_v51 = vadd.f32 %v640_v58, %v2889_v61 }
 0x1d6   :  { %v1331_v18 = vadd.f32 %v1330_v17, %v1268_v5  ;;  %v1199_v38 = vadd.f32 %v1198_v35, %v2891_v29 }
 0x1d7   :  { %v774_v11 = vadd.f32 %v773_v48, %v711_v39  ;;  %v642_v41 = vadd.f32 %v641_v51, %v2925_v43 }
 0x1d8   :  { %v1332_v46 = vadd.f32 %v1331_v18, %v1269_v13  ;;  %v1200_v7 = vadd.f32 %v1199_v38, %v2927_v8 }
 0x1d9   :  { %v643_v42 = vrot.slane %v642_v41, 4  ;;  %v775_v4 = vadd.f32 %v774_v11, %v712_v37 }
 0x1da   :  { %v1201_v27 = vrot.slane %v1200_v7, 4  ;;  %v1333_v21 = vadd.f32 %v1332_v46, %v1270_v34 }
 0x1db   :  { %v644_v47 = vadd.f32 %v643_v42, %v642_v41  ;;  %v776_v22 = vrot.slane %v775_v4, 4 }
 0x1dc   :  { %v1202_v9 = vadd.f32 %v1201_v27, %v1200_v7  ;;  %v1334_v55 = vrot.slane %v1333_v21, 4 }
 0x1dd   :  { %v645_v60 = vrot.slane %v644_v47, 2  ;;  %v777_v56 = vadd.f32 %v776_v22, %v775_v4 }
 0x1de   :  { %v1203_v20 = vrot.slane %v1202_v9, 2  ;;  %v1335_v61 = vadd.f32 %v1334_v55, %v1333_v21 }
 0x1df   :  { %v646_v40 = vadd.f32 %v645_v60, %v644_v47  ;;  %v778_v29 = vrot.slane %v777_v56, 2 }
 0x1e0   :  { %v1204_v10 = vadd.f32 %v1203_v20, %v1202_v9  ;;  %v1336_v16 = vrot.slane %v1335_v61, 2 }
 0x1e1   :  { %v647_v14 = vrot.slane %v646_v40, 1  ;;  %v779_v43 = vadd.f32 %v778_v29, %v777_v56 }
 0x1e2   :  { %v1205_v15 = vrot.slane %v1204_v10, 1  ;;  %v1337_v8 = vadd.f32 %v1336_v16, %v1335_v61 }
 0x1e3   :  { %v780_v45 = vrot.slane %v779_v43, 1  ;;  %v648_v24 = vadd.f32 %v647_v14, %v646_v40 }
 0x1e4   :  { %v1338_v23 = vrot.slane %v1337_v8, 1  ;;  %v1206_v26 = vadd.f32 %v1205_v15, %v1204_v10 }
 0x1e5   :  { %v781_v25 = vadd.f32 %v780_v45, %v779_v43 }
 0x1e6   :  { %v1339_v2 = vadd.f32 %v1338_v23, %v1337_v8 }
 0x1e7   :  { %v783_v50 = vsel %vm782_vm0, %v648_v24, %v781_v25 }
 0x1e8   :  { %v1340_v59 = vsel %vm782_vm0, %v1206_v26, %v1339_v2  ;;  %784 = vst [vmem:[%s3047_s8] sm:$0x3] %v783_v50 }
 0x1e9   :  { %1341 = vst [vmem:[%s3048_s9] sm:$0x3] %v1340_v59 }

// kernel: block_forward.9
= control target key start
LH: loop header
LB: loop body
LE: loop exit
PB: predicated region body
PF: predicated region fallthrough
CT: control target
= control target key end

     0   :  { %s1446_s0 = inlined_call_operand.vmem [shape: f32[512,128], index: 0, kind: input, shape index: {}]   ;;  %s1447_s1 = inlined_call_operand.vmem [shape: f32[1,128], index: 1, kind: input, shape index: {}]   ;;  %s1448_s2 = inlined_call_operand.vmem [shape: f32[1,128], index: 2, kind: input, shape index: {}]   ;;  %s1449_s3 = inlined_call_operand.vmem [shape: f32[512,128], index: 3, kind: input, shape index: {}]   ;;  %s1450_s4 = inlined_call_operand.vmem [shape: f32[1,128], index: 4, kind: input, shape index: {}]   ;;  %s1451_s5 = inlined_call_operand.vmem [shape: f32[1,128], index: 5, kind: input, shape index: {}]   ;;  %s1452_s6 = inlined_call_operand.vmem [shape: f32[512,128], index: 6, kind: output, shape index: {}]  }
   0x1   :  { %v23_v0 = vld [vmem:[%s1446_s0] sm:$0xff]  ;;  %v24_v7 = vld [vmem:[%s1446_s0 + $0x8] sm:$0xff]  ;;  %v25_v13 = vld [vmem:[%s1446_s0 + $0x10] sm:$0xff] }
   0x2   :  { %v600_v1 = vld [vmem:[%s1447_s1] ss:$0 sm:$0xff]  ;;  %v224_v8 = vld [vmem:[%s1449_s3 + $0x8] sm:$0xff]  ;;  %v225_v14 = vld [vmem:[%s1449_s3 + $0x10] sm:$0xff] }
   0x3   :  { %v605_v2 = vld [vmem:[%s1448_s2] ss:$0 sm:$0xff]  ;;  %v91_v4 = vmul.f32 %v600_v1, %v23_v0  ;;  %v92_v11 = vmul.f32 %v600_v1, %v24_v7  ;;  %v26_v15 = vld [vmem:[%s1446_s0 + $0x18] sm:$0xff]  ;;  %v93_v16 = vmul.f32 %v600_v1, %v25_v13  ;;  %v28_v26 = vld [vmem:[%s1446_s0 + $0x28] sm:$0xff] }
   0x4   :  { %v223_v3 = vld [vmem:[%s1449_s3] sm:$0xff]  ;;  %v94_v18 = vmul.f32 %v600_v1, %v26_v15  ;;  %v226_v19 = vld [vmem:[%s1449_s3 + $0x18] sm:$0xff]  ;;  %v228_v27 = vld [vmem:[%s1449_s3 + $0x28] sm:$0xff]  ;;  %v96_v42 = vmul.f32 %v600_v1, %v28_v26 }
   0x5   :  { %v614_v5 = vld [vmem:[%s1450_s4] ss:$0 sm:$0xff]  ;;  %v159_v9 = vadd.f32 %v605_v2, %v91_v4  ;;  %v160_v23 = vadd.f32 %v605_v2, %v92_v11  ;;  %v161_v28 = vadd.f32 %v605_v2, %v93_v16  ;;  %v29_v32 = vld [vmem:[%s1446_s0 + $0x30] sm:$0xff]  ;;  %v30_v38 = vld [vmem:[%s1446_s0 + $0x38] sm:$0xff] }
   0x6   :  { %v619_v6 = vld [vmem:[%s1451_s5] ss:$0 sm:$0xff]  ;;  %v291_v10 = vmul.f32 %v614_v5, %v223_v3  ;;  %v292_v12 = vmul.f32 %v614_v5, %v224_v8  ;;  %v293_v17 = vmul.f32 %v614_v5, %v225_v14  ;;  %v294_v25 = vmul.f32 %v614_v5, %v226_v19  ;;  %v229_v33 = vld [vmem:[%s1449_s3 + $0x30] sm:$0xff]  ;;  %v230_v39 = vld [vmem:[%s1449_s3 + $0x38] sm:$0xff] }
   0x7   :  { %v27_v20 = vld [vmem:[%s1446_s0 + $0x20] sm:$0xff]  ;;  %v162_v30 = vadd.f32 %v605_v2, %v94_v18  ;;  %v296_v43 = vmul.f32 %v614_v5, %v228_v27  ;;  %v97_v47 = vmul.f32 %v600_v1, %v29_v32  ;;  %v297_v48 = vmul.f32 %v614_v5, %v229_v33  ;;  %v32_v54 = vld [vmem:[%s1446_s0 + $0x48] sm:$0xff]  ;;  %v33_v60 = vld [vmem:[%s1446_s0 + $0x50] sm:$0xff] }
   0x8   :  { %v227_v21 = vld [vmem:[%s1449_s3 + $0x20] sm:$0xff]  ;;  %v359_v22 = vadd.f32 %v619_v6, %v291_v10  ;;  %v360_v24 = vadd.f32 %v619_v6, %v292_v12  ;;  %v361_v29 = vadd.f32 %v619_v6, %v293_v17  ;;  %v95_v31 = vmul.f32 %v600_v1, %v27_v20  ;;  %v232_v55 = vld [vmem:[%s1449_s3 + $0x48] sm:$0xff]  ;;  %v233_v61 = vld [vmem:[%s1449_s3 + $0x50] sm:$0xff] }
   0x9   :  { %v362_v36 = vadd.f32 %v619_v6, %v294_v25  ;;  %v295_v37 = vmul.f32 %v614_v5, %v227_v21  ;;  %v31_v44 = vld [vmem:[%s1446_s0 + $0x40] sm:$0xff]  ;;  %v164_v50 = vadd.f32 %v605_v2, %v96_v42  ;;  %v364_v51 = vadd.f32 %v619_v6, %v296_v43  ;;  %v34_v4 = vld [vmem:[%s1446_s0 + $0x58] sm:$0xff] }
   0xa   :  { %v423_v34 = vadd.f32 %v359_v22, %v159_v9  ;;  %v424_v35 = vadd.f32 %v360_v24, %v160_v23  ;;  %v425_v40 = vadd.f32 %v361_v29, %v161_v28  ;;  %v163_v41 = vadd.f32 %v605_v2, %v95_v31  ;;  %v231_v49 = vld [vmem:[%s1449_s3 + $0x40] sm:$0xff]  ;;  %v234_v7 = vld [vmem:[%s1449_s3 + $0x58] sm:$0xff]  ;;  %v36_v22 = vld [vmem:[%s1446_s0 + $0x68] sm:$0xff] }
   0xb   :  { %v426_v45 = vadd.f32 %v362_v36, %v162_v30  ;;  %v363_v46 = vadd.f32 %v619_v6, %v295_v37  ;;  %v98_v52 = vmul.f32 %v600_v1, %v30_v38  ;;  %v298_v53 = vmul.f32 %v614_v5, %v230_v39  ;;  %v35_v12 = vld [vmem:[%s1446_s0 + $0x60] sm:$0xff]  ;;  %v236_v23 = vld [vmem:[%s1449_s3 + $0x68] sm:$0xff]  ;;  %v37_v28 = vld [vmem:[%s1446_s0 + $0x70] sm:$0xff] }
   0xc   :  { %487 = vst [vmem:[%s1452_s6] sm:$0xff] %v423_v34  ;;  %v165_v57 = vadd.f32 %v605_v2, %v97_v47  ;;  %v365_v58 = vadd.f32 %v619_v6, %v297_v48  ;;  %v99_v59 = vmul.f32 %v600_v1, %v31_v44  ;;  %v428_v62 = vadd.f32 %v364_v51, %v164_v50  ;;  %v235_v17 = vld [vmem:[%s1449_s3 + $0x60] sm:$0xff]  ;;  %v237_v29 = vld [vmem:[%s1449_s3 + $0x70] sm:$0xff]  ;;  %v38_v34 = vld [vmem:[%s1446_s0 + $0x78] sm:$0xff] }
   0xd   :  { %488 = vst [vmem:[%s1452_s6 + $0x8] sm:$0xff] %v424_v35  ;;  %v427_v56 = vadd.f32 %v363_v46, %v163_v41  ;;  %v166_v63 = vadd.f32 %v605_v2, %v98_v52  ;;  %v366_v0 = vadd.f32 %v619_v6, %v298_v53  ;;  %v299_v3 = vmul.f32 %v614_v5, %v231_v49  ;;  %v238_v35 = vld [vmem:[%s1449_s3 + $0x78] sm:$0xff]  ;;  %v40_v50 = vld [vmem:[%s1446_s0 + $0x88] sm:$0xff] }
   0xe   :  { %489 = vst [vmem:[%s1452_s6 + $0x10] sm:$0xff] %v425_v40  ;;  %v429_v8 = vadd.f32 %v365_v58, %v165_v57  ;;  %v167_v9 = vadd.f32 %v605_v2, %v99_v59  ;;  %v100_v10 = vmul.f32 %v600_v1, %v32_v54  ;;  %v300_v11 = vmul.f32 %v614_v5, %v232_v55  ;;  %v39_v40 = vld [vmem:[%s1446_s0 + $0x80] sm:$0xff]  ;;  %v240_v51 = vld [vmem:[%s1449_s3 + $0x88] sm:$0xff]  ;;  %v241_v57 = vld [vmem:[%s1449_s3 + $0x90] sm:$0xff] }
   0xf   :  { %490 = vst [vmem:[%s1452_s6 + $0x18] sm:$0xff] %v426_v45  ;;  %v430_v13 = vadd.f32 %v366_v0, %v166_v63  ;;  %v367_v14 = vadd.f32 %v619_v6, %v299_v3  ;;  %v101_v15 = vmul.f32 %v600_v1, %v33_v60  ;;  %v301_v16 = vmul.f32 %v614_v5, %v233_v61  ;;  %v239_v45 = vld [vmem:[%s1449_s3 + $0x80] sm:$0xff]  ;;  %v242_v63 = vld [vmem:[%s1449_s3 + $0x98] sm:$0xff] }
  0x10   :  { %491 = vst [vmem:[%s1452_s6 + $0x20] sm:$0xff] %v427_v56  ;;  %v168_v18 = vadd.f32 %v605_v2, %v100_v10  ;;  %v368_v19 = vadd.f32 %v619_v6, %v300_v11  ;;  %v102_v20 = vmul.f32 %v600_v1, %v34_v4  ;;  %v302_v21 = vmul.f32 %v614_v5, %v234_v7  ;;  %v41_v56 = vld [vmem:[%s1446_s0 + $0x90] sm:$0xff] }
  0x11   :  { %492 = vst [vmem:[%s1452_s6 + $0x28] sm:$0xff] %v428_v62  ;;  %v431_v24 = vadd.f32 %v367_v14, %v167_v9  ;;  %v169_v25 = vadd.f32 %v605_v2, %v101_v15  ;;  %v369_v26 = vadd.f32 %v619_v6, %v301_v16  ;;  %v103_v27 = vmul.f32 %v600_v1, %v35_v12  ;;  %v42_v62 = vld [vmem:[%s1446_s0 + $0x98] sm:$0xff] }
  0x12   :  { %493 = vst [vmem:[%s1452_s6 + $0x30] sm:$0xff] %v429_v8  ;;  %v432_v30 = vadd.f32 %v368_v19, %v168_v18  ;;  %v170_v31 = vadd.f32 %v605_v2, %v102_v20  ;;  %v370_v32 = vadd.f32 %v619_v6, %v302_v21  ;;  %v303_v33 = vmul.f32 %v614_v5, %v235_v17  ;;  %v43_v8 = vld [vmem:[%s1446_s0 + $0xa0] sm:$0xff]  ;;  %v44_v18 = vld [vmem:[%s1446_s0 + $0xa8] sm:$0xff] }
  0x13   :  { %494 = vst [vmem:[%s1452_s6 + $0x38] sm:$0xff] %v430_v13  ;;  %v433_v36 = vadd.f32 %v369_v26, %v169_v25  ;;  %v171_v37 = vadd.f32 %v605_v2, %v103_v27  ;;  %v104_v38 = vmul.f32 %v600_v1, %v36_v22  ;;  %v304_v39 = vmul.f32 %v614_v5, %v236_v23  ;;  %v243_v13 = vld [vmem:[%s1449_s3 + $0xa0] sm:$0xff]  ;;  %v244_v19 = vld [vmem:[%s1449_s3 + $0xa8] sm:$0xff]  ;;  %v245_v25 = vld [vmem:[%s1449_s3 + $0xb0] sm:$0xff] }
  0x14   :  { %495 = vst [vmem:[%s1452_s6 + $0x40] sm:$0xff] %v431_v24  ;;  %v434_v41 = vadd.f32 %v370_v32, %v170_v31  ;;  %v371_v42 = vadd.f32 %v619_v6, %v303_v33  ;;  %v105_v43 = vmul.f32 %v600_v1, %v37_v28  ;;  %v305_v44 = vmul.f32 %v614_v5, %v237_v29  ;;  %v45_v24 = vld [vmem:[%s1446_s0 + $0xb0] sm:$0xff]  ;;  %v246_v31 = vld [vmem:[%s1449_s3 + $0xb8] sm:$0xff] }
  0x15   :  { %496 = vst [vmem:[%s1452_s6 + $0x48] sm:$0xff] %v432_v30  ;;  %v172_v46 = vadd.f32 %v605_v2, %v104_v38  ;;  %v372_v47 = vadd.f32 %v619_v6, %v304_v39  ;;  %v106_v48 = vmul.f32 %v600_v1, %v38_v34  ;;  %v306_v49 = vmul.f32 %v614_v5, %v238_v35  ;;  %v46_v30 = vld [vmem:[%s1446_s0 + $0xb8] sm:$0xff] }
  0x16   :  { %497 = vst [vmem:[%s1452_s6 + $0x50] sm:$0xff] %v433_v36  ;;  %v435_v52 = vadd.f32 %v371_v42, %v171_v37  ;;  %v173_v53 = vadd.f32 %v605_v2, %v105_v43  ;;  %v373_v54 = vadd.f32 %v619_v6, %v305_v44  ;;  %v107_v55 = vmul.f32 %v600_v1, %v39_v40  ;;  %v47_v36 = vld [vmem:[%s1446_s0 + $0xc0] sm:$0xff] }
  0x17   :  { %498 = vst [vmem:[%s1452_s6 + $0x58] sm:$0xff] %v434_v41  ;;  %v436_v58 = vadd.f32 %v372_v47, %v172_v46  ;;  %v174_v59 = vadd.f32 %v605_v2, %v106_v48  ;;  %v374_v60 = vadd.f32 %v619_v6, %v306_v49  ;;  %v307_v61 = vmul.f32 %v614_v5, %v239_v45  ;;  %v247_v41 = vld [vmem:[%s1449_s3 + $0xc0] sm:$0xff]  ;;  %v48_v46 = vld [vmem:[%s1446_s0 + $0xc8] sm:$0xff] }
  0x18   :  { %499 = vst [vmem:[%s1452_s6 + $0x60] sm:$0xff] %v435_v52  ;;  %v437_v0 = vadd.f32 %v373_v54, %v173_v53  ;;  %v175_v3 = vadd.f32 %v605_v2, %v107_v55  ;;  %v108_v4 = vmul.f32 %v600_v1, %v40_v50  ;;  %v308_v7 = vmul.f32 %v614_v5, %v240_v51  ;;  %v248_v47 = vld [vmem:[%s1449_s3 + $0xc8] sm:$0xff]  ;;  %v49_v52 = vld [vmem:[%s1446_s0 + $0xd0] sm:$0xff] }
  0x19   :  { %500 = vst [vmem:[%s1452_s6 + $0x68] sm:$0xff] %v436_v58  ;;  %v438_v9 = vadd.f32 %v374_v60, %v174_v59  ;;  %v375_v10 = vadd.f32 %v619_v6, %v307_v61  ;;  %v109_v11 = vmul.f32 %v600_v1, %v41_v56  ;;  %v309_v12 = vmul.f32 %v614_v5, %v241_v57  ;;  %v249_v53 = vld [vmem:[%s1449_s3 + $0xd0] sm:$0xff]  ;;  %v50_v58 = vld [vmem:[%s1446_s0 + $0xd8] sm:$0xff] }
  0x1a   :  { %501 = vst [vmem:[%s1452_s6 + $0x70] sm:$0xff] %v437_v0  ;;  %v176_v14 = vadd.f32 %v605_v2, %v108_v4  ;;  %v376_v15 = vadd.f32 %v619_v6, %v308_v7  ;;  %v110_v16 = vmul.f32 %v600_v1, %v42_v62  ;;  %v310_v17 = vmul.f32 %v614_v5, %v242_v63  ;;  %v250_v59 = vld [vmem:[%s1449_s3 + $0xd8] sm:$0xff]  ;;  %v51_v0 = vld [vmem:[%s1446_s0 + $0xe0] sm:$0xff] }
  0x1b   :  { %502 = vst [vmem:[%s1452_s6 + $0x78] sm:$0xff] %v438_v9  ;;  %v439_v20 = vadd.f32 %v375_v10, %v175_v3  ;;  %v177_v21 = vadd.f32 %v605_v2, %v109_v11  ;;  %v377_v22 = vadd.f32 %v619_v6, %v309_v12  ;;  %v111_v23 = vmul.f32 %v600_v1, %v43_v8  ;;  %v251_v9 = vld [vmem:[%s1449_s3 + $0xe0] sm:$0xff] }
  0x1c   :  { %v440_v26 = vadd.f32 %v376_v15, %v176_v14  ;;  %v178_v27 = vadd.f32 %v605_v2, %v110_v16  ;;  %v378_v28 = vadd.f32 %v619_v6, %v310_v17  ;;  %v311_v29 = vmul.f32 %v614_v5, %v243_v13  ;;  %v52_v14 = vld [vmem:[%s1446_s0 + $0xe8] sm:$0xff] }
  0x1d   :  { %503 = vst [vmem:[%s1452_s6 + $0x80] sm:$0xff] %v439_v20  ;;  %v441_v32 = vadd.f32 %v377_v22, %v177_v21  ;;  %v179_v33 = vadd.f32 %v605_v2, %v111_v23  ;;  %v112_v34 = vmul.f32 %v600_v1, %v44_v18  ;;  %v312_v35 = vmul.f32 %v614_v5, %v244_v19  ;;  %v252_v15 = vld [vmem:[%s1449_s3 + $0xe8] sm:$0xff]  ;;  %v53_v20 = vld [vmem:[%s1446_s0 + $0xf0] sm:$0xff] }
  0x1e   :  { %504 = vst [vmem:[%s1452_s6 + $0x88] sm:$0xff] %v440_v26  ;;  %v442_v37 = vadd.f32 %v378_v28, %v178_v27  ;;  %v379_v38 = vadd.f32 %v619_v6, %v311_v29  ;;  %v113_v39 = vmul.f32 %v600_v1, %v45_v24  ;;  %v313_v40 = vmul.f32 %v614_v5, %v245_v25  ;;  %v253_v21 = vld [vmem:[%s1449_s3 + $0xf0] sm:$0xff]  ;;  %v54_v26 = vld [vmem:[%s1446_s0 + $0xf8] sm:$0xff] }
  0x1f   :  { %505 = vst [vmem:[%s1452_s6 + $0x90] sm:$0xff] %v441_v32  ;;  %v180_v42 = vadd.f32 %v605_v2, %v112_v34  ;;  %v380_v43 = vadd.f32 %v619_v6, %v312_v35  ;;  %v114_v44 = vmul.f32 %v600_v1, %v46_v30  ;;  %v314_v45 = vmul.f32 %v614_v5, %v246_v31  ;;  %v254_v27 = vld [vmem:[%s1449_s3 + $0xf8] sm:$0xff]  ;;  %v55_v32 = vld [vmem:[%s1446_s0 + $0x100] sm:$0xff] }
  0x20   :  { %506 = vst [vmem:[%s1452_s6 + $0x98] sm:$0xff] %v442_v37  ;;  %v443_v48 = vadd.f32 %v379_v38, %v179_v33  ;;  %v181_v49 = vadd.f32 %v605_v2, %v113_v39  ;;  %v381_v50 = vadd.f32 %v619_v6, %v313_v40  ;;  %v115_v51 = vmul.f32 %v600_v1, %v47_v36  ;;  %v255_v37 = vld [vmem:[%s1449_s3 + $0x100] sm:$0xff] }
  0x21   :  { %v444_v54 = vadd.f32 %v380_v43, %v180_v42  ;;  %v182_v55 = vadd.f32 %v605_v2, %v114_v44  ;;  %v382_v56 = vadd.f32 %v619_v6, %v314_v45  ;;  %v315_v57 = vmul.f32 %v614_v5, %v247_v41  ;;  %v56_v42 = vld [vmem:[%s1446_s0 + $0x108] sm:$0xff] }
  0x22   :  { %507 = vst [vmem:[%s1452_s6 + $0xa0] sm:$0xff] %v443_v48  ;;  %v445_v60 = vadd.f32 %v381_v50, %v181_v49  ;;  %v183_v61 = vadd.f32 %v605_v2, %v115_v51  ;;  %v116_v62 = vmul.f32 %v600_v1, %v48_v46  ;;  %v316_v63 = vmul.f32 %v614_v5, %v248_v47  ;;  %v256_v43 = vld [vmem:[%s1449_s3 + $0x108] sm:$0xff]  ;;  %v57_v48 = vld [vmem:[%s1446_s0 + $0x110] sm:$0xff] }
  0x23   :  { %508 = vst [vmem:[%s1452_s6 + $0xa8] sm:$0xff] %v444_v54  ;;  %v446_v3 = vadd.f32 %v382_v56, %v182_v55  ;;  %v383_v4 = vadd.f32 %v619_v6, %v315_v57  ;;  %v117_v7 = vmul.f32 %v600_v1, %v49_v52  ;;  %v317_v8 = vmul.f32 %v614_v5, %v249_v53  ;;  %v257_v49 = vld [vmem:[%s1449_s3 + $0x110] sm:$0xff]  ;;  %v58_v54 = vld [vmem:[%s1446_s0 + $0x118] sm:$0xff] }
  0x24   :  { %509 = vst [vmem:[%s1452_s6 + $0xb0] sm:$0xff] %v445_v60  ;;  %v184_v10 = vadd.f32 %v605_v2, %v116_v62  ;;  %v384_v11 = vadd.f32 %v619_v6, %v316_v63  ;;  %v118_v12 = vmul.f32 %v600_v1, %v50_v58  ;;  %v318_v13 = vmul.f32 %v614_v5, %v250_v59  ;;  %v258_v55 = vld [vmem:[%s1449_s3 + $0x118] sm:$0xff]  ;;  %v59_v60 = vld [vmem:[%s1446_s0 + $0x120] sm:$0xff] }
  0x25   :  { %510 = vst [vmem:[%s1452_s6 + $0xb8] sm:$0xff] %v446_v3  ;;  %v447_v16 = vadd.f32 %v383_v4, %v183_v61  ;;  %v185_v17 = vadd.f32 %v605_v2, %v117_v7  ;;  %v385_v18 = vadd.f32 %v619_v6, %v317_v8  ;;  %v119_v19 = vmul.f32 %v600_v1, %v51_v0  ;;  %v259_v3 = vld [vmem:[%s1449_s3 + $0x120] sm:$0xff] }
  0x26   :  { %v448_v22 = vadd.f32 %v384_v11, %v184_v10  ;;  %v186_v23 = vadd.f32 %v605_v2, %v118_v12  ;;  %v386_v24 = vadd.f32 %v619_v6, %v318_v13  ;;  %v319_v25 = vmul.f32 %v614_v5, %v251_v9  ;;  %v60_v10 = vld [vmem:[%s1446_s0 + $0x128] sm:$0xff] }
  0x27   :  { %511 = vst [vmem:[%s1452_s6 + $0xc0] sm:$0xff] %v447_v16  ;;  %v449_v28 = vadd.f32 %v385_v18, %v185_v17  ;;  %v187_v29 = vadd.f32 %v605_v2, %v119_v19  ;;  %v120_v30 = vmul.f32 %v600_v1, %v52_v14  ;;  %v320_v31 = vmul.f32 %v614_v5, %v252_v15  ;;  %v260_v11 = vld [vmem:[%s1449_s3 + $0x128] sm:$0xff]  ;;  %v61_v16 = vld [vmem:[%s1446_s0 + $0x130] sm:$0xff] }
  0x28   :  { %512 = vst [vmem:[%s1452_s6 + $0xc8] sm:$0xff] %v448_v22  ;;  %v450_v33 = vadd.f32 %v386_v24, %v186_v23  ;;  %v387_v34 = vadd.f32 %v619_v6, %v319_v25  ;;  %v121_v35 = vmul.f32 %v600_v1, %v53_v20  ;;  %v321_v36 = vmul.f32 %v614_v5, %v253_v21  ;;  %v261_v17 = vld [vmem:[%s1449_s3 + $0x130] sm:$0xff]  ;;  %v62_v22 = vld [vmem:[%s1446_s0 + $0x138] sm:$0xff] }
  0x29   :  { %513 = vst [vmem:[%s1452_s6 + $0xd0] sm:$0xff] %v449_v28  ;;  %v188_v38 = vadd.f32 %v605_v2, %v120_v30  ;;  %v388_v39 = vadd.f32 %v619_v6, %v320_v31  ;;  %v122_v40 = vmul.f32 %v600_v1, %v54_v26  ;;  %v322_v41 = vmul.f32 %v614_v5, %v254_v27  ;;  %v262_v23 = vld [vmem:[%s1449_s3 + $0x138] sm:$0xff]  ;;  %v63_v28 = vld [vmem:[%s1446_s0 + $0x140] sm:$0xff] }
  0x2a   :  { %514 = vst [vmem:[%s1452_s6 + $0xd8] sm:$0xff] %v450_v33  ;;  %v451_v44 = vadd.f32 %v387_v34, %v187_v29  ;;  %v189_v45 = vadd.f32 %v605_v2, %v121_v35  ;;  %v389_v46 = vadd.f32 %v619_v6, %v321_v36  ;;  %v123_v47 = vmul.f32 %v600_v1, %v55_v32  ;;  %v263_v33 = vld [vmem:[%s1449_s3 + $0x140] sm:$0xff] }
  0x2b   :  { %v452_v50 = vadd.f32 %v388_v39, %v188_v38  ;;  %v190_v51 = vadd.f32 %v605_v2, %v122_v40  ;;  %v390_v52 = vadd.f32 %v619_v6, %v322_v41  ;;  %v323_v53 = vmul.f32 %v614_v5, %v255_v37  ;;  %v64_v38 = vld [vmem:[%s1446_s0 + $0x148] sm:$0xff] }
  0x2c   :  { %515 = vst [vmem:[%s1452_s6 + $0xe0] sm:$0xff] %v451_v44  ;;  %v453_v56 = vadd.f32 %v389_v46, %v189_v45  ;;  %v191_v57 = vadd.f32 %v605_v2, %v123_v47  ;;  %v124_v58 = vmul.f32 %v600_v1, %v56_v42  ;;  %v324_v59 = vmul.f32 %v614_v5, %v256_v43  ;;  %v264_v39 = vld [vmem:[%s1449_s3 + $0x148] sm:$0xff]  ;;  %v65_v44 = vld [vmem:[%s1446_s0 + $0x150] sm:$0xff] }
  0x2d   :  { %516 = vst [vmem:[%s1452_s6 + $0xe8] sm:$0xff] %v452_v50  ;;  %v454_v61 = vadd.f32 %v390_v52, %v190_v51  ;;  %v391_v62 = vadd.f32 %v619_v6, %v323_v53  ;;  %v125_v63 = vmul.f32 %v600_v1, %v57_v48  ;;  %v325_v0 = vmul.f32 %v614_v5, %v257_v49  ;;  %v265_v45 = vld [vmem:[%s1449_s3 + $0x150] sm:$0xff]  ;;  %v66_v50 = vld [vmem:[%s1446_s0 + $0x158] sm:$0xff] }
  0x2e   :  { %517 = vst [vmem:[%s1452_s6 + $0xf0] sm:$0xff] %v453_v56  ;;  %v192_v4 = vadd.f32 %v605_v2, %v124_v58  ;;  %v392_v7 = vadd.f32 %v619_v6, %v324_v59  ;;  %v126_v8 = vmul.f32 %v600_v1, %v58_v54  ;;  %v326_v9 = vmul.f32 %v614_v5, %v258_v55  ;;  %v266_v51 = vld [vmem:[%s1449_s3 + $0x158] sm:$0xff]  ;;  %v67_v56 = vld [vmem:[%s1446_s0 + $0x160] sm:$0xff] }
  0x2f   :  { %518 = vst [vmem:[%s1452_s6 + $0xf8] sm:$0xff] %v454_v61  ;;  %v455_v12 = vadd.f32 %v391_v62, %v191_v57  ;;  %v193_v13 = vadd.f32 %v605_v2, %v125_v63  ;;  %v393_v14 = vadd.f32 %v619_v6, %v325_v0  ;;  %v127_v15 = vmul.f32 %v600_v1, %v59_v60  ;;  %v267_v61 = vld [vmem:[%s1449_s3 + $0x160] sm:$0xff] }
  0x30   :  { %v456_v18 = vadd.f32 %v392_v7, %v192_v4  ;;  %v194_v19 = vadd.f32 %v605_v2, %v126_v8  ;;  %v394_v20 = vadd.f32 %v619_v6, %v326_v9  ;;  %v327_v21 = vmul.f32 %v614_v5, %v259_v3  ;;  %v68_v4 = vld [vmem:[%s1446_s0 + $0x168] sm:$0xff] }
  0x31   :  { %519 = vst [vmem:[%s1452_s6 + $0x100] sm:$0xff] %v455_v12  ;;  %v457_v24 = vadd.f32 %v393_v14, %v193_v13  ;;  %v195_v25 = vadd.f32 %v605_v2, %v127_v15  ;;  %v128_v26 = vmul.f32 %v600_v1, %v60_v10  ;;  %v328_v27 = vmul.f32 %v614_v5, %v260_v11  ;;  %v268_v7 = vld [vmem:[%s1449_s3 + $0x168] sm:$0xff]  ;;  %v69_v12 = vld [vmem:[%s1446_s0 + $0x170] sm:$0xff] }
  0x32   :  { %520 = vst [vmem:[%s1452_s6 + $0x108] sm:$0xff] %v456_v18  ;;  %v458_v29 = vadd.f32 %v394_v20, %v194_v19  ;;  %v395_v30 = vadd.f32 %v619_v6, %v327_v21  ;;  %v129_v31 = vmul.f32 %v600_v1, %v61_v16  ;;  %v329_v32 = vmul.f32 %v614_v5, %v261_v17  ;;  %v269_v13 = vld [vmem:[%s1449_s3 + $0x170] sm:$0xff]  ;;  %v70_v18 = vld [vmem:[%s1446_s0 + $0x178] sm:$0xff] }
  0x33   :  { %521 = vst [vmem:[%s1452_s6 + $0x110] sm:$0xff] %v457_v24  ;;  %v196_v34 = vadd.f32 %v605_v2, %v128_v26  ;;  %v396_v35 = vadd.f32 %v619_v6, %v328_v27  ;;  %v130_v36 = vmul.f32 %v600_v1, %v62_v22  ;;  %v330_v37 = vmul.f32 %v614_v5, %v262_v23  ;;  %v270_v19 = vld [vmem:[%s1449_s3 + $0x178] sm:$0xff]  ;;  %v71_v24 = vld [vmem:[%s1446_s0 + $0x180] sm:$0xff] }
  0x34   :  { %522 = vst [vmem:[%s1452_s6 + $0x118] sm:$0xff] %v458_v29  ;;  %v459_v40 = vadd.f32 %v395_v30, %v195_v25  ;;  %v197_v41 = vadd.f32 %v605_v2, %v129_v31  ;;  %v397_v42 = vadd.f32 %v619_v6, %v329_v32  ;;  %v131_v43 = vmul.f32 %v600_v1, %v63_v28  ;;  %v271_v29 = vld [vmem:[%s1449_s3 + $0x180] sm:$0xff] }
  0x35   :  { %v460_v46 = vadd.f32 %v396_v35, %v196_v34  ;;  %v198_v47 = vadd.f32 %v605_v2, %v130_v36  ;;  %v398_v48 = vadd.f32 %v619_v6, %v330_v37  ;;  %v331_v49 = vmul.f32 %v614_v5, %v263_v33  ;;  %v72_v34 = vld [vmem:[%s1446_s0 + $0x188] sm:$0xff] }
  0x36   :  { %523 = vst [vmem:[%s1452_s6 + $0x120] sm:$0xff] %v459_v40  ;;  %v461_v52 = vadd.f32 %v397_v42, %v197_v41  ;;  %v199_v53 = vadd.f32 %v605_v2, %v131_v43  ;;  %v132_v54 = vmul.f32 %v600_v1, %v64_v38  ;;  %v332_v55 = vmul.f32 %v614_v5, %v264_v39  ;;  %v272_v35 = vld [vmem:[%s1449_s3 + $0x188] sm:$0xff]  ;;  %v73_v40 = vld [vmem:[%s1446_s0 + $0x190] sm:$0xff] }
  0x37   :  { %524 = vst [vmem:[%s1452_s6 + $0x128] sm:$0xff] %v460_v46  ;;  %v462_v57 = vadd.f32 %v398_v48, %v198_v47  ;;  %v399_v58 = vadd.f32 %v619_v6, %v331_v49  ;;  %v133_v59 = vmul.f32 %v600_v1, %v65_v44  ;;  %v333_v60 = vmul.f32 %v614_v5, %v265_v45  ;;  %v273_v41 = vld [vmem:[%s1449_s3 + $0x190] sm:$0xff]  ;;  %v74_v46 = vld [vmem:[%s1446_s0 + $0x198] sm:$0xff] }
  0x38   :  { %525 = vst [vmem:[%s1452_s6 + $0x130] sm:$0xff] %v461_v52  ;;  %v200_v62 = vadd.f32 %v605_v2, %v132_v54  ;;  %v400_v63 = vadd.f32 %v619_v6, %v332_v55  ;;  %v134_v0 = vmul.f32 %v600_v1, %v66_v50  ;;  %v334_v3 = vmul.f32 %v614_v5, %v266_v51  ;;  %v274_v47 = vld [vmem:[%s1449_s3 + $0x198] sm:$0xff]  ;;  %v75_v52 = vld [vmem:[%s1446_s0 + $0x1a0] sm:$0xff] }
  0x39   :  { %526 = vst [vmem:[%s1452_s6 + $0x138] sm:$0xff] %v462_v57  ;;  %v463_v8 = vadd.f32 %v399_v58, %v199_v53  ;;  %v201_v9 = vadd.f32 %v605_v2, %v133_v59  ;;  %v401_v10 = vadd.f32 %v619_v6, %v333_v60  ;;  %v135_v11 = vmul.f32 %v600_v1, %v67_v56  ;;  %v275_v57 = vld [vmem:[%s1449_s3 + $0x1a0] sm:$0xff] }
  0x3a   :  { %v464_v14 = vadd.f32 %v400_v63, %v200_v62  ;;  %v202_v15 = vadd.f32 %v605_v2, %v134_v0  ;;  %v402_v16 = vadd.f32 %v619_v6, %v334_v3  ;;  %v335_v17 = vmul.f32 %v614_v5, %v267_v61  ;;  %v76_v62 = vld [vmem:[%s1446_s0 + $0x1a8] sm:$0xff] }
  0x3b   :  { %527 = vst [vmem:[%s1452_s6 + $0x140] sm:$0xff] %v463_v8  ;;  %v465_v20 = vadd.f32 %v401_v10, %v201_v9  ;;  %v203_v21 = vadd.f32 %v605_v2, %v135_v11  ;;  %v136_v22 = vmul.f32 %v600_v1, %v68_v4  ;;  %v336_v23 = vmul.f32 %v614_v5, %v268_v7  ;;  %v276_v63 = vld [vmem:[%s1449_s3 + $0x1a8] sm:$0xff]  ;;  %v77_v8 = vld [vmem:[%s1446_s0 + $0x1b0] sm:$0xff] }
  0x3c   :  { %528 = vst [vmem:[%s1452_s6 + $0x148] sm:$0xff] %v464_v14  ;;  %v466_v25 = vadd.f32 %v402_v16, %v202_v15  ;;  %v403_v26 = vadd.f32 %v619_v6, %v335_v17  ;;  %v137_v27 = vmul.f32 %v600_v1, %v69_v12  ;;  %v337_v28 = vmul.f32 %v614_v5, %v269_v13  ;;  %v277_v9 = vld [vmem:[%s1449_s3 + $0x1b0] sm:$0xff]  ;;  %v78_v14 = vld [vmem:[%s1446_s0 + $0x1b8] sm:$0xff] }
  0x3d   :  { %529 = vst [vmem:[%s1452_s6 + $0x150] sm:$0xff] %v465_v20  ;;  %v204_v30 = vadd.f32 %v605_v2, %v136_v22  ;;  %v404_v31 = vadd.f32 %v619_v6, %v336_v23  ;;  %v138_v32 = vmul.f32 %v600_v1, %v70_v18  ;;  %v338_v33 = vmul.f32 %v614_v5, %v270_v19  ;;  %v278_v15 = vld [vmem:[%s1449_s3 + $0x1b8] sm:$0xff]  ;;  %v79_v20 = vld [vmem:[%s1446_s0 + $0x1c0] sm:$0xff] }
  0x3e   :  { %530 = vst [vmem:[%s1452_s6 + $0x158] sm:$0xff] %v466_v25  ;;  %v467_v36 = vadd.f32 %v403_v26, %v203_v21  ;;  %v205_v37 = vadd.f32 %v605_v2, %v137_v27  ;;  %v405_v38 = vadd.f32 %v619_v6, %v337_v28  ;;  %v139_v39 = vmul.f32 %v600_v1, %v71_v24  ;;  %v279_v25 = vld [vmem:[%s1449_s3 + $0x1c0] sm:$0xff] }
  0x3f   :  { %v468_v42 = vadd.f32 %v404_v31, %v204_v30  ;;  %v206_v43 = vadd.f32 %v605_v2, %v138_v32  ;;  %v406_v44 = vadd.f32 %v619_v6, %v338_v33  ;;  %v339_v45 = vmul.f32 %v614_v5, %v271_v29  ;;  %v80_v30 = vld [vmem:[%s1446_s0 + $0x1c8] sm:$0xff] }
  0x40   :  { %531 = vst [vmem:[%s1452_s6 + $0x160] sm:$0xff] %v467_v36  ;;  %v469_v48 = vadd.f32 %v405_v38, %v205_v37  ;;  %v207_v49 = vadd.f32 %v605_v2, %v139_v39  ;;  %v140_v50 = vmul.f32 %v600_v1, %v72_v34  ;;  %v340_v51 = vmul.f32 %v614_v5, %v272_v35  ;;  %v280_v31 = vld [vmem:[%s1449_s3 + $0x1c8] sm:$0xff]  ;;  %v81_v36 = vld [vmem:[%s1446_s0 + $0x1d0] sm:$0xff] }
  0x41   :  { %532 = vst [vmem:[%s1452_s6 + $0x168] sm:$0xff] %v468_v42  ;;  %v470_v53 = vadd.f32 %v406_v44, %v206_v43  ;;  %v407_v54 = vadd.f32 %v619_v6, %v339_v45  ;;  %v141_v55 = vmul.f32 %v600_v1, %v73_v40  ;;  %v341_v56 = vmul.f32 %v614_v5, %v273_v41  ;;  %v281_v37 = vld [vmem:[%s1449_s3 + $0x1d0] sm:$0xff]  ;;  %v82_v42 = vld [vmem:[%s1446_s0 + $0x1d8] sm:$0xff] }
  0x42   :  { %533 = vst [vmem:[%s1452_s6 + $0x170] sm:$0xff] %v469_v48  ;;  %v208_v58 = vadd.f32 %v605_v2, %v140_v50  ;;  %v408_v59 = vadd.f32 %v619_v6, %v340_v51  ;;  %v142_v60 = vmul.f32 %v600_v1, %v74_v46  ;;  %v342_v61 = vmul.f32 %v614_v5, %v274_v47  ;;  %v282_v43 = vld [vmem:[%s1449_s3 + $0x1d8] sm:$0xff]  ;;  %v83_v48 = vld [vmem:[%s1446_s0 + $0x1e0] sm:$0xff] }
  0x43   :  { %534 = vst [vmem:[%s1452_s6 + $0x178] sm:$0xff] %v470_v53  ;;  %v471_v0 = vadd.f32 %v407_v54, %v207_v49  ;;  %v209_v3 = vadd.f32 %v605_v2, %v141_v55  ;;  %v409_v4 = vadd.f32 %v619_v6, %v341_v56  ;;  %v143_v7 = vmul.f32 %v600_v1, %v75_v52  ;;  %v283_v53 = vld [vmem:[%s1449_s3 + $0x1e0] sm:$0xff] }
  0x44   :  { %v472_v10 = vadd.f32 %v408_v59, %v208_v58  ;;  %v210_v11 = vadd.f32 %v605_v2, %v142_v60  ;;  %v410_v12 = vadd.f32 %v619_v6, %v342_v61  ;;  %v343_v13 = vmul.f32 %v614_v5, %v275_v57  ;;  %v84_v58 = vld [vmem:[%s1446_s0 + $0x1e8] sm:$0xff] }
  0x45   :  { %535 = vst [vmem:[%s1452_s6 + $0x180] sm:$0xff] %v471_v0  ;;  %v473_v16 = vadd.f32 %v409_v4, %v209_v3  ;;  %v211_v17 = vadd.f32 %v605_v2, %v143_v7  ;;  %v144_v18 = vmul.f32 %v600_v1, %v76_v62  ;;  %v344_v19 = vmul.f32 %v614_v5, %v276_v63  ;;  %v284_v59 = vld [vmem:[%s1449_s3 + $0x1e8] sm:$0xff]  ;;  %v85_v0 = vld [vmem:[%s1446_s0 + $0x1f0] sm:$0xff] }
  0x46   :  { %536 = vst [vmem:[%s1452_s6 + $0x188] sm:$0xff] %v472_v10  ;;  %v474_v21 = vadd.f32 %v410_v12, %v210_v11  ;;  %v411_v22 = vadd.f32 %v619_v6, %v343_v13  ;;  %v145_v23 = vmul.f32 %v600_v1, %v77_v8  ;;  %v345_v24 = vmul.f32 %v614_v5, %v277_v9  ;;  %v285_v3 = vld [vmem:[%s1449_s3 + $0x1f0] sm:$0xff]  ;;  %v86_v10 = vld [vmem:[%s1446_s0 + $0x1f8] sm:$0xff] }
  0x47   :  { %537 = vst [vmem:[%s1452_s6 + $0x190] sm:$0xff] %v473_v16  ;;  %v212_v26 = vadd.f32 %v605_v2, %v144_v18  ;;  %v412_v27 = vadd.f32 %v619_v6, %v344_v19  ;;  %v146_v28 = vmul.f32 %v600_v1, %v78_v14  ;;  %v346_v29 = vmul.f32 %v614_v5, %v278_v15  ;;  %v286_v11 = vld [vmem:[%s1449_s3 + $0x1f8] sm:$0xff] }
  0x48   :  { %538 = vst [vmem:[%s1452_s6 + $0x198] sm:$0xff] %v474_v21  ;;  %v475_v32 = vadd.f32 %v411_v22, %v211_v17  ;;  %v213_v33 = vadd.f32 %v605_v2, %v145_v23  ;;  %v413_v34 = vadd.f32 %v619_v6, %v345_v24  ;;  %v147_v35 = vmul.f32 %v600_v1, %v79_v20 }
  0x49   :  { %v476_v38 = vadd.f32 %v412_v27, %v212_v26  ;;  %v214_v39 = vadd.f32 %v605_v2, %v146_v28  ;;  %v414_v40 = vadd.f32 %v619_v6, %v346_v29  ;;  %v347_v41 = vmul.f32 %v614_v5, %v279_v25 }
  0x4a   :  { %539 = vst [vmem:[%s1452_s6 + $0x1a0] sm:$0xff] %v475_v32  ;;  %v477_v44 = vadd.f32 %v413_v34, %v213_v33  ;;  %v215_v45 = vadd.f32 %v605_v2, %v147_v35  ;;  %v148_v46 = vmul.f32 %v600_v1, %v80_v30  ;;  %v348_v47 = vmul.f32 %v614_v5, %v280_v31 }
  0x4b   :  { %540 = vst [vmem:[%s1452_s6 + $0x1a8] sm:$0xff] %v476_v38  ;;  %v478_v49 = vadd.f32 %v414_v40, %v214_v39  ;;  %v415_v50 = vadd.f32 %v619_v6, %v347_v41  ;;  %v149_v51 = vmul.f32 %v600_v1, %v81_v36  ;;  %v349_v52 = vmul.f32 %v614_v5, %v281_v37 }
  0x4c   :  { %541 = vst [vmem:[%s1452_s6 + $0x1b0] sm:$0xff] %v477_v44  ;;  %v216_v54 = vadd.f32 %v605_v2, %v148_v46  ;;  %v416_v55 = vadd.f32 %v619_v6, %v348_v47  ;;  %v150_v56 = vmul.f32 %v600_v1, %v82_v42  ;;  %v350_v57 = vmul.f32 %v614_v5, %v282_v43 }
  0x4d   :  { %542 = vst [vmem:[%s1452_s6 + $0x1b8] sm:$0xff] %v478_v49  ;;  %v479_v60 = vadd.f32 %v415_v50, %v215_v45  ;;  %v217_v61 = vadd.f32 %v605_v2, %v149_v51  ;;  %v417_v62 = vadd.f32 %v619_v6, %v349_v52  ;;  %v151_v63 = vmul.f32 %v600_v1, %v83_v48 }
  0x4e   :  { %v480_v4 = vadd.f32 %v416_v55, %v216_v54  ;;  %v218_v7 = vadd.f32 %v605_v2, %v150_v56  ;;  %v418_v8 = vadd.f32 %v619_v6, %v350_v57  ;;  %v351_v9 = vmul.f32 %v614_v5, %v283_v53 }
  0x4f   :  { %543 = vst [vmem:[%s1452_s6 + $0x1c0] sm:$0xff] %v479_v60  ;;  %v481_v12 = vadd.f32 %v417_v62, %v217_v61  ;;  %v219_v13 = vadd.f32 %v605_v2, %v151_v63  ;;  %v152_v14 = vmul.f32 %v600_v1, %v84_v58  ;;  %v352_v15 = vmul.f32 %v614_v5, %v284_v59 }
  0x50   :  { %544 = vst [vmem:[%s1452_s6 + $0x1c8] sm:$0xff] %v480_v4  ;;  %v482_v16 = vadd.f32 %v418_v8, %v218_v7  ;;  %v419_v17 = vadd.f32 %v619_v6, %v351_v9  ;;  %v153_v18 = vmul.f32 %v600_v1, %v85_v0  ;;  %v353_v19 = vmul.f32 %v614_v5, %v285_v3 }
  0x51   :  { %545 = vst [vmem:[%s1452_s6 + $0x1d0] sm:$0xff] %v481_v12  ;;  %v220_v20 = vadd.f32 %v605_v2, %v152_v14  ;;  %v420_v21 = vadd.f32 %v619_v6, %v352_v15  ;;  %v154_v22 = vmul.f32 %v600_v1, %v86_v10  ;;  %v354_v23 = vmul.f32 %v614_v5, %v286_v11 }
  0x52   :  { %546 = vst [vmem:[%s1452_s6 + $0x1d8] sm:$0xff] %v482_v16  ;;  %v483_v24 = vadd.f32 %v419_v17, %v219_v13  ;;  %v221_v25 = vadd.f32 %v605_v2, %v153_v18  ;;  %v421_v26 = vadd.f32 %v619_v6, %v353_v19 }
  0x53   :  { %v484_v27 = vadd.f32 %v420_v21, %v220_v20  ;;  %v222_v28 = vadd.f32 %v605_v2, %v154_v22  ;;  %v422_v29 = vadd.f32 %v619_v6, %v354_v23 }
  0x54   :  { %547 = vst [vmem:[%s1452_s6 + $0x1e0] sm:$0xff] %v483_v24  ;;  %v485_v1 = vadd.f32 %v421_v26, %v221_v25 }
  0x55   :  { %548 = vst [vmem:[%s1452_s6 + $0x1e8] sm:$0xff] %v484_v27  ;;  %v486_v5 = vadd.f32 %v422_v29, %v222_v28 }
  0x56   :  { %549 = vst [vmem:[%s1452_s6 + $0x1f0] sm:$0xff] %v485_v1 }
  0x57   :  { %550 = vst [vmem:[%s1452_s6 + $0x1f8] sm:$0xff] %v486_v5 }

</bundles_post_ra>
